<compile_context>
chip_gen: v7x
topology: tpu7x:2x2x1
jax: 0.10.0
libtpu: 0.0.40
codegen_flags: <defaults>
</compile_context>

<pallas_src>
import functools

import jax
import jax.numpy as jnp
from jax.experimental import pallas as pl
from jax.experimental.pallas import tpu as pltpu

BN_EPS = 1e-5


# --------------------------------------------------------------------------- #
# Kernel A: encoder + keypoint predictor + batched FPS (one group per step)
# --------------------------------------------------------------------------- #
def _encode_fps_kernel(x_ref, pcm_ref,
                       w1_ref, b1_ref, g1_ref, be1_ref,
                       w2_ref, b2_ref, g2_ref, be2_ref,
                       w3_ref, b3_ref, g3_ref, be3_ref,
                       wk1_ref, bk1_ref, wk2p_ref, bk2p_ref,
                       kpT_ref, *, batch, n_pts, num_keypoints):
    B, N, K = batch, n_pts, num_keypoints
    f32 = jnp.float32

    def bn_relu(y, g_ref, be_ref):
        # PyTorch BatchNorm1d in training mode: per-call batch statistics
        # over this group's B*N points, biased variance, eps=1e-5.
        mu = jnp.mean(y, axis=0, keepdims=True)
        ex2 = jnp.mean(y * y, axis=0, keepdims=True)
        var = jnp.maximum(ex2 - mu * mu, 0.0)
        y = (y - mu) * jax.lax.rsqrt(var + BN_EPS)
        return jnp.maximum(y * g_ref[...] + be_ref[...], 0.0)

    # ---- pointwise-conv encoder (per-point matmuls, f32 accumulation) ----- #
    x = x_ref[0]                                                   # (B*N, 3)
    h = jnp.dot(x, w1_ref[...], preferred_element_type=f32) + b1_ref[...]
    h = bn_relu(h, g1_ref, be1_ref)                                # (B*N, 64)
    h = jnp.dot(h, w2_ref[...], preferred_element_type=f32) + b2_ref[...]
    h = bn_relu(h, g2_ref, be2_ref)                                # (B*N, 128)
    h = jnp.dot(h, w3_ref[...], preferred_element_type=f32) + b3_ref[...]
    h = bn_relu(h, g3_ref, be3_ref)                                # (B*N, L)

    # ---- per-cloud max pool (sublane-aligned static slices; B is tiny) ---- #
    lat = jnp.concatenate(
        [jnp.max(h[b * N:(b + 1) * N, :], axis=0, keepdims=True)
         for b in range(B)], axis=0)                               # (B, L)

    # ---- keypoint predictor, fused [x|y|z]-block head ---------------------- #
    hk = jnp.maximum(
        jnp.dot(lat, wk1_ref[...], preferred_element_type=f32) + bk1_ref[...],
        0.0)                                                       # (B, 128)
    kp = jnp.dot(hk, wk2p_ref[...], preferred_element_type=f32) + bk2p_ref[...]
    # kp columns: [x_0..x_{K-1} | y_0..y_{K-1} | z_0..z_{K-1}]      # (B, 3K)

    # ---- FPS regularization, batched over the B clouds of this group ------ #
    pts = pcm_ref[0]                                               # (3, B, N)
    px, py, pz = pts[0], pts[1], pts[2]                            # (B, N)

    def d2(sx, sy, sz):               # (B, 1) coords -> (B, N) squared dists
        dx, dy, dz = px - sx, py - sy, pz - sz
        return dx * dx + dy * dy + dz * dz

    # distance to the nearest *predicted* keypoint (sqrt omitted: the argmax
    # of min(.) is invariant under the monotone sqrt)
    r = None
    for j in range(K):
        d = d2(kp[:, j:j + 1], kp[:, K + j:K + j + 1],
               kp[:, 2 * K + j:2 * K + j + 1])
        r = d if r is None else jnp.minimum(r, d)

    lane = jax.lax.broadcasted_iota(jnp.int32, (B, N), 1)
    colK = jax.lax.broadcasted_iota(jnp.int32, (B, K), 1)
    kx = jnp.zeros((B, K), f32)
    ky = jnp.zeros((B, K), f32)
    kz = jnp.zeros((B, K), f32)

    run = None                        # running min distance to SELECTED points
    for i in range(K):
        mind = r if i == 0 else run
        m = jnp.max(mind, axis=1, keepdims=True)                       # (B, 1)
        # first index achieving the max (torch.argmax tie-break)
        first = jnp.min(jnp.where(mind == m, lane, N), axis=1, keepdims=True)
        onehot = (lane == first).astype(f32)                           # (B, N)
        sx = jnp.sum(px * onehot, axis=1, keepdims=True)               # (B, 1)
        sy = jnp.sum(py * onehot, axis=1, keepdims=True)
        sz = jnp.sum(pz * onehot, axis=1, keepdims=True)
        kx = jnp.where(colK == i, sx, kx)
        ky = jnp.where(colK == i, sy, ky)
        kz = jnp.where(colK == i, sz, kz)
        dnew = d2(sx, sy, sz)
        run = dnew if i == 0 else jnp.minimum(run, dnew)

    # one store per grid step
    kpT_ref[0] = jnp.stack([kx, ky, kz], axis=0)                   # (3, B, K)


# --------------------------------------------------------------------------- #
# Kernel B: cage MLP + trilinear cage deformation (single step, whole batch)
# --------------------------------------------------------------------------- #
def _cage_kernel(kpT_ref, srcT_ref, gridT_ref,
                 wc1p_ref, bc1_ref, wc2p_ref, bc2p_ref,
                 outT_ref, *, batch, n_pts, num_keypoints, cage_size):
    B, N, K, C = batch, n_pts, num_keypoints, cage_size
    C3 = C * C * C
    f32 = jnp.float32

    # keypoint difference (target - source), per coordinate plane
    diff = kpT_ref[1] - kpT_ref[0]                                 # (3, B, K)
    kdx, kdy, kdz = diff[0], diff[1], diff[2]                      # (B, K)

    # cage-deformation MLP; wc1p rows are permuted to [x-rows|y-rows|z-rows]
    # so the sum of per-coordinate products equals kd_interleaved @ wc1.
    h = (jnp.dot(kdx, wc1p_ref[0:K, :], preferred_element_type=f32)
         + jnp.dot(kdy, wc1p_ref[K:2 * K, :], preferred_element_type=f32)
         + jnp.dot(kdz, wc1p_ref[2 * K:3 * K, :], preferred_element_type=f32)
         + bc1_ref[...])
    h = jnp.maximum(h, 0.0)                                        # (B, 128)
    disp = jnp.dot(h, wc2p_ref[...], preferred_element_type=f32) + bc2p_ref[...]
    # disp columns: [x-cells | y-cells | z-cells], each C^3 wide     # (B, 3C^3)

    cell = jax.lax.broadcasted_iota(jnp.int32, (C3, N), 0)
    for b in range(B):
        cageT = gridT_ref[...] + jnp.concatenate(
            [disp[b:b + 1, 0:C3],
             disp[b:b + 1, C3:2 * C3],
             disp[b:b + 1, 2 * C3:3 * C3]], axis=0)                # (3, C^3)

        ptsT = srcT_ref[b]                                         # (3, N)
        pmin = jnp.min(ptsT, axis=1, keepdims=True)
        pmax = jnp.max(ptsT, axis=1, keepdims=True)
        t = (ptsT - pmin) / (pmax - pmin + 1e-6) * (C - 1)         # (3, N)
        idx = jnp.clip(t.astype(jnp.int32), 0, C - 2)              # trunc==floor
        w = t - idx.astype(f32)

        u, v, wi = idx[0:1, :], idx[1:2, :], idx[2:3, :]           # (1, N)
        wx, wy, wz = w[0:1, :], w[1:2, :], w[2:3, :]

        # trilinear weight matrix, lane-dense: (C^3, N)
        Wmat = jnp.zeros((C3, N), f32)
        for du in (0, 1):
            fx = wx if du else (1.0 - wx)
            uu = u + du
            for dv in (0, 1):
                fy = wy if dv else (1.0 - wy)
                vv = v + dv
                for dw in (0, 1):
                    fz = wz if dw else (1.0 - wz)
                    flat = uu * (C * C) + vv * C + (wi + dw)       # (1, N)
                    Wmat = Wmat + jnp.where(cell == flat, fx * fy * fz, 0.0)

        d = jnp.dot(cageT, Wmat, preferred_element_type=f32)       # (3, N)
        outT_ref[b] = ptsT + d


# --------------------------------------------------------------------------- #
# Parameters / wrapper
# --------------------------------------------------------------------------- #
def init_params(key, point_dim=3, latent_dim=64, num_keypoints=8, cage_size=4):
    ks = jax.random.split(key, 8)

    def lin(k, fan_in, fan_out, scale=0.1):
        kw, kb = jax.random.split(k)
        w = jax.random.normal(kw, (fan_in, fan_out), jnp.float32) * scale
        b = jax.random.normal(kb, (1, fan_out), jnp.float32) * 0.01
        return w, b

    p = {}
    p['w1'], p['b1'] = lin(ks[0], point_dim, 64)
    p['g1'], p['be1'] = jnp.ones((1, 64), jnp.float32), jnp.zeros((1, 64), jnp.float32)
    p['w2'], p['b2'] = lin(ks[1], 64, 128)
    p['g2'], p['be2'] = jnp.ones((1, 128), jnp.float32), jnp.zeros((1, 128), jnp.float32)
    p['w3'], p['b3'] = lin(ks[2], 128, latent_dim)
    p['g3'], p['be3'] = (jnp.ones((1, latent_dim), jnp.float32),
                         jnp.zeros((1, latent_dim), jnp.float32))
    p['wk1'], p['bk1'] = lin(ks[3], latent_dim, 128)
    p['wk2'], p['bk2'] = lin(ks[4], 128, num_keypoints * 3)
    p['wc1'], p['bc1'] = lin(ks[5], num_keypoints * 3, 128)
    p['wc2'], p['bc2'] = lin(ks[6], 128, cage_size ** 3 * 3)
    return p


def keypoint_deformer_forward(params, source_points, target_points,
                              num_keypoints=8, cage_size=4):
    B, N, _ = source_points.shape
    K = num_keypoints
    C = cage_size
    C3 = C * C * C
    f32 = jnp.float32

    src = source_points.astype(f32)
    tgt = target_points.astype(f32)

    # Encoder layout (row-major points) and FPS layout (coordinate-major).
    x2 = jnp.stack([src.reshape(B * N, 3), tgt.reshape(B * N, 3)], axis=0)      # (2, B*N, 3)
    pcm = jnp.transpose(jnp.stack([src, tgt], axis=0), (0, 3, 1, 2))            # (2, 3, B, N)
    srcT = jnp.transpose(src, (0, 2, 1))                                        # (B, 3, N)

    # Fused per-coordinate heads: permute columns/rows to [x | y | z] blocks.
    # (Tiny ops; could be hoisted into init_params if params are static.)
    wk2, bk2 = params['wk2'], params['bk2']
    wk2p = jnp.concatenate([wk2[:, 0::3], wk2[:, 1::3], wk2[:, 2::3]], axis=1)
    bk2p = jnp.concatenate([bk2[:, 0::3], bk2[:, 1::3], bk2[:, 2::3]], axis=1)
    wc1, wc2, bc2 = params['wc1'], params['wc2'], params['bc2']
    wc1p = jnp.concatenate([wc1[0::3, :], wc1[1::3, :], wc1[2::3, :]], axis=0)
    wc2p = jnp.concatenate([wc2[:, 0::3], wc2[:, 1::3], wc2[:, 2::3]], axis=1)
    bc2p = jnp.concatenate([bc2[:, 0::3], bc2[:, 1::3], bc2[:, 2::3]], axis=1)

    def full_spec(shape):
        zeros = (0,) * len(shape)
        return pl.BlockSpec(shape, lambda g: zeros)

    # ----- Kernel A: encode + predict + batched FPS (grid over group) ------ #
    kern_a = functools.partial(_encode_fps_kernel, batch=B, n_pts=N,
                               num_keypoints=K)
    kpT_all = pl.pallas_call(
        kern_a,
        grid=(2,),
        in_specs=[
            pl.BlockSpec((1, B * N, 3), lambda g: (g, 0, 0)),
            pl.BlockSpec((1, 3, B, N), lambda g: (g, 0, 0, 0)),
            full_spec(params['w1'].shape), full_spec(params['b1'].shape),
            full_spec(params['g1'].shape), full_spec(params['be1'].shape),
            full_spec(params['w2'].shape), full_spec(params['b2'].shape),
            full_spec(params['g2'].shape), full_spec(params['be2'].shape),
            full_spec(params['w3'].shape), full_spec(params['b3'].shape),
            full_spec(params['g3'].shape), full_spec(params['be3'].shape),
            full_spec(params['wk1'].shape), full_spec(params['bk1'].shape),
            full_spec(wk2p.shape), full_spec(bk2p.shape),
        ],
        out_specs=pl.BlockSpec((1, 3, B, K), lambda g: (g, 0, 0, 0)),
        out_shape=jax.ShapeDtypeStruct((2, 3, B, K), f32),
        compiler_params=pltpu.CompilerParams(
            dimension_semantics=("parallel",),
            vmem_limit_bytes=32 * 1024 * 1024),
    )(x2, pcm,
      params['w1'], params['b1'], params['g1'], params['be1'],
      params['w2'], params['b2'], params['g2'], params['be2'],
      params['w3'], params['b3'], params['g3'], params['be3'],
      params['wk1'], params['bk1'], wk2p, bk2p)

    # Cage grid (compile-time constant, matches torch.meshgrid indexing='ij').
    lin = jnp.linspace(0.0, 1.0, C)
    grid_flat = jnp.stack(jnp.meshgrid(lin, lin, lin, indexing='ij'),
                          axis=-1).reshape(C3, 3)
    gridT = jnp.transpose(grid_flat).astype(f32)                   # (3, C^3)

    # ----- Kernel B: cage MLP + trilinear deformation (single step) -------- #
    kern_b = functools.partial(_cage_kernel, batch=B, n_pts=N,
                               num_keypoints=K, cage_size=C)
    deformedT = pl.pallas_call(
        kern_b,
        out_shape=jax.ShapeDtypeStruct((B, 3, N), f32),
        compiler_params=pltpu.CompilerParams(
            vmem_limit_bytes=32 * 1024 * 1024),
    )(kpT_all, srcT, gridT, wc1p, params['bc1'], wc2p, bc2p)

    src_kp = jnp.transpose(kpT_all[0], (1, 2, 0))                  # (B, K, 3)
    tgt_kp = jnp.transpose(kpT_all[1], (1, 2, 0))
    deformed = jnp.transpose(deformedT, (0, 2, 1))                 # (B, N, 3)
    return deformed, src_kp, tgt_kp


if __name__ == "__main__":
    key = jax.random.PRNGKey(0)
    kparam, ksrc, ktgt = jax.random.split(key, 3)

    B, N = 2, 64
    params = init_params(kparam)
    source_points = jax.random.normal(ksrc, (B, N, 3), jnp.float32)
    target_points = jax.random.normal(ktgt, (B, N, 3), jnp.float32)

    fwd = jax.jit(keypoint_deformer_forward)
    deformed, src_kp, tgt_kp = fwd(params, source_points, target_points)
    jax.block_until_ready((deformed, src_kp, tgt_kp))

    assert deformed.shape == (B, N, 3)
    assert src_kp.shape == (B, 8, 3) and tgt_kp.shape == (B, 8, 3)
    assert bool(jnp.all(jnp.isfinite(deformed)))
    assert bool(jnp.all(jnp.isfinite(src_kp)))
    assert bool(jnp.all(jnp.isfinite(tgt_kp)))
    print("KERNEL_OK")
</pallas_src>

<mosaic_0001>
module attributes {stable_mosaic.version = 11 : i64} {
  func.func @_encode_fps_kernel(%arg0: i32, %arg1: memref<1x128x3xf32, #tpu.memory_space<vmem>>, %arg2: memref<1x3x2x64xf32, #tpu.memory_space<vmem>>, %arg3: memref<3x64xf32, #tpu.memory_space<vmem>>, %arg4: memref<1x64xf32, #tpu.memory_space<vmem>>, %arg5: memref<1x64xf32, #tpu.memory_space<vmem>>, %arg6: memref<1x64xf32, #tpu.memory_space<vmem>>, %arg7: memref<64x128xf32, #tpu.memory_space<vmem>>, %arg8: memref<1x128xf32, #tpu.memory_space<vmem>>, %arg9: memref<1x128xf32, #tpu.memory_space<vmem>>, %arg10: memref<1x128xf32, #tpu.memory_space<vmem>>, %arg11: memref<128x64xf32, #tpu.memory_space<vmem>>, %arg12: memref<1x64xf32, #tpu.memory_space<vmem>>, %arg13: memref<1x64xf32, #tpu.memory_space<vmem>>, %arg14: memref<1x64xf32, #tpu.memory_space<vmem>>, %arg15: memref<64x128xf32, #tpu.memory_space<vmem>>, %arg16: memref<1x128xf32, #tpu.memory_space<vmem>>, %arg17: memref<128x24xf32, #tpu.memory_space<vmem>>, %arg18: memref<1x24xf32, #tpu.memory_space<vmem>>, %arg19: memref<1x3x2x8xf32, #tpu.memory_space<vmem>>) attributes {dimension_semantics = [#tpu.dimension_semantics<parallel>], iteration_bounds = array<i64: 2>, scalar_prefetch = 0 : i64, scratch_operands = 0 : i64, tpu.core_type = #tpu.core_type<tc>, window_params = [{transform_indices = @transform_0, window_bounds = array<i64: 1, 128, 3>}, {transform_indices = @transform_1, window_bounds = array<i64: 1, 3, 2, 64>}, {pipeline_mode = #tpu.pipeline_mode<synchronous>, transform_indices = @transform_2, window_bounds = array<i64: 3, 64>}, {pipeline_mode = #tpu.pipeline_mode<synchronous>, transform_indices = @transform_3, window_bounds = array<i64: 1, 64>}, {pipeline_mode = #tpu.pipeline_mode<synchronous>, transform_indices = @transform_4, window_bounds = array<i64: 1, 64>}, {pipeline_mode = #tpu.pipeline_mode<synchronous>, transform_indices = @transform_5, window_bounds = array<i64: 1, 64>}, {pipeline_mode = #tpu.pipeline_mode<synchronous>, transform_indices = @transform_6, window_bounds = array<i64: 64, 128>}, {pipeline_mode = #tpu.pipeline_mode<synchronous>, transform_indices = @transform_7, window_bounds = array<i64: 1, 128>}, {pipeline_mode = #tpu.pipeline_mode<synchronous>, transform_indices = @transform_8, window_bounds = array<i64: 1, 128>}, {pipeline_mode = #tpu.pipeline_mode<synchronous>, transform_indices = @transform_9, window_bounds = array<i64: 1, 128>}, {pipeline_mode = #tpu.pipeline_mode<synchronous>, transform_indices = @transform_10, window_bounds = array<i64: 128, 64>}, {pipeline_mode = #tpu.pipeline_mode<synchronous>, transform_indices = @transform_11, window_bounds = array<i64: 1, 64>}, {pipeline_mode = #tpu.pipeline_mode<synchronous>, transform_indices = @transform_12, window_bounds = array<i64: 1, 64>}, {pipeline_mode = #tpu.pipeline_mode<synchronous>, transform_indices = @transform_13, window_bounds = array<i64: 1, 64>}, {pipeline_mode = #tpu.pipeline_mode<synchronous>, transform_indices = @transform_14, window_bounds = array<i64: 64, 128>}, {pipeline_mode = #tpu.pipeline_mode<synchronous>, transform_indices = @transform_15, window_bounds = array<i64: 1, 128>}, {pipeline_mode = #tpu.pipeline_mode<synchronous>, transform_indices = @transform_16, window_bounds = array<i64: 128, 24>}, {pipeline_mode = #tpu.pipeline_mode<synchronous>, transform_indices = @transform_17, window_bounds = array<i64: 1, 24>}, {transform_indices = @transform_18, window_bounds = array<i64: 1, 3, 2, 8>}]} {
    %c0 = arith.constant 0 : index
    %c0_0 = arith.constant 0 : index
    %c0_1 = arith.constant 0 : index
    %0 = vector.load %arg1[%c0, %c0_0, %c0_1] : memref<1x128x3xf32, #tpu.memory_space<vmem>>, vector<1x128x3xf32>
    %1 = vector.shape_cast %0 : vector<1x128x3xf32> to vector<128x3xf32>
    %c0_2 = arith.constant 0 : index
    %c0_3 = arith.constant 0 : index
    %2 = vector.load %arg3[%c0_2, %c0_3] : memref<3x64xf32, #tpu.memory_space<vmem>>, vector<3x64xf32>
    %cst = arith.constant dense<0.000000e+00> : vector<128x64xf32>
    %3 = tpu.matmul %1, %2, %cst {dimension_numbers = #tpu.dot_dimension_numbers<[1], [0], [0], [1], [0, 0, 1, 1], [], []>} : vector<128x3xf32>, vector<3x64xf32>, vector<128x64xf32> -> vector<128x64xf32>
    %c0_4 = arith.constant 0 : index
    %c0_5 = arith.constant 0 : index
    %4 = vector.load %arg4[%c0_4, %c0_5] : memref<1x64xf32, #tpu.memory_space<vmem>>, vector<1x64xf32>
    %5 = vector.broadcast %4 : vector<1x64xf32> to vector<128x64xf32>
    %6 = arith.addf %3, %5 : vector<128x64xf32>
    %cst_6 = arith.constant dense<0.000000e+00> : vector<64xf32>
    %7 = vector.multi_reduction <add>, %6, %cst_6 [0] : vector<128x64xf32> to vector<64xf32>
    %8 = vector.shape_cast %7 : vector<64xf32> to vector<1x64xf32>
    %cst_7 = arith.constant 1.280000e+02 : f32
    %9 = vector.broadcast %cst_7 : f32 to vector<1x64xf32>
    %10 = arith.divf %8, %9 : vector<1x64xf32>
    %11 = arith.mulf %6, %6 : vector<128x64xf32>
    %cst_8 = arith.constant dense<0.000000e+00> : vector<64xf32>
    %12 = vector.multi_reduction <add>, %11, %cst_8 [0] : vector<128x64xf32> to vector<64xf32>
    %13 = vector.shape_cast %12 : vector<64xf32> to vector<1x64xf32>
    %cst_9 = arith.constant 1.280000e+02 : f32
    %14 = vector.broadcast %cst_9 : f32 to vector<1x64xf32>
    %15 = arith.divf %13, %14 : vector<1x64xf32>
    %16 = arith.mulf %10, %10 : vector<1x64xf32>
    %17 = arith.subf %15, %16 : vector<1x64xf32>
    %cst_10 = arith.constant 0.000000e+00 : f32
    %18 = vector.broadcast %cst_10 : f32 to vector<1x64xf32>
    %19 = arith.maximumf %17, %18 : vector<1x64xf32>
    %20 = vector.broadcast %10 : vector<1x64xf32> to vector<128x64xf32>
    %21 = arith.subf %6, %20 : vector<128x64xf32>
    %cst_11 = arith.constant 9.99999974E-6 : f32
    %22 = vector.broadcast %cst_11 : f32 to vector<1x64xf32>
    %23 = arith.addf %19, %22 : vector<1x64xf32>
    %24 = math.rsqrt %23 : vector<1x64xf32>
    %25 = vector.broadcast %24 : vector<1x64xf32> to vector<128x64xf32>
    %26 = arith.mulf %21, %25 : vector<128x64xf32>
    %c0_12 = arith.constant 0 : index
    %c0_13 = arith.constant 0 : index
    %27 = vector.load %arg5[%c0_12, %c0_13] : memref<1x64xf32, #tpu.memory_space<vmem>>, vector<1x64xf32>
    %28 = vector.broadcast %27 : vector<1x64xf32> to vector<128x64xf32>
    %29 = arith.mulf %26, %28 : vector<128x64xf32>
    %c0_14 = arith.constant 0 : index
    %c0_15 = arith.constant 0 : index
    %30 = vector.load %arg6[%c0_14, %c0_15] : memref<1x64xf32, #tpu.memory_space<vmem>>, vector<1x64xf32>
    %31 = vector.broadcast %30 : vector<1x64xf32> to vector<128x64xf32>
    %32 = arith.addf %29, %31 : vector<128x64xf32>
    %cst_16 = arith.constant 0.000000e+00 : f32
    %33 = vector.broadcast %cst_16 : f32 to vector<128x64xf32>
    %34 = arith.maximumf %32, %33 : vector<128x64xf32>
    %c0_17 = arith.constant 0 : index
    %c0_18 = arith.constant 0 : index
    %35 = vector.load %arg7[%c0_17, %c0_18] : memref<64x128xf32, #tpu.memory_space<vmem>>, vector<64x128xf32>
    %cst_19 = arith.constant dense<0.000000e+00> : vector<128x128xf32>
    %36 = tpu.matmul %34, %35, %cst_19 {dimension_numbers = #tpu.dot_dimension_numbers<[1], [0], [0], [1], [0, 0, 1, 1], [], []>} : vector<128x64xf32>, vector<64x128xf32>, vector<128x128xf32> -> vector<128x128xf32>
    %c0_20 = arith.constant 0 : index
    %c0_21 = arith.constant 0 : index
    %37 = vector.load %arg8[%c0_20, %c0_21] : memref<1x128xf32, #tpu.memory_space<vmem>>, vector<1x128xf32>
    %38 = vector.broadcast %37 : vector<1x128xf32> to vector<128x128xf32>
    %39 = arith.addf %36, %38 : vector<128x128xf32>
    %cst_22 = arith.constant dense<0.000000e+00> : vector<128xf32>
    %40 = vector.multi_reduction <add>, %39, %cst_22 [0] : vector<128x128xf32> to vector<128xf32>
    %41 = vector.shape_cast %40 : vector<128xf32> to vector<1x128xf32>
    %cst_23 = arith.constant 1.280000e+02 : f32
    %42 = vector.broadcast %cst_23 : f32 to vector<1x128xf32>
    %43 = arith.divf %41, %42 : vector<1x128xf32>
    %44 = arith.mulf %39, %39 : vector<128x128xf32>
    %cst_24 = arith.constant dense<0.000000e+00> : vector<128xf32>
    %45 = vector.multi_reduction <add>, %44, %cst_24 [0] : vector<128x128xf32> to vector<128xf32>
    %46 = vector.shape_cast %45 : vector<128xf32> to vector<1x128xf32>
    %cst_25 = arith.constant 1.280000e+02 : f32
    %47 = vector.broadcast %cst_25 : f32 to vector<1x128xf32>
    %48 = arith.divf %46, %47 : vector<1x128xf32>
    %49 = arith.mulf %43, %43 : vector<1x128xf32>
    %50 = arith.subf %48, %49 : vector<1x128xf32>
    %cst_26 = arith.constant 0.000000e+00 : f32
    %51 = vector.broadcast %cst_26 : f32 to vector<1x128xf32>
    %52 = arith.maximumf %50, %51 : vector<1x128xf32>
    %53 = vector.broadcast %43 : vector<1x128xf32> to vector<128x128xf32>
    %54 = arith.subf %39, %53 : vector<128x128xf32>
    %cst_27 = arith.constant 9.99999974E-6 : f32
    %55 = vector.broadcast %cst_27 : f32 to vector<1x128xf32>
    %56 = arith.addf %52, %55 : vector<1x128xf32>
    %57 = math.rsqrt %56 : vector<1x128xf32>
    %58 = vector.broadcast %57 : vector<1x128xf32> to vector<128x128xf32>
    %59 = arith.mulf %54, %58 : vector<128x128xf32>
    %c0_28 = arith.constant 0 : index
    %c0_29 = arith.constant 0 : index
    %60 = vector.load %arg9[%c0_28, %c0_29] : memref<1x128xf32, #tpu.memory_space<vmem>>, vector<1x128xf32>
    %61 = vector.broadcast %60 : vector<1x128xf32> to vector<128x128xf32>
    %62 = arith.mulf %59, %61 : vector<128x128xf32>
    %c0_30 = arith.constant 0 : index
    %c0_31 = arith.constant 0 : index
    %63 = vector.load %arg10[%c0_30, %c0_31] : memref<1x128xf32, #tpu.memory_space<vmem>>, vector<1x128xf32>
    %64 = vector.broadcast %63 : vector<1x128xf32> to vector<128x128xf32>
    %65 = arith.addf %62, %64 : vector<128x128xf32>
    %cst_32 = arith.constant 0.000000e+00 : f32
    %66 = vector.broadcast %cst_32 : f32 to vector<128x128xf32>
    %67 = arith.maximumf %65, %66 : vector<128x128xf32>
    %c0_33 = arith.constant 0 : index
    %c0_34 = arith.constant 0 : index
    %68 = vector.load %arg11[%c0_33, %c0_34] : memref<128x64xf32, #tpu.memory_space<vmem>>, vector<128x64xf32>
    %cst_35 = arith.constant dense<0.000000e+00> : vector<128x64xf32>
    %69 = tpu.matmul %67, %68, %cst_35 {dimension_numbers = #tpu.dot_dimension_numbers<[1], [0], [0], [1], [0, 0, 1, 1], [], []>} : vector<128x128xf32>, vector<128x64xf32>, vector<128x64xf32> -> vector<128x64xf32>
    %c0_36 = arith.constant 0 : index
    %c0_37 = arith.constant 0 : index
    %70 = vector.load %arg12[%c0_36, %c0_37] : memref<1x64xf32, #tpu.memory_space<vmem>>, vector<1x64xf32>
    %71 = vector.broadcast %70 : vector<1x64xf32> to vector<128x64xf32>
    %72 = arith.addf %69, %71 : vector<128x64xf32>
    %cst_38 = arith.constant dense<0.000000e+00> : vector<64xf32>
    %73 = vector.multi_reduction <add>, %72, %cst_38 [0] : vector<128x64xf32> to vector<64xf32>
    %74 = vector.shape_cast %73 : vector<64xf32> to vector<1x64xf32>
    %cst_39 = arith.constant 1.280000e+02 : f32
    %75 = vector.broadcast %cst_39 : f32 to vector<1x64xf32>
    %76 = arith.divf %74, %75 : vector<1x64xf32>
    %77 = arith.mulf %72, %72 : vector<128x64xf32>
    %cst_40 = arith.constant dense<0.000000e+00> : vector<64xf32>
    %78 = vector.multi_reduction <add>, %77, %cst_40 [0] : vector<128x64xf32> to vector<64xf32>
    %79 = vector.shape_cast %78 : vector<64xf32> to vector<1x64xf32>
    %cst_41 = arith.constant 1.280000e+02 : f32
    %80 = vector.broadcast %cst_41 : f32 to vector<1x64xf32>
    %81 = arith.divf %79, %80 : vector<1x64xf32>
    %82 = arith.mulf %76, %76 : vector<1x64xf32>
    %83 = arith.subf %81, %82 : vector<1x64xf32>
    %cst_42 = arith.constant 0.000000e+00 : f32
    %84 = vector.broadcast %cst_42 : f32 to vector<1x64xf32>
    %85 = arith.maximumf %83, %84 : vector<1x64xf32>
    %86 = vector.broadcast %76 : vector<1x64xf32> to vector<128x64xf32>
    %87 = arith.subf %72, %86 : vector<128x64xf32>
    %cst_43 = arith.constant 9.99999974E-6 : f32
    %88 = vector.broadcast %cst_43 : f32 to vector<1x64xf32>
    %89 = arith.addf %85, %88 : vector<1x64xf32>
    %90 = math.rsqrt %89 : vector<1x64xf32>
    %91 = vector.broadcast %90 : vector<1x64xf32> to vector<128x64xf32>
    %92 = arith.mulf %87, %91 : vector<128x64xf32>
    %c0_44 = arith.constant 0 : index
    %c0_45 = arith.constant 0 : index
    %93 = vector.load %arg13[%c0_44, %c0_45] : memref<1x64xf32, #tpu.memory_space<vmem>>, vector<1x64xf32>
    %94 = vector.broadcast %93 : vector<1x64xf32> to vector<128x64xf32>
    %95 = arith.mulf %92, %94 : vector<128x64xf32>
    %c0_46 = arith.constant 0 : index
    %c0_47 = arith.constant 0 : index
    %96 = vector.load %arg14[%c0_46, %c0_47] : memref<1x64xf32, #tpu.memory_space<vmem>>, vector<1x64xf32>
    %97 = vector.broadcast %96 : vector<1x64xf32> to vector<128x64xf32>
    %98 = arith.addf %95, %97 : vector<128x64xf32>
    %cst_48 = arith.constant 0.000000e+00 : f32
    %99 = vector.broadcast %cst_48 : f32 to vector<128x64xf32>
    %100 = arith.maximumf %98, %99 : vector<128x64xf32>
    %101 = vector.extract_strided_slice %100 {offsets = [0, 0], sizes = [64, 64], strides = [1, 1]} : vector<128x64xf32> to vector<64x64xf32>
    %cst_49 = arith.constant dense<0xFF800000> : vector<64xf32>
    %102 = vector.multi_reduction <maximumf>, %101, %cst_49 [0] : vector<64x64xf32> to vector<64xf32>
    %103 = vector.shape_cast %102 : vector<64xf32> to vector<1x64xf32>
    %104 = vector.extract_strided_slice %100 {offsets = [64, 0], sizes = [64, 64], strides = [1, 1]} : vector<128x64xf32> to vector<64x64xf32>
    %cst_50 = arith.constant dense<0xFF800000> : vector<64xf32>
    %105 = vector.multi_reduction <maximumf>, %104, %cst_50 [0] : vector<64x64xf32> to vector<64xf32>
    %106 = vector.shape_cast %105 : vector<64xf32> to vector<1x64xf32>
    %107 = tpu.concatenate %103, %106 in 0 : vector<1x64xf32>, vector<1x64xf32> -> vector<2x64xf32>
    %c0_51 = arith.constant 0 : index
    %c0_52 = arith.constant 0 : index
    %108 = vector.load %arg15[%c0_51, %c0_52] : memref<64x128xf32, #tpu.memory_space<vmem>>, vector<64x128xf32>
    %cst_53 = arith.constant dense<0.000000e+00> : vector<2x128xf32>
    %109 = tpu.matmul %107, %108, %cst_53 {dimension_numbers = #tpu.dot_dimension_numbers<[1], [0], [0], [1], [0, 0, 1, 1], [], []>} : vector<2x64xf32>, vector<64x128xf32>, vector<2x128xf32> -> vector<2x128xf32>
    %c0_54 = arith.constant 0 : index
    %c0_55 = arith.constant 0 : index
    %110 = vector.load %arg16[%c0_54, %c0_55] : memref<1x128xf32, #tpu.memory_space<vmem>>, vector<1x128xf32>
    %111 = vector.broadcast %110 : vector<1x128xf32> to vector<2x128xf32>
    %112 = arith.addf %109, %111 : vector<2x128xf32>
    %cst_56 = arith.constant 0.000000e+00 : f32
    %113 = vector.broadcast %cst_56 : f32 to vector<2x128xf32>
    %114 = arith.maximumf %112, %113 : vector<2x128xf32>
    %c0_57 = arith.constant 0 : index
    %c0_58 = arith.constant 0 : index
    %115 = vector.load %arg17[%c0_57, %c0_58] : memref<128x24xf32, #tpu.memory_space<vmem>>, vector<128x24xf32>
    %cst_59 = arith.constant dense<0.000000e+00> : vector<2x24xf32>
    %116 = tpu.matmul %114, %115, %cst_59 {dimension_numbers = #tpu.dot_dimension_numbers<[1], [0], [0], [1], [0, 0, 1, 1], [], []>} : vector<2x128xf32>, vector<128x24xf32>, vector<2x24xf32> -> vector<2x24xf32>
    %c0_60 = arith.constant 0 : index
    %c0_61 = arith.constant 0 : index
    %117 = vector.load %arg18[%c0_60, %c0_61] : memref<1x24xf32, #tpu.memory_space<vmem>>, vector<1x24xf32>
    %118 = vector.broadcast %117 : vector<1x24xf32> to vector<2x24xf32>
    %119 = arith.addf %116, %118 : vector<2x24xf32>
    %c0_62 = arith.constant 0 : index
    %c0_63 = arith.constant 0 : index
    %c0_64 = arith.constant 0 : index
    %c0_65 = arith.constant 0 : index
    %120 = vector.load %arg2[%c0_62, %c0_63, %c0_64, %c0_65] : memref<1x3x2x64xf32, #tpu.memory_space<vmem>>, vector<1x3x2x64xf32>
    %121 = vector.shape_cast %120 : vector<1x3x2x64xf32> to vector<3x2x64xf32>
    %122 = vector.extract_strided_slice %121 {offsets = [0, 0, 0], sizes = [1, 2, 64], strides = [1, 1, 1]} : vector<3x2x64xf32> to vector<1x2x64xf32>
    %123 = vector.shape_cast %122 : vector<1x2x64xf32> to vector<2x64xf32>
    %124 = vector.extract_strided_slice %121 {offsets = [1, 0, 0], sizes = [1, 2, 64], strides = [1, 1, 1]} : vector<3x2x64xf32> to vector<1x2x64xf32>
    %125 = vector.shape_cast %124 : vector<1x2x64xf32> to vector<2x64xf32>
    %126 = vector.extract_strided_slice %121 {offsets = [2, 0, 0], sizes = [1, 2, 64], strides = [1, 1, 1]} : vector<3x2x64xf32> to vector<1x2x64xf32>
    %127 = vector.shape_cast %126 : vector<1x2x64xf32> to vector<2x64xf32>
    %128 = vector.extract_strided_slice %119 {offsets = [0, 0], sizes = [2, 1], strides = [1, 1]} : vector<2x24xf32> to vector<2x1xf32>
    %129 = vector.extract_strided_slice %119 {offsets = [0, 8], sizes = [2, 1], strides = [1, 1]} : vector<2x24xf32> to vector<2x1xf32>
    %130 = vector.extract_strided_slice %119 {offsets = [0, 16], sizes = [2, 1], strides = [1, 1]} : vector<2x24xf32> to vector<2x1xf32>
    %131 = vector.broadcast %128 : vector<2x1xf32> to vector<2x64xf32>
    %132 = arith.subf %123, %131 : vector<2x64xf32>
    %133 = vector.broadcast %129 : vector<2x1xf32> to vector<2x64xf32>
    %134 = arith.subf %125, %133 : vector<2x64xf32>
    %135 = vector.broadcast %130 : vector<2x1xf32> to vector<2x64xf32>
    %136 = arith.subf %127, %135 : vector<2x64xf32>
    %137 = arith.mulf %132, %132 : vector<2x64xf32>
    %138 = arith.mulf %134, %134 : vector<2x64xf32>
    %139 = arith.addf %137, %138 : vector<2x64xf32>
    %140 = arith.mulf %136, %136 : vector<2x64xf32>
    %141 = arith.addf %139, %140 : vector<2x64xf32>
    %142 = vector.extract_strided_slice %119 {offsets = [0, 1], sizes = [2, 1], strides = [1, 1]} : vector<2x24xf32> to vector<2x1xf32>
    %143 = vector.extract_strided_slice %119 {offsets = [0, 9], sizes = [2, 1], strides = [1, 1]} : vector<2x24xf32> to vector<2x1xf32>
    %144 = vector.extract_strided_slice %119 {offsets = [0, 17], sizes = [2, 1], strides = [1, 1]} : vector<2x24xf32> to vector<2x1xf32>
    %145 = vector.broadcast %142 : vector<2x1xf32> to vector<2x64xf32>
    %146 = arith.subf %123, %145 : vector<2x64xf32>
    %147 = vector.broadcast %143 : vector<2x1xf32> to vector<2x64xf32>
    %148 = arith.subf %125, %147 : vector<2x64xf32>
    %149 = vector.broadcast %144 : vector<2x1xf32> to vector<2x64xf32>
    %150 = arith.subf %127, %149 : vector<2x64xf32>
    %151 = arith.mulf %146, %146 : vector<2x64xf32>
    %152 = arith.mulf %148, %148 : vector<2x64xf32>
    %153 = arith.addf %151, %152 : vector<2x64xf32>
    %154 = arith.mulf %150, %150 : vector<2x64xf32>
    %155 = arith.addf %153, %154 : vector<2x64xf32>
    %156 = arith.minimumf %141, %155 : vector<2x64xf32>
    %157 = vector.extract_strided_slice %119 {offsets = [0, 2], sizes = [2, 1], strides = [1, 1]} : vector<2x24xf32> to vector<2x1xf32>
    %158 = vector.extract_strided_slice %119 {offsets = [0, 10], sizes = [2, 1], strides = [1, 1]} : vector<2x24xf32> to vector<2x1xf32>
    %159 = vector.extract_strided_slice %119 {offsets = [0, 18], sizes = [2, 1], strides = [1, 1]} : vector<2x24xf32> to vector<2x1xf32>
    %160 = vector.broadcast %157 : vector<2x1xf32> to vector<2x64xf32>
    %161 = arith.subf %123, %160 : vector<2x64xf32>
    %162 = vector.broadcast %158 : vector<2x1xf32> to vector<2x64xf32>
    %163 = arith.subf %125, %162 : vector<2x64xf32>
    %164 = vector.broadcast %159 : vector<2x1xf32> to vector<2x64xf32>
    %165 = arith.subf %127, %164 : vector<2x64xf32>
    %166 = arith.mulf %161, %161 : vector<2x64xf32>
    %167 = arith.mulf %163, %163 : vector<2x64xf32>
    %168 = arith.addf %166, %167 : vector<2x64xf32>
    %169 = arith.mulf %165, %165 : vector<2x64xf32>
    %170 = arith.addf %168, %169 : vector<2x64xf32>
    %171 = arith.minimumf %156, %170 : vector<2x64xf32>
    %172 = vector.extract_strided_slice %119 {offsets = [0, 3], sizes = [2, 1], strides = [1, 1]} : vector<2x24xf32> to vector<2x1xf32>
    %173 = vector.extract_strided_slice %119 {offsets = [0, 11], sizes = [2, 1], strides = [1, 1]} : vector<2x24xf32> to vector<2x1xf32>
    %174 = vector.extract_strided_slice %119 {offsets = [0, 19], sizes = [2, 1], strides = [1, 1]} : vector<2x24xf32> to vector<2x1xf32>
    %175 = vector.broadcast %172 : vector<2x1xf32> to vector<2x64xf32>
    %176 = arith.subf %123, %175 : vector<2x64xf32>
    %177 = vector.broadcast %173 : vector<2x1xf32> to vector<2x64xf32>
    %178 = arith.subf %125, %177 : vector<2x64xf32>
    %179 = vector.broadcast %174 : vector<2x1xf32> to vector<2x64xf32>
    %180 = arith.subf %127, %179 : vector<2x64xf32>
    %181 = arith.mulf %176, %176 : vector<2x64xf32>
    %182 = arith.mulf %178, %178 : vector<2x64xf32>
    %183 = arith.addf %181, %182 : vector<2x64xf32>
    %184 = arith.mulf %180, %180 : vector<2x64xf32>
    %185 = arith.addf %183, %184 : vector<2x64xf32>
    %186 = arith.minimumf %171, %185 : vector<2x64xf32>
    %187 = vector.extract_strided_slice %119 {offsets = [0, 4], sizes = [2, 1], strides = [1, 1]} : vector<2x24xf32> to vector<2x1xf32>
    %188 = vector.extract_strided_slice %119 {offsets = [0, 12], sizes = [2, 1], strides = [1, 1]} : vector<2x24xf32> to vector<2x1xf32>
    %189 = vector.extract_strided_slice %119 {offsets = [0, 20], sizes = [2, 1], strides = [1, 1]} : vector<2x24xf32> to vector<2x1xf32>
    %190 = vector.broadcast %187 : vector<2x1xf32> to vector<2x64xf32>
    %191 = arith.subf %123, %190 : vector<2x64xf32>
    %192 = vector.broadcast %188 : vector<2x1xf32> to vector<2x64xf32>
    %193 = arith.subf %125, %192 : vector<2x64xf32>
    %194 = vector.broadcast %189 : vector<2x1xf32> to vector<2x64xf32>
    %195 = arith.subf %127, %194 : vector<2x64xf32>
    %196 = arith.mulf %191, %191 : vector<2x64xf32>
    %197 = arith.mulf %193, %193 : vector<2x64xf32>
    %198 = arith.addf %196, %197 : vector<2x64xf32>
    %199 = arith.mulf %195, %195 : vector<2x64xf32>
    %200 = arith.addf %198, %199 : vector<2x64xf32>
    %201 = arith.minimumf %186, %200 : vector<2x64xf32>
    %202 = vector.extract_strided_slice %119 {offsets = [0, 5], sizes = [2, 1], strides = [1, 1]} : vector<2x24xf32> to vector<2x1xf32>
    %203 = vector.extract_strided_slice %119 {offsets = [0, 13], sizes = [2, 1], strides = [1, 1]} : vector<2x24xf32> to vector<2x1xf32>
    %204 = vector.extract_strided_slice %119 {offsets = [0, 21], sizes = [2, 1], strides = [1, 1]} : vector<2x24xf32> to vector<2x1xf32>
    %205 = vector.broadcast %202 : vector<2x1xf32> to vector<2x64xf32>
    %206 = arith.subf %123, %205 : vector<2x64xf32>
    %207 = vector.broadcast %203 : vector<2x1xf32> to vector<2x64xf32>
    %208 = arith.subf %125, %207 : vector<2x64xf32>
    %209 = vector.broadcast %204 : vector<2x1xf32> to vector<2x64xf32>
    %210 = arith.subf %127, %209 : vector<2x64xf32>
    %211 = arith.mulf %206, %206 : vector<2x64xf32>
    %212 = arith.mulf %208, %208 : vector<2x64xf32>
    %213 = arith.addf %211, %212 : vector<2x64xf32>
    %214 = arith.mulf %210, %210 : vector<2x64xf32>
    %215 = arith.addf %213, %214 : vector<2x64xf32>
    %216 = arith.minimumf %201, %215 : vector<2x64xf32>
    %217 = vector.extract_strided_slice %119 {offsets = [0, 6], sizes = [2, 1], strides = [1, 1]} : vector<2x24xf32> to vector<2x1xf32>
    %218 = vector.extract_strided_slice %119 {offsets = [0, 14], sizes = [2, 1], strides = [1, 1]} : vector<2x24xf32> to vector<2x1xf32>
    %219 = vector.extract_strided_slice %119 {offsets = [0, 22], sizes = [2, 1], strides = [1, 1]} : vector<2x24xf32> to vector<2x1xf32>
    %220 = vector.broadcast %217 : vector<2x1xf32> to vector<2x64xf32>
    %221 = arith.subf %123, %220 : vector<2x64xf32>
    %222 = vector.broadcast %218 : vector<2x1xf32> to vector<2x64xf32>
    %223 = arith.subf %125, %222 : vector<2x64xf32>
    %224 = vector.broadcast %219 : vector<2x1xf32> to vector<2x64xf32>
    %225 = arith.subf %127, %224 : vector<2x64xf32>
    %226 = arith.mulf %221, %221 : vector<2x64xf32>
    %227 = arith.mulf %223, %223 : vector<2x64xf32>
    %228 = arith.addf %226, %227 : vector<2x64xf32>
    %229 = arith.mulf %225, %225 : vector<2x64xf32>
    %230 = arith.addf %228, %229 : vector<2x64xf32>
    %231 = arith.minimumf %216, %230 : vector<2x64xf32>
    %232 = vector.extract_strided_slice %119 {offsets = [0, 7], sizes = [2, 1], strides = [1, 1]} : vector<2x24xf32> to vector<2x1xf32>
    %233 = vector.extract_strided_slice %119 {offsets = [0, 15], sizes = [2, 1], strides = [1, 1]} : vector<2x24xf32> to vector<2x1xf32>
    %234 = vector.extract_strided_slice %119 {offsets = [0, 23], sizes = [2, 1], strides = [1, 1]} : vector<2x24xf32> to vector<2x1xf32>
    %235 = vector.broadcast %232 : vector<2x1xf32> to vector<2x64xf32>
    %236 = arith.subf %123, %235 : vector<2x64xf32>
    %237 = vector.broadcast %233 : vector<2x1xf32> to vector<2x64xf32>
    %238 = arith.subf %125, %237 : vector<2x64xf32>
    %239 = vector.broadcast %234 : vector<2x1xf32> to vector<2x64xf32>
    %240 = arith.subf %127, %239 : vector<2x64xf32>
    %241 = arith.mulf %236, %236 : vector<2x64xf32>
    %242 = arith.mulf %238, %238 : vector<2x64xf32>
    %243 = arith.addf %241, %242 : vector<2x64xf32>
    %244 = arith.mulf %240, %240 : vector<2x64xf32>
    %245 = arith.addf %243, %244 : vector<2x64xf32>
    %246 = arith.minimumf %231, %245 : vector<2x64xf32>
    %247 = tpu.iota {dimensions = array<i32: 1>} : vector<2x64xi32>
    %248 = tpu.iota {dimensions = array<i32: 1>} : vector<2x8xi32>
    %cst_66 = arith.constant 0.000000e+00 : f32
    %249 = vector.broadcast %cst_66 : f32 to vector<2x8xf32>
    %cst_67 = arith.constant 0.000000e+00 : f32
    %250 = vector.broadcast %cst_67 : f32 to vector<2x8xf32>
    %cst_68 = arith.constant 0.000000e+00 : f32
    %251 = vector.broadcast %cst_68 : f32 to vector<2x8xf32>
    %cst_69 = arith.constant dense<0xFF800000> : vector<2xf32>
    %252 = vector.multi_reduction <maximumf>, %246, %cst_69 [1] : vector<2x64xf32> to vector<2xf32>
    %253 = vector.shape_cast %252 : vector<2xf32> to vector<2x1xf32>
    %254 = vector.broadcast %253 : vector<2x1xf32> to vector<2x64xf32>
    %255 = arith.cmpf oeq, %246, %254 : vector<2x64xf32>
    %c64_i32 = arith.constant 64 : i32
    %256 = vector.broadcast %c64_i32 : i32 to vector<2x64xi32>
    %257 = arith.select %255, %247, %256 : vector<2x64xi1>, vector<2x64xi32>
    %cst_70 = arith.constant dense<2147483647> : vector<2xi32>
    %258 = vector.multi_reduction <minsi>, %257, %cst_70 [1] : vector<2x64xi32> to vector<2xi32>
    %259 = vector.shape_cast %258 : vector<2xi32> to vector<2x1xi32>
    %260 = vector.broadcast %259 : vector<2x1xi32> to vector<2x64xi32>
    %261 = arith.cmpi eq, %247, %260 : vector<2x64xi32>
    %262 = arith.extui %261 : vector<2x64xi1> to vector<2x64xi32>
    %263 = arith.sitofp %262 : vector<2x64xi32> to vector<2x64xf32>
    %264 = arith.mulf %123, %263 : vector<2x64xf32>
    %cst_71 = arith.constant dense<0.000000e+00> : vector<2xf32>
    %265 = vector.multi_reduction <add>, %264, %cst_71 [1] : vector<2x64xf32> to vector<2xf32>
    %266 = vector.shape_cast %265 : vector<2xf32> to vector<2x1xf32>
    %267 = arith.mulf %125, %263 : vector<2x64xf32>
    %cst_72 = arith.constant dense<0.000000e+00> : vector<2xf32>
    %268 = vector.multi_reduction <add>, %267, %cst_72 [1] : vector<2x64xf32> to vector<2xf32>
    %269 = vector.shape_cast %268 : vector<2xf32> to vector<2x1xf32>
    %270 = arith.mulf %127, %263 : vector<2x64xf32>
    %cst_73 = arith.constant dense<0.000000e+00> : vector<2xf32>
    %271 = vector.multi_reduction <add>, %270, %cst_73 [1] : vector<2x64xf32> to vector<2xf32>
    %272 = vector.shape_cast %271 : vector<2xf32> to vector<2x1xf32>
    %c0_i32 = arith.constant 0 : i32
    %273 = vector.broadcast %c0_i32 : i32 to vector<2x8xi32>
    %274 = arith.cmpi eq, %248, %273 : vector<2x8xi32>
    %275 = vector.shape_cast %266 : vector<2x1xf32> to vector<2x1xf32>
    %276 = vector.broadcast %275 : vector<2x1xf32> to vector<2x8xf32>
    %277 = arith.select %274, %276, %249 : vector<2x8xi1>, vector<2x8xf32>
    %c0_i32_74 = arith.constant 0 : i32
    %278 = vector.broadcast %c0_i32_74 : i32 to vector<2x8xi32>
    %279 = arith.cmpi eq, %248, %278 : vector<2x8xi32>
    %280 = vector.shape_cast %269 : vector<2x1xf32> to vector<2x1xf32>
    %281 = vector.broadcast %280 : vector<2x1xf32> to vector<2x8xf32>
    %282 = arith.select %279, %281, %250 : vector<2x8xi1>, vector<2x8xf32>
    %c0_i32_75 = arith.constant 0 : i32
    %283 = vector.broadcast %c0_i32_75 : i32 to vector<2x8xi32>
    %284 = arith.cmpi eq, %248, %283 : vector<2x8xi32>
    %285 = vector.shape_cast %272 : vector<2x1xf32> to vector<2x1xf32>
    %286 = vector.broadcast %285 : vector<2x1xf32> to vector<2x8xf32>
    %287 = arith.select %284, %286, %251 : vector<2x8xi1>, vector<2x8xf32>
    %288 = vector.broadcast %266 : vector<2x1xf32> to vector<2x64xf32>
    %289 = arith.subf %123, %288 : vector<2x64xf32>
    %290 = vector.broadcast %269 : vector<2x1xf32> to vector<2x64xf32>
    %291 = arith.subf %125, %290 : vector<2x64xf32>
    %292 = vector.broadcast %272 : vector<2x1xf32> to vector<2x64xf32>
    %293 = arith.subf %127, %292 : vector<2x64xf32>
    %294 = arith.mulf %289, %289 : vector<2x64xf32>
    %295 = arith.mulf %291, %291 : vector<2x64xf32>
    %296 = arith.addf %294, %295 : vector<2x64xf32>
    %297 = arith.mulf %293, %293 : vector<2x64xf32>
    %298 = arith.addf %296, %297 : vector<2x64xf32>
    %cst_76 = arith.constant dense<0xFF800000> : vector<2xf32>
    %299 = vector.multi_reduction <maximumf>, %298, %cst_76 [1] : vector<2x64xf32> to vector<2xf32>
    %300 = vector.shape_cast %299 : vector<2xf32> to vector<2x1xf32>
    %301 = vector.broadcast %300 : vector<2x1xf32> to vector<2x64xf32>
    %302 = arith.cmpf oeq, %298, %301 : vector<2x64xf32>
    %c64_i32_77 = arith.constant 64 : i32
    %303 = vector.broadcast %c64_i32_77 : i32 to vector<2x64xi32>
    %304 = arith.select %302, %247, %303 : vector<2x64xi1>, vector<2x64xi32>
    %cst_78 = arith.constant dense<2147483647> : vector<2xi32>
    %305 = vector.multi_reduction <minsi>, %304, %cst_78 [1] : vector<2x64xi32> to vector<2xi32>
    %306 = vector.shape_cast %305 : vector<2xi32> to vector<2x1xi32>
    %307 = vector.broadcast %306 : vector<2x1xi32> to vector<2x64xi32>
    %308 = arith.cmpi eq, %247, %307 : vector<2x64xi32>
    %309 = arith.extui %308 : vector<2x64xi1> to vector<2x64xi32>
    %310 = arith.sitofp %309 : vector<2x64xi32> to vector<2x64xf32>
    %311 = arith.mulf %123, %310 : vector<2x64xf32>
    %cst_79 = arith.constant dense<0.000000e+00> : vector<2xf32>
    %312 = vector.multi_reduction <add>, %311, %cst_79 [1] : vector<2x64xf32> to vector<2xf32>
    %313 = vector.shape_cast %312 : vector<2xf32> to vector<2x1xf32>
    %314 = arith.mulf %125, %310 : vector<2x64xf32>
    %cst_80 = arith.constant dense<0.000000e+00> : vector<2xf32>
    %315 = vector.multi_reduction <add>, %314, %cst_80 [1] : vector<2x64xf32> to vector<2xf32>
    %316 = vector.shape_cast %315 : vector<2xf32> to vector<2x1xf32>
    %317 = arith.mulf %127, %310 : vector<2x64xf32>
    %cst_81 = arith.constant dense<0.000000e+00> : vector<2xf32>
    %318 = vector.multi_reduction <add>, %317, %cst_81 [1] : vector<2x64xf32> to vector<2xf32>
    %319 = vector.shape_cast %318 : vector<2xf32> to vector<2x1xf32>
    %c1_i32 = arith.constant 1 : i32
    %320 = vector.broadcast %c1_i32 : i32 to vector<2x8xi32>
    %321 = arith.cmpi eq, %248, %320 : vector<2x8xi32>
    %322 = vector.shape_cast %313 : vector<2x1xf32> to vector<2x1xf32>
    %323 = vector.broadcast %322 : vector<2x1xf32> to vector<2x8xf32>
    %324 = arith.select %321, %323, %277 : vector<2x8xi1>, vector<2x8xf32>
    %c1_i32_82 = arith.constant 1 : i32
    %325 = vector.broadcast %c1_i32_82 : i32 to vector<2x8xi32>
    %326 = arith.cmpi eq, %248, %325 : vector<2x8xi32>
    %327 = vector.shape_cast %316 : vector<2x1xf32> to vector<2x1xf32>
    %328 = vector.broadcast %327 : vector<2x1xf32> to vector<2x8xf32>
    %329 = arith.select %326, %328, %282 : vector<2x8xi1>, vector<2x8xf32>
    %c1_i32_83 = arith.constant 1 : i32
    %330 = vector.broadcast %c1_i32_83 : i32 to vector<2x8xi32>
    %331 = arith.cmpi eq, %248, %330 : vector<2x8xi32>
    %332 = vector.shape_cast %319 : vector<2x1xf32> to vector<2x1xf32>
    %333 = vector.broadcast %332 : vector<2x1xf32> to vector<2x8xf32>
    %334 = arith.select %331, %333, %287 : vector<2x8xi1>, vector<2x8xf32>
    %335 = vector.broadcast %313 : vector<2x1xf32> to vector<2x64xf32>
    %336 = arith.subf %123, %335 : vector<2x64xf32>
    %337 = vector.broadcast %316 : vector<2x1xf32> to vector<2x64xf32>
    %338 = arith.subf %125, %337 : vector<2x64xf32>
    %339 = vector.broadcast %319 : vector<2x1xf32> to vector<2x64xf32>
    %340 = arith.subf %127, %339 : vector<2x64xf32>
    %341 = arith.mulf %336, %336 : vector<2x64xf32>
    %342 = arith.mulf %338, %338 : vector<2x64xf32>
    %343 = arith.addf %341, %342 : vector<2x64xf32>
    %344 = arith.mulf %340, %340 : vector<2x64xf32>
    %345 = arith.addf %343, %344 : vector<2x64xf32>
    %346 = arith.minimumf %298, %345 : vector<2x64xf32>
    %cst_84 = arith.constant dense<0xFF800000> : vector<2xf32>
    %347 = vector.multi_reduction <maximumf>, %346, %cst_84 [1] : vector<2x64xf32> to vector<2xf32>
    %348 = vector.shape_cast %347 : vector<2xf32> to vector<2x1xf32>
    %349 = vector.broadcast %348 : vector<2x1xf32> to vector<2x64xf32>
    %350 = arith.cmpf oeq, %346, %349 : vector<2x64xf32>
    %c64_i32_85 = arith.constant 64 : i32
    %351 = vector.broadcast %c64_i32_85 : i32 to vector<2x64xi32>
    %352 = arith.select %350, %247, %351 : vector<2x64xi1>, vector<2x64xi32>
    %cst_86 = arith.constant dense<2147483647> : vector<2xi32>
    %353 = vector.multi_reduction <minsi>, %352, %cst_86 [1] : vector<2x64xi32> to vector<2xi32>
    %354 = vector.shape_cast %353 : vector<2xi32> to vector<2x1xi32>
    %355 = vector.broadcast %354 : vector<2x1xi32> to vector<2x64xi32>
    %356 = arith.cmpi eq, %247, %355 : vector<2x64xi32>
    %357 = arith.extui %356 : vector<2x64xi1> to vector<2x64xi32>
    %358 = arith.sitofp %357 : vector<2x64xi32> to vector<2x64xf32>
    %359 = arith.mulf %123, %358 : vector<2x64xf32>
    %cst_87 = arith.constant dense<0.000000e+00> : vector<2xf32>
    %360 = vector.multi_reduction <add>, %359, %cst_87 [1] : vector<2x64xf32> to vector<2xf32>
    %361 = vector.shape_cast %360 : vector<2xf32> to vector<2x1xf32>
    %362 = arith.mulf %125, %358 : vector<2x64xf32>
    %cst_88 = arith.constant dense<0.000000e+00> : vector<2xf32>
    %363 = vector.multi_reduction <add>, %362, %cst_88 [1] : vector<2x64xf32> to vector<2xf32>
    %364 = vector.shape_cast %363 : vector<2xf32> to vector<2x1xf32>
    %365 = arith.mulf %127, %358 : vector<2x64xf32>
    %cst_89 = arith.constant dense<0.000000e+00> : vector<2xf32>
    %366 = vector.multi_reduction <add>, %365, %cst_89 [1] : vector<2x64xf32> to vector<2xf32>
    %367 = vector.shape_cast %366 : vector<2xf32> to vector<2x1xf32>
    %c2_i32 = arith.constant 2 : i32
    %368 = vector.broadcast %c2_i32 : i32 to vector<2x8xi32>
    %369 = arith.cmpi eq, %248, %368 : vector<2x8xi32>
    %370 = vector.shape_cast %361 : vector<2x1xf32> to vector<2x1xf32>
    %371 = vector.broadcast %370 : vector<2x1xf32> to vector<2x8xf32>
    %372 = arith.select %369, %371, %324 : vector<2x8xi1>, vector<2x8xf32>
    %c2_i32_90 = arith.constant 2 : i32
    %373 = vector.broadcast %c2_i32_90 : i32 to vector<2x8xi32>
    %374 = arith.cmpi eq, %248, %373 : vector<2x8xi32>
    %375 = vector.shape_cast %364 : vector<2x1xf32> to vector<2x1xf32>
    %376 = vector.broadcast %375 : vector<2x1xf32> to vector<2x8xf32>
    %377 = arith.select %374, %376, %329 : vector<2x8xi1>, vector<2x8xf32>
    %c2_i32_91 = arith.constant 2 : i32
    %378 = vector.broadcast %c2_i32_91 : i32 to vector<2x8xi32>
    %379 = arith.cmpi eq, %248, %378 : vector<2x8xi32>
    %380 = vector.shape_cast %367 : vector<2x1xf32> to vector<2x1xf32>
    %381 = vector.broadcast %380 : vector<2x1xf32> to vector<2x8xf32>
    %382 = arith.select %379, %381, %334 : vector<2x8xi1>, vector<2x8xf32>
    %383 = vector.broadcast %361 : vector<2x1xf32> to vector<2x64xf32>
    %384 = arith.subf %123, %383 : vector<2x64xf32>
    %385 = vector.broadcast %364 : vector<2x1xf32> to vector<2x64xf32>
    %386 = arith.subf %125, %385 : vector<2x64xf32>
    %387 = vector.broadcast %367 : vector<2x1xf32> to vector<2x64xf32>
    %388 = arith.subf %127, %387 : vector<2x64xf32>
    %389 = arith.mulf %384, %384 : vector<2x64xf32>
    %390 = arith.mulf %386, %386 : vector<2x64xf32>
    %391 = arith.addf %389, %390 : vector<2x64xf32>
    %392 = arith.mulf %388, %388 : vector<2x64xf32>
    %393 = arith.addf %391, %392 : vector<2x64xf32>
    %394 = arith.minimumf %346, %393 : vector<2x64xf32>
    %cst_92 = arith.constant dense<0xFF800000> : vector<2xf32>
    %395 = vector.multi_reduction <maximumf>, %394, %cst_92 [1] : vector<2x64xf32> to vector<2xf32>
    %396 = vector.shape_cast %395 : vector<2xf32> to vector<2x1xf32>
    %397 = vector.broadcast %396 : vector<2x1xf32> to vector<2x64xf32>
    %398 = arith.cmpf oeq, %394, %397 : vector<2x64xf32>
    %c64_i32_93 = arith.constant 64 : i32
    %399 = vector.broadcast %c64_i32_93 : i32 to vector<2x64xi32>
    %400 = arith.select %398, %247, %399 : vector<2x64xi1>, vector<2x64xi32>
    %cst_94 = arith.constant dense<2147483647> : vector<2xi32>
    %401 = vector.multi_reduction <minsi>, %400, %cst_94 [1] : vector<2x64xi32> to vector<2xi32>
    %402 = vector.shape_cast %401 : vector<2xi32> to vector<2x1xi32>
    %403 = vector.broadcast %402 : vector<2x1xi32> to vector<2x64xi32>
    %404 = arith.cmpi eq, %247, %403 : vector<2x64xi32>
    %405 = arith.extui %404 : vector<2x64xi1> to vector<2x64xi32>
    %406 = arith.sitofp %405 : vector<2x64xi32> to vector<2x64xf32>
    %407 = arith.mulf %123, %406 : vector<2x64xf32>
    %cst_95 = arith.constant dense<0.000000e+00> : vector<2xf32>
    %408 = vector.multi_reduction <add>, %407, %cst_95 [1] : vector<2x64xf32> to vector<2xf32>
    %409 = vector.shape_cast %408 : vector<2xf32> to vector<2x1xf32>
    %410 = arith.mulf %125, %406 : vector<2x64xf32>
    %cst_96 = arith.constant dense<0.000000e+00> : vector<2xf32>
    %411 = vector.multi_reduction <add>, %410, %cst_96 [1] : vector<2x64xf32> to vector<2xf32>
    %412 = vector.shape_cast %411 : vector<2xf32> to vector<2x1xf32>
    %413 = arith.mulf %127, %406 : vector<2x64xf32>
    %cst_97 = arith.constant dense<0.000000e+00> : vector<2xf32>
    %414 = vector.multi_reduction <add>, %413, %cst_97 [1] : vector<2x64xf32> to vector<2xf32>
    %415 = vector.shape_cast %414 : vector<2xf32> to vector<2x1xf32>
    %c3_i32 = arith.constant 3 : i32
    %416 = vector.broadcast %c3_i32 : i32 to vector<2x8xi32>
    %417 = arith.cmpi eq, %248, %416 : vector<2x8xi32>
    %418 = vector.shape_cast %409 : vector<2x1xf32> to vector<2x1xf32>
    %419 = vector.broadcast %418 : vector<2x1xf32> to vector<2x8xf32>
    %420 = arith.select %417, %419, %372 : vector<2x8xi1>, vector<2x8xf32>
    %c3_i32_98 = arith.constant 3 : i32
    %421 = vector.broadcast %c3_i32_98 : i32 to vector<2x8xi32>
    %422 = arith.cmpi eq, %248, %421 : vector<2x8xi32>
    %423 = vector.shape_cast %412 : vector<2x1xf32> to vector<2x1xf32>
    %424 = vector.broadcast %423 : vector<2x1xf32> to vector<2x8xf32>
    %425 = arith.select %422, %424, %377 : vector<2x8xi1>, vector<2x8xf32>
    %c3_i32_99 = arith.constant 3 : i32
    %426 = vector.broadcast %c3_i32_99 : i32 to vector<2x8xi32>
    %427 = arith.cmpi eq, %248, %426 : vector<2x8xi32>
    %428 = vector.shape_cast %415 : vector<2x1xf32> to vector<2x1xf32>
    %429 = vector.broadcast %428 : vector<2x1xf32> to vector<2x8xf32>
    %430 = arith.select %427, %429, %382 : vector<2x8xi1>, vector<2x8xf32>
    %431 = vector.broadcast %409 : vector<2x1xf32> to vector<2x64xf32>
    %432 = arith.subf %123, %431 : vector<2x64xf32>
    %433 = vector.broadcast %412 : vector<2x1xf32> to vector<2x64xf32>
    %434 = arith.subf %125, %433 : vector<2x64xf32>
    %435 = vector.broadcast %415 : vector<2x1xf32> to vector<2x64xf32>
    %436 = arith.subf %127, %435 : vector<2x64xf32>
    %437 = arith.mulf %432, %432 : vector<2x64xf32>
    %438 = arith.mulf %434, %434 : vector<2x64xf32>
    %439 = arith.addf %437, %438 : vector<2x64xf32>
    %440 = arith.mulf %436, %436 : vector<2x64xf32>
    %441 = arith.addf %439, %440 : vector<2x64xf32>
    %442 = arith.minimumf %394, %441 : vector<2x64xf32>
    %cst_100 = arith.constant dense<0xFF800000> : vector<2xf32>
    %443 = vector.multi_reduction <maximumf>, %442, %cst_100 [1] : vector<2x64xf32> to vector<2xf32>
    %444 = vector.shape_cast %443 : vector<2xf32> to vector<2x1xf32>
    %445 = vector.broadcast %444 : vector<2x1xf32> to vector<2x64xf32>
    %446 = arith.cmpf oeq, %442, %445 : vector<2x64xf32>
    %c64_i32_101 = arith.constant 64 : i32
    %447 = vector.broadcast %c64_i32_101 : i32 to vector<2x64xi32>
    %448 = arith.select %446, %247, %447 : vector<2x64xi1>, vector<2x64xi32>
    %cst_102 = arith.constant dense<2147483647> : vector<2xi32>
    %449 = vector.multi_reduction <minsi>, %448, %cst_102 [1] : vector<2x64xi32> to vector<2xi32>
    %450 = vector.shape_cast %449 : vector<2xi32> to vector<2x1xi32>
    %451 = vector.broadcast %450 : vector<2x1xi32> to vector<2x64xi32>
    %452 = arith.cmpi eq, %247, %451 : vector<2x64xi32>
    %453 = arith.extui %452 : vector<2x64xi1> to vector<2x64xi32>
    %454 = arith.sitofp %453 : vector<2x64xi32> to vector<2x64xf32>
    %455 = arith.mulf %123, %454 : vector<2x64xf32>
    %cst_103 = arith.constant dense<0.000000e+00> : vector<2xf32>
    %456 = vector.multi_reduction <add>, %455, %cst_103 [1] : vector<2x64xf32> to vector<2xf32>
    %457 = vector.shape_cast %456 : vector<2xf32> to vector<2x1xf32>
    %458 = arith.mulf %125, %454 : vector<2x64xf32>
    %cst_104 = arith.constant dense<0.000000e+00> : vector<2xf32>
    %459 = vector.multi_reduction <add>, %458, %cst_104 [1] : vector<2x64xf32> to vector<2xf32>
    %460 = vector.shape_cast %459 : vector<2xf32> to vector<2x1xf32>
    %461 = arith.mulf %127, %454 : vector<2x64xf32>
    %cst_105 = arith.constant dense<0.000000e+00> : vector<2xf32>
    %462 = vector.multi_reduction <add>, %461, %cst_105 [1] : vector<2x64xf32> to vector<2xf32>
    %463 = vector.shape_cast %462 : vector<2xf32> to vector<2x1xf32>
    %c4_i32 = arith.constant 4 : i32
    %464 = vector.broadcast %c4_i32 : i32 to vector<2x8xi32>
    %465 = arith.cmpi eq, %248, %464 : vector<2x8xi32>
    %466 = vector.shape_cast %457 : vector<2x1xf32> to vector<2x1xf32>
    %467 = vector.broadcast %466 : vector<2x1xf32> to vector<2x8xf32>
    %468 = arith.select %465, %467, %420 : vector<2x8xi1>, vector<2x8xf32>
    %c4_i32_106 = arith.constant 4 : i32
    %469 = vector.broadcast %c4_i32_106 : i32 to vector<2x8xi32>
    %470 = arith.cmpi eq, %248, %469 : vector<2x8xi32>
    %471 = vector.shape_cast %460 : vector<2x1xf32> to vector<2x1xf32>
    %472 = vector.broadcast %471 : vector<2x1xf32> to vector<2x8xf32>
    %473 = arith.select %470, %472, %425 : vector<2x8xi1>, vector<2x8xf32>
    %c4_i32_107 = arith.constant 4 : i32
    %474 = vector.broadcast %c4_i32_107 : i32 to vector<2x8xi32>
    %475 = arith.cmpi eq, %248, %474 : vector<2x8xi32>
    %476 = vector.shape_cast %463 : vector<2x1xf32> to vector<2x1xf32>
    %477 = vector.broadcast %476 : vector<2x1xf32> to vector<2x8xf32>
    %478 = arith.select %475, %477, %430 : vector<2x8xi1>, vector<2x8xf32>
    %479 = vector.broadcast %457 : vector<2x1xf32> to vector<2x64xf32>
    %480 = arith.subf %123, %479 : vector<2x64xf32>
    %481 = vector.broadcast %460 : vector<2x1xf32> to vector<2x64xf32>
    %482 = arith.subf %125, %481 : vector<2x64xf32>
    %483 = vector.broadcast %463 : vector<2x1xf32> to vector<2x64xf32>
    %484 = arith.subf %127, %483 : vector<2x64xf32>
    %485 = arith.mulf %480, %480 : vector<2x64xf32>
    %486 = arith.mulf %482, %482 : vector<2x64xf32>
    %487 = arith.addf %485, %486 : vector<2x64xf32>
    %488 = arith.mulf %484, %484 : vector<2x64xf32>
    %489 = arith.addf %487, %488 : vector<2x64xf32>
    %490 = arith.minimumf %442, %489 : vector<2x64xf32>
    %cst_108 = arith.constant dense<0xFF800000> : vector<2xf32>
    %491 = vector.multi_reduction <maximumf>, %490, %cst_108 [1] : vector<2x64xf32> to vector<2xf32>
    %492 = vector.shape_cast %491 : vector<2xf32> to vector<2x1xf32>
    %493 = vector.broadcast %492 : vector<2x1xf32> to vector<2x64xf32>
    %494 = arith.cmpf oeq, %490, %493 : vector<2x64xf32>
    %c64_i32_109 = arith.constant 64 : i32
    %495 = vector.broadcast %c64_i32_109 : i32 to vector<2x64xi32>
    %496 = arith.select %494, %247, %495 : vector<2x64xi1>, vector<2x64xi32>
    %cst_110 = arith.constant dense<2147483647> : vector<2xi32>
    %497 = vector.multi_reduction <minsi>, %496, %cst_110 [1] : vector<2x64xi32> to vector<2xi32>
    %498 = vector.shape_cast %497 : vector<2xi32> to vector<2x1xi32>
    %499 = vector.broadcast %498 : vector<2x1xi32> to vector<2x64xi32>
    %500 = arith.cmpi eq, %247, %499 : vector<2x64xi32>
    %501 = arith.extui %500 : vector<2x64xi1> to vector<2x64xi32>
    %502 = arith.sitofp %501 : vector<2x64xi32> to vector<2x64xf32>
    %503 = arith.mulf %123, %502 : vector<2x64xf32>
    %cst_111 = arith.constant dense<0.000000e+00> : vector<2xf32>
    %504 = vector.multi_reduction <add>, %503, %cst_111 [1] : vector<2x64xf32> to vector<2xf32>
    %505 = vector.shape_cast %504 : vector<2xf32> to vector<2x1xf32>
    %506 = arith.mulf %125, %502 : vector<2x64xf32>
    %cst_112 = arith.constant dense<0.000000e+00> : vector<2xf32>
    %507 = vector.multi_reduction <add>, %506, %cst_112 [1] : vector<2x64xf32> to vector<2xf32>
    %508 = vector.shape_cast %507 : vector<2xf32> to vector<2x1xf32>
    %509 = arith.mulf %127, %502 : vector<2x64xf32>
    %cst_113 = arith.constant dense<0.000000e+00> : vector<2xf32>
    %510 = vector.multi_reduction <add>, %509, %cst_113 [1] : vector<2x64xf32> to vector<2xf32>
    %511 = vector.shape_cast %510 : vector<2xf32> to vector<2x1xf32>
    %c5_i32 = arith.constant 5 : i32
    %512 = vector.broadcast %c5_i32 : i32 to vector<2x8xi32>
    %513 = arith.cmpi eq, %248, %512 : vector<2x8xi32>
    %514 = vector.shape_cast %505 : vector<2x1xf32> to vector<2x1xf32>
    %515 = vector.broadcast %514 : vector<2x1xf32> to vector<2x8xf32>
    %516 = arith.select %513, %515, %468 : vector<2x8xi1>, vector<2x8xf32>
    %c5_i32_114 = arith.constant 5 : i32
    %517 = vector.broadcast %c5_i32_114 : i32 to vector<2x8xi32>
    %518 = arith.cmpi eq, %248, %517 : vector<2x8xi32>
    %519 = vector.shape_cast %508 : vector<2x1xf32> to vector<2x1xf32>
    %520 = vector.broadcast %519 : vector<2x1xf32> to vector<2x8xf32>
    %521 = arith.select %518, %520, %473 : vector<2x8xi1>, vector<2x8xf32>
    %c5_i32_115 = arith.constant 5 : i32
    %522 = vector.broadcast %c5_i32_115 : i32 to vector<2x8xi32>
    %523 = arith.cmpi eq, %248, %522 : vector<2x8xi32>
    %524 = vector.shape_cast %511 : vector<2x1xf32> to vector<2x1xf32>
    %525 = vector.broadcast %524 : vector<2x1xf32> to vector<2x8xf32>
    %526 = arith.select %523, %525, %478 : vector<2x8xi1>, vector<2x8xf32>
    %527 = vector.broadcast %505 : vector<2x1xf32> to vector<2x64xf32>
    %528 = arith.subf %123, %527 : vector<2x64xf32>
    %529 = vector.broadcast %508 : vector<2x1xf32> to vector<2x64xf32>
    %530 = arith.subf %125, %529 : vector<2x64xf32>
    %531 = vector.broadcast %511 : vector<2x1xf32> to vector<2x64xf32>
    %532 = arith.subf %127, %531 : vector<2x64xf32>
    %533 = arith.mulf %528, %528 : vector<2x64xf32>
    %534 = arith.mulf %530, %530 : vector<2x64xf32>
    %535 = arith.addf %533, %534 : vector<2x64xf32>
    %536 = arith.mulf %532, %532 : vector<2x64xf32>
    %537 = arith.addf %535, %536 : vector<2x64xf32>
    %538 = arith.minimumf %490, %537 : vector<2x64xf32>
    %cst_116 = arith.constant dense<0xFF800000> : vector<2xf32>
    %539 = vector.multi_reduction <maximumf>, %538, %cst_116 [1] : vector<2x64xf32> to vector<2xf32>
    %540 = vector.shape_cast %539 : vector<2xf32> to vector<2x1xf32>
    %541 = vector.broadcast %540 : vector<2x1xf32> to vector<2x64xf32>
    %542 = arith.cmpf oeq, %538, %541 : vector<2x64xf32>
    %c64_i32_117 = arith.constant 64 : i32
    %543 = vector.broadcast %c64_i32_117 : i32 to vector<2x64xi32>
    %544 = arith.select %542, %247, %543 : vector<2x64xi1>, vector<2x64xi32>
    %cst_118 = arith.constant dense<2147483647> : vector<2xi32>
    %545 = vector.multi_reduction <minsi>, %544, %cst_118 [1] : vector<2x64xi32> to vector<2xi32>
    %546 = vector.shape_cast %545 : vector<2xi32> to vector<2x1xi32>
    %547 = vector.broadcast %546 : vector<2x1xi32> to vector<2x64xi32>
    %548 = arith.cmpi eq, %247, %547 : vector<2x64xi32>
    %549 = arith.extui %548 : vector<2x64xi1> to vector<2x64xi32>
    %550 = arith.sitofp %549 : vector<2x64xi32> to vector<2x64xf32>
    %551 = arith.mulf %123, %550 : vector<2x64xf32>
    %cst_119 = arith.constant dense<0.000000e+00> : vector<2xf32>
    %552 = vector.multi_reduction <add>, %551, %cst_119 [1] : vector<2x64xf32> to vector<2xf32>
    %553 = vector.shape_cast %552 : vector<2xf32> to vector<2x1xf32>
    %554 = arith.mulf %125, %550 : vector<2x64xf32>
    %cst_120 = arith.constant dense<0.000000e+00> : vector<2xf32>
    %555 = vector.multi_reduction <add>, %554, %cst_120 [1] : vector<2x64xf32> to vector<2xf32>
    %556 = vector.shape_cast %555 : vector<2xf32> to vector<2x1xf32>
    %557 = arith.mulf %127, %550 : vector<2x64xf32>
    %cst_121 = arith.constant dense<0.000000e+00> : vector<2xf32>
    %558 = vector.multi_reduction <add>, %557, %cst_121 [1] : vector<2x64xf32> to vector<2xf32>
    %559 = vector.shape_cast %558 : vector<2xf32> to vector<2x1xf32>
    %c6_i32 = arith.constant 6 : i32
    %560 = vector.broadcast %c6_i32 : i32 to vector<2x8xi32>
    %561 = arith.cmpi eq, %248, %560 : vector<2x8xi32>
    %562 = vector.shape_cast %553 : vector<2x1xf32> to vector<2x1xf32>
    %563 = vector.broadcast %562 : vector<2x1xf32> to vector<2x8xf32>
    %564 = arith.select %561, %563, %516 : vector<2x8xi1>, vector<2x8xf32>
    %c6_i32_122 = arith.constant 6 : i32
    %565 = vector.broadcast %c6_i32_122 : i32 to vector<2x8xi32>
    %566 = arith.cmpi eq, %248, %565 : vector<2x8xi32>
    %567 = vector.shape_cast %556 : vector<2x1xf32> to vector<2x1xf32>
    %568 = vector.broadcast %567 : vector<2x1xf32> to vector<2x8xf32>
    %569 = arith.select %566, %568, %521 : vector<2x8xi1>, vector<2x8xf32>
    %c6_i32_123 = arith.constant 6 : i32
    %570 = vector.broadcast %c6_i32_123 : i32 to vector<2x8xi32>
    %571 = arith.cmpi eq, %248, %570 : vector<2x8xi32>
    %572 = vector.shape_cast %559 : vector<2x1xf32> to vector<2x1xf32>
    %573 = vector.broadcast %572 : vector<2x1xf32> to vector<2x8xf32>
    %574 = arith.select %571, %573, %526 : vector<2x8xi1>, vector<2x8xf32>
    %575 = vector.broadcast %553 : vector<2x1xf32> to vector<2x64xf32>
    %576 = arith.subf %123, %575 : vector<2x64xf32>
    %577 = vector.broadcast %556 : vector<2x1xf32> to vector<2x64xf32>
    %578 = arith.subf %125, %577 : vector<2x64xf32>
    %579 = vector.broadcast %559 : vector<2x1xf32> to vector<2x64xf32>
    %580 = arith.subf %127, %579 : vector<2x64xf32>
    %581 = arith.mulf %576, %576 : vector<2x64xf32>
    %582 = arith.mulf %578, %578 : vector<2x64xf32>
    %583 = arith.addf %581, %582 : vector<2x64xf32>
    %584 = arith.mulf %580, %580 : vector<2x64xf32>
    %585 = arith.addf %583, %584 : vector<2x64xf32>
    %586 = arith.minimumf %538, %585 : vector<2x64xf32>
    %cst_124 = arith.constant dense<0xFF800000> : vector<2xf32>
    %587 = vector.multi_reduction <maximumf>, %586, %cst_124 [1] : vector<2x64xf32> to vector<2xf32>
    %588 = vector.shape_cast %587 : vector<2xf32> to vector<2x1xf32>
    %589 = vector.broadcast %588 : vector<2x1xf32> to vector<2x64xf32>
    %590 = arith.cmpf oeq, %586, %589 : vector<2x64xf32>
    %c64_i32_125 = arith.constant 64 : i32
    %591 = vector.broadcast %c64_i32_125 : i32 to vector<2x64xi32>
    %592 = arith.select %590, %247, %591 : vector<2x64xi1>, vector<2x64xi32>
    %cst_126 = arith.constant dense<2147483647> : vector<2xi32>
    %593 = vector.multi_reduction <minsi>, %592, %cst_126 [1] : vector<2x64xi32> to vector<2xi32>
    %594 = vector.shape_cast %593 : vector<2xi32> to vector<2x1xi32>
    %595 = vector.broadcast %594 : vector<2x1xi32> to vector<2x64xi32>
    %596 = arith.cmpi eq, %247, %595 : vector<2x64xi32>
    %597 = arith.extui %596 : vector<2x64xi1> to vector<2x64xi32>
    %598 = arith.sitofp %597 : vector<2x64xi32> to vector<2x64xf32>
    %599 = arith.mulf %123, %598 : vector<2x64xf32>
    %cst_127 = arith.constant dense<0.000000e+00> : vector<2xf32>
    %600 = vector.multi_reduction <add>, %599, %cst_127 [1] : vector<2x64xf32> to vector<2xf32>
    %601 = vector.shape_cast %600 : vector<2xf32> to vector<2x1xf32>
    %602 = arith.mulf %125, %598 : vector<2x64xf32>
    %cst_128 = arith.constant dense<0.000000e+00> : vector<2xf32>
    %603 = vector.multi_reduction <add>, %602, %cst_128 [1] : vector<2x64xf32> to vector<2xf32>
    %604 = vector.shape_cast %603 : vector<2xf32> to vector<2x1xf32>
    %605 = arith.mulf %127, %598 : vector<2x64xf32>
    %cst_129 = arith.constant dense<0.000000e+00> : vector<2xf32>
    %606 = vector.multi_reduction <add>, %605, %cst_129 [1] : vector<2x64xf32> to vector<2xf32>
    %607 = vector.shape_cast %606 : vector<2xf32> to vector<2x1xf32>
    %c7_i32 = arith.constant 7 : i32
    %608 = vector.broadcast %c7_i32 : i32 to vector<2x8xi32>
    %609 = arith.cmpi eq, %248, %608 : vector<2x8xi32>
    %610 = vector.shape_cast %601 : vector<2x1xf32> to vector<2x1xf32>
    %611 = vector.broadcast %610 : vector<2x1xf32> to vector<2x8xf32>
    %612 = arith.select %609, %611, %564 : vector<2x8xi1>, vector<2x8xf32>
    %c7_i32_130 = arith.constant 7 : i32
    %613 = vector.broadcast %c7_i32_130 : i32 to vector<2x8xi32>
    %614 = arith.cmpi eq, %248, %613 : vector<2x8xi32>
    %615 = vector.shape_cast %604 : vector<2x1xf32> to vector<2x1xf32>
    %616 = vector.broadcast %615 : vector<2x1xf32> to vector<2x8xf32>
    %617 = arith.select %614, %616, %569 : vector<2x8xi1>, vector<2x8xf32>
    %c7_i32_131 = arith.constant 7 : i32
    %618 = vector.broadcast %c7_i32_131 : i32 to vector<2x8xi32>
    %619 = arith.cmpi eq, %248, %618 : vector<2x8xi32>
    %620 = vector.shape_cast %607 : vector<2x1xf32> to vector<2x1xf32>
    %621 = vector.broadcast %620 : vector<2x1xf32> to vector<2x8xf32>
    %622 = arith.select %619, %621, %574 : vector<2x8xi1>, vector<2x8xf32>
    %623 = vector.shape_cast %612 : vector<2x8xf32> to vector<1x2x8xf32>
    %624 = vector.shape_cast %617 : vector<2x8xf32> to vector<1x2x8xf32>
    %625 = vector.shape_cast %622 : vector<2x8xf32> to vector<1x2x8xf32>
    %626 = tpu.concatenate %623, %624, %625 in 0 : vector<1x2x8xf32>, vector<1x2x8xf32>, vector<1x2x8xf32> -> vector<3x2x8xf32>
    %c0_132 = arith.constant 0 : index
    %c0_133 = arith.constant 0 : index
    %c0_134 = arith.constant 0 : index
    %c0_135 = arith.constant 0 : index
    %627 = vector.load %arg19[%c0_132, %c0_133, %c0_134, %c0_135] : memref<1x3x2x8xf32, #tpu.memory_space<vmem>>, vector<1x3x2x8xf32>
    %628 = vector.shape_cast %627 : vector<1x3x2x8xf32> to vector<3x2x8xf32>
    %629 = vector.shape_cast %626 : vector<3x2x8xf32> to vector<1x3x2x8xf32>
    tpu.vector_store %arg19[%c0_132, %c0_133, %c0_134, %c0_135], %629 {strides = array<i32>} : memref<1x3x2x8xf32, #tpu.memory_space<vmem>>, vector<1x3x2x8xf32>,
    return
  }
  func.func @transform_0(%arg0: i32) -> (i32, i32, i32) {
    %c0_i32 = arith.constant 0 : i32
    %c0_i32_0 = arith.constant 0 : i32
    %c0_i32_1 = arith.constant 0 : i32
    return %arg0, %c0_i32, %c0_i32_0 : i32, i32, i32
  }
  func.func @transform_1(%arg0: i32) -> (i32, i32, i32, i32) {
    %c0_i32 = arith.constant 0 : i32
    %c0_i32_0 = arith.constant 0 : i32
    %c0_i32_1 = arith.constant 0 : i32
    %c0_i32_2 = arith.constant 0 : i32
    return %arg0, %c0_i32, %c0_i32_0, %c0_i32_1 : i32, i32, i32, i32
  }
  func.func @transform_2(%arg0: i32) -> (i32, i32) {
    %c0_i32 = arith.constant 0 : i32
    %c0_i32_0 = arith.constant 0 : i32
    %c0_i32_1 = arith.constant 0 : i32
    return %c0_i32, %c0_i32_0 : i32, i32
  }
  func.func @transform_3(%arg0: i32) -> (i32, i32) {
    %c0_i32 = arith.constant 0 : i32
    %c0_i32_0 = arith.constant 0 : i32
    %c0_i32_1 = arith.constant 0 : i32
    return %c0_i32, %c0_i32_0 : i32, i32
  }
  func.func @transform_4(%arg0: i32) -> (i32, i32) {
    %c0_i32 = arith.constant 0 : i32
    %c0_i32_0 = arith.constant 0 : i32
    %c0_i32_1 = arith.constant 0 : i32
    return %c0_i32, %c0_i32_0 : i32, i32
  }
  func.func @transform_5(%arg0: i32) -> (i32, i32) {
    %c0_i32 = arith.constant 0 : i32
    %c0_i32_0 = arith.constant 0 : i32
    %c0_i32_1 = arith.constant 0 : i32
    return %c0_i32, %c0_i32_0 : i32, i32
  }
  func.func @transform_6(%arg0: i32) -> (i32, i32) {
    %c0_i32 = arith.constant 0 : i32
    %c0_i32_0 = arith.constant 0 : i32
    %c0_i32_1 = arith.constant 0 : i32
    return %c0_i32, %c0_i32_0 : i32, i32
  }
  func.func @transform_7(%arg0: i32) -> (i32, i32) {
    %c0_i32 = arith.constant 0 : i32
    %c0_i32_0 = arith.constant 0 : i32
    %c0_i32_1 = arith.constant 0 : i32
    return %c0_i32, %c0_i32_0 : i32, i32
  }
  func.func @transform_8(%arg0: i32) -> (i32, i32) {
    %c0_i32 = arith.constant 0 : i32
    %c0_i32_0 = arith.constant 0 : i32
    %c0_i32_1 = arith.constant 0 : i32
    return %c0_i32, %c0_i32_0 : i32, i32
  }
  func.func @transform_9(%arg0: i32) -> (i32, i32) {
    %c0_i32 = arith.constant 0 : i32
    %c0_i32_0 = arith.constant 0 : i32
    %c0_i32_1 = arith.constant 0 : i32
    return %c0_i32, %c0_i32_0 : i32, i32
  }
  func.func @transform_10(%arg0: i32) -> (i32, i32) {
    %c0_i32 = arith.constant 0 : i32
    %c0_i32_0 = arith.constant 0 : i32
    %c0_i32_1 = arith.constant 0 : i32
    return %c0_i32, %c0_i32_0 : i32, i32
  }
  func.func @transform_11(%arg0: i32) -> (i32, i32) {
    %c0_i32 = arith.constant 0 : i32
    %c0_i32_0 = arith.constant 0 : i32
    %c0_i32_1 = arith.constant 0 : i32
    return %c0_i32, %c0_i32_0 : i32, i32
  }
  func.func @transform_12(%arg0: i32) -> (i32, i32) {
    %c0_i32 = arith.constant 0 : i32
    %c0_i32_0 = arith.constant 0 : i32
    %c0_i32_1 = arith.constant 0 : i32
    return %c0_i32, %c0_i32_0 : i32, i32
  }
  func.func @transform_13(%arg0: i32) -> (i32, i32) {
    %c0_i32 = arith.constant 0 : i32
    %c0_i32_0 = arith.constant 0 : i32
    %c0_i32_1 = arith.constant 0 : i32
    return %c0_i32, %c0_i32_0 : i32, i32
  }
  func.func @transform_14(%arg0: i32) -> (i32, i32) {
    %c0_i32 = arith.constant 0 : i32
    %c0_i32_0 = arith.constant 0 : i32
    %c0_i32_1 = arith.constant 0 : i32
    return %c0_i32, %c0_i32_0 : i32, i32
  }
  func.func @transform_15(%arg0: i32) -> (i32, i32) {
    %c0_i32 = arith.constant 0 : i32
    %c0_i32_0 = arith.constant 0 : i32
    %c0_i32_1 = arith.constant 0 : i32
    return %c0_i32, %c0_i32_0 : i32, i32
  }
  func.func @transform_16(%arg0: i32) -> (i32, i32) {
    %c0_i32 = arith.constant 0 : i32
    %c0_i32_0 = arith.constant 0 : i32
    %c0_i32_1 = arith.constant 0 : i32
    return %c0_i32, %c0_i32_0 : i32, i32
  }
  func.func @transform_17(%arg0: i32) -> (i32, i32) {
    %c0_i32 = arith.constant 0 : i32
    %c0_i32_0 = arith.constant 0 : i32
    %c0_i32_1 = arith.constant 0 : i32
    return %c0_i32, %c0_i32_0 : i32, i32
  }
  func.func @transform_18(%arg0: i32) -> (i32, i32, i32, i32) {
    %c0_i32 = arith.constant 0 : i32
    %c0_i32_0 = arith.constant 0 : i32
    %c0_i32_1 = arith.constant 0 : i32
    %c0_i32_2 = arith.constant 0 : i32
    return %arg0, %c0_i32, %c0_i32_0, %c0_i32_1 : i32, i32, i32, i32
  }
}

module attributes {stable_mosaic.version = 11 : i64} {
  func.func @_cage_kernel(%arg0: memref<2x3x2x8xf32, #tpu.memory_space<vmem>>, %arg1: memref<2x3x64xf32, #tpu.memory_space<vmem>>, %arg2: memref<3x64xf32, #tpu.memory_space<vmem>>, %arg3: memref<24x128xf32, #tpu.memory_space<vmem>>, %arg4: memref<1x128xf32, #tpu.memory_space<vmem>>, %arg5: memref<128x192xf32, #tpu.memory_space<vmem>>, %arg6: memref<1x192xf32, #tpu.memory_space<vmem>>, %arg7: memref<2x3x64xf32, #tpu.memory_space<vmem>>) attributes {dimension_semantics = [], scalar_prefetch = 0 : i64, scratch_operands = 0 : i64, tpu.core_type = #tpu.core_type<tc>} {
    %c1 = arith.constant 1 : index
    %c0 = arith.constant 0 : index
    %c0_0 = arith.constant 0 : index
    %c0_1 = arith.constant 0 : index
    %0 = vector.load %arg0[%c1, %c0, %c0_0, %c0_1] : memref<2x3x2x8xf32, #tpu.memory_space<vmem>>, vector<1x3x2x8xf32>
    %1 = vector.shape_cast %0 : vector<1x3x2x8xf32> to vector<3x2x8xf32>
    %c0_2 = arith.constant 0 : index
    %c0_3 = arith.constant 0 : index
    %c0_4 = arith.constant 0 : index
    %c0_5 = arith.constant 0 : index
    %2 = vector.load %arg0[%c0_2, %c0_3, %c0_4, %c0_5] : memref<2x3x2x8xf32, #tpu.memory_space<vmem>>, vector<1x3x2x8xf32>
    %3 = vector.shape_cast %2 : vector<1x3x2x8xf32> to vector<3x2x8xf32>
    %4 = arith.subf %1, %3 : vector<3x2x8xf32>
    %5 = vector.extract_strided_slice %4 {offsets = [0, 0, 0], sizes = [1, 2, 8], strides = [1, 1, 1]} : vector<3x2x8xf32> to vector<1x2x8xf32>
    %6 = vector.shape_cast %5 : vector<1x2x8xf32> to vector<2x8xf32>
    %7 = vector.extract_strided_slice %4 {offsets = [1, 0, 0], sizes = [1, 2, 8], strides = [1, 1, 1]} : vector<3x2x8xf32> to vector<1x2x8xf32>
    %8 = vector.shape_cast %7 : vector<1x2x8xf32> to vector<2x8xf32>
    %9 = vector.extract_strided_slice %4 {offsets = [2, 0, 0], sizes = [1, 2, 8], strides = [1, 1, 1]} : vector<3x2x8xf32> to vector<1x2x8xf32>
    %10 = vector.shape_cast %9 : vector<1x2x8xf32> to vector<2x8xf32>
    %c0_6 = arith.constant 0 : index
    %c0_7 = arith.constant 0 : index
    %11 = vector.load %arg3[%c0_6, %c0_7] : memref<24x128xf32, #tpu.memory_space<vmem>>, vector<8x128xf32>
    %cst = arith.constant dense<0.000000e+00> : vector<2x128xf32>
    %12 = tpu.matmul %6, %11, %cst {dimension_numbers = #tpu.dot_dimension_numbers<[1], [0], [0], [1], [0, 0, 1, 1], [], []>} : vector<2x8xf32>, vector<8x128xf32>, vector<2x128xf32> -> vector<2x128xf32>
    %c8 = arith.constant 8 : index
    %c0_8 = arith.constant 0 : index
    %13 = vector.load %arg3[%c8, %c0_8] : memref<24x128xf32, #tpu.memory_space<vmem>>, vector<8x128xf32>
    %cst_9 = arith.constant dense<0.000000e+00> : vector<2x128xf32>
    %14 = tpu.matmul %8, %13, %cst_9 {dimension_numbers = #tpu.dot_dimension_numbers<[1], [0], [0], [1], [0, 0, 1, 1], [], []>} : vector<2x8xf32>, vector<8x128xf32>, vector<2x128xf32> -> vector<2x128xf32>
    %15 = arith.addf %12, %14 : vector<2x128xf32>
    %c16 = arith.constant 16 : index
    %c0_10 = arith.constant 0 : index
    %16 = vector.load %arg3[%c16, %c0_10] : memref<24x128xf32, #tpu.memory_space<vmem>>, vector<8x128xf32>
    %cst_11 = arith.constant dense<0.000000e+00> : vector<2x128xf32>
    %17 = tpu.matmul %10, %16, %cst_11 {dimension_numbers = #tpu.dot_dimension_numbers<[1], [0], [0], [1], [0, 0, 1, 1], [], []>} : vector<2x8xf32>, vector<8x128xf32>, vector<2x128xf32> -> vector<2x128xf32>
    %18 = arith.addf %15, %17 : vector<2x128xf32>
    %c0_12 = arith.constant 0 : index
    %c0_13 = arith.constant 0 : index
    %19 = vector.load %arg4[%c0_12, %c0_13] : memref<1x128xf32, #tpu.memory_space<vmem>>, vector<1x128xf32>
    %20 = vector.broadcast %19 : vector<1x128xf32> to vector<2x128xf32>
    %21 = arith.addf %18, %20 : vector<2x128xf32>
    %cst_14 = arith.constant 0.000000e+00 : f32
    %22 = vector.broadcast %cst_14 : f32 to vector<2x128xf32>
    %23 = arith.maximumf %21, %22 : vector<2x128xf32>
    %c0_15 = arith.constant 0 : index
    %c0_16 = arith.constant 0 : index
    %24 = vector.load %arg5[%c0_15, %c0_16] : memref<128x192xf32, #tpu.memory_space<vmem>>, vector<128x192xf32>
    %cst_17 = arith.constant dense<0.000000e+00> : vector<2x192xf32>
    %25 = tpu.matmul %23, %24, %cst_17 {dimension_numbers = #tpu.dot_dimension_numbers<[1], [0], [0], [1], [0, 0, 1, 1], [], []>} : vector<2x128xf32>, vector<128x192xf32>, vector<2x192xf32> -> vector<2x192xf32>
    %c0_18 = arith.constant 0 : index
    %c0_19 = arith.constant 0 : index
    %26 = vector.load %arg6[%c0_18, %c0_19] : memref<1x192xf32, #tpu.memory_space<vmem>>, vector<1x192xf32>
    %27 = vector.broadcast %26 : vector<1x192xf32> to vector<2x192xf32>
    %28 = arith.addf %25, %27 : vector<2x192xf32>
    %29 = tpu.iota {dimensions = array<i32: 0>} : vector<64x64xi32>
    %c0_20 = arith.constant 0 : index
    %c0_21 = arith.constant 0 : index
    %30 = vector.load %arg2[%c0_20, %c0_21] : memref<3x64xf32, #tpu.memory_space<vmem>>, vector<3x64xf32>
    %31 = vector.extract_strided_slice %28 {offsets = [0, 0], sizes = [1, 64], strides = [1, 1]} : vector<2x192xf32> to vector<1x64xf32>
    %32 = vector.extract_strided_slice %28 {offsets = [0, 64], sizes = [1, 64], strides = [1, 1]} : vector<2x192xf32> to vector<1x64xf32>
    %33 = vector.extract_strided_slice %28 {offsets = [0, 128], sizes = [1, 64], strides = [1, 1]} : vector<2x192xf32> to vector<1x64xf32>
    %34 = tpu.concatenate %31, %32, %33 in 0 : vector<1x64xf32>, vector<1x64xf32>, vector<1x64xf32> -> vector<3x64xf32>
    %35 = arith.addf %30, %34 : vector<3x64xf32>
    %c0_22 = arith.constant 0 : index
    %c0_23 = arith.constant 0 : index
    %c0_24 = arith.constant 0 : index
    %36 = vector.load %arg1[%c0_22, %c0_23, %c0_24] : memref<2x3x64xf32, #tpu.memory_space<vmem>>, vector<1x3x64xf32>
    %37 = vector.shape_cast %36 : vector<1x3x64xf32> to vector<3x64xf32>
    %cst_25 = arith.constant dense<0x7F800000> : vector<3xf32>
    %38 = vector.multi_reduction <minimumf>, %37, %cst_25 [1] : vector<3x64xf32> to vector<3xf32>
    %39 = vector.shape_cast %38 : vector<3xf32> to vector<3x1xf32>
    %cst_26 = arith.constant dense<0xFF800000> : vector<3xf32>
    %40 = vector.multi_reduction <maximumf>, %37, %cst_26 [1] : vector<3x64xf32> to vector<3xf32>
    %41 = vector.shape_cast %40 : vector<3xf32> to vector<3x1xf32>
    %42 = vector.broadcast %39 : vector<3x1xf32> to vector<3x64xf32>
    %43 = arith.subf %37, %42 : vector<3x64xf32>
    %44 = arith.subf %41, %39 : vector<3x1xf32>
    %cst_27 = arith.constant 9.99999997E-7 : f32
    %45 = vector.broadcast %cst_27 : f32 to vector<3x1xf32>
    %46 = arith.addf %44, %45 : vector<3x1xf32>
    %47 = vector.broadcast %46 : vector<3x1xf32> to vector<3x64xf32>
    %48 = arith.divf %43, %47 : vector<3x64xf32>
    %cst_28 = arith.constant 3.000000e+00 : f32
    %49 = vector.broadcast %cst_28 : f32 to vector<3x64xf32>
    %50 = arith.mulf %48, %49 : vector<3x64xf32>
    %51 = arith.fptosi %50 : vector<3x64xf32> to vector<3x64xi32>
    %c0_i32 = arith.constant 0 : i32
    %c2_i32 = arith.constant 2 : i32
    %52 = vector.broadcast %c0_i32 : i32 to vector<3x64xi32>
    %53 = arith.maxsi %52, %51 : vector<3x64xi32>
    %54 = vector.broadcast %c2_i32 : i32 to vector<3x64xi32>
    %55 = arith.minsi %54, %53 : vector<3x64xi32>
    %56 = arith.sitofp %55 : vector<3x64xi32> to vector<3x64xf32>
    %57 = arith.subf %50, %56 : vector<3x64xf32>
    %58 = vector.extract_strided_slice %55 {offsets = [0, 0], sizes = [1, 64], strides = [1, 1]} : vector<3x64xi32> to vector<1x64xi32>
    %59 = vector.extract_strided_slice %55 {offsets = [1, 0], sizes = [1, 64], strides = [1, 1]} : vector<3x64xi32> to vector<1x64xi32>
    %60 = vector.extract_strided_slice %55 {offsets = [2, 0], sizes = [1, 64], strides = [1, 1]} : vector<3x64xi32> to vector<1x64xi32>
    %61 = vector.extract_strided_slice %57 {offsets = [0, 0], sizes = [1, 64], strides = [1, 1]} : vector<3x64xf32> to vector<1x64xf32>
    %62 = vector.extract_strided_slice %57 {offsets = [1, 0], sizes = [1, 64], strides = [1, 1]} : vector<3x64xf32> to vector<1x64xf32>
    %63 = vector.extract_strided_slice %57 {offsets = [2, 0], sizes = [1, 64], strides = [1, 1]} : vector<3x64xf32> to vector<1x64xf32>
    %cst_29 = arith.constant 0.000000e+00 : f32
    %64 = vector.broadcast %cst_29 : f32 to vector<64x64xf32>
    %cst_30 = arith.constant 1.000000e+00 : f32
    %65 = vector.broadcast %cst_30 : f32 to vector<1x64xf32>
    %66 = arith.subf %65, %61 : vector<1x64xf32>
    %c0_i32_31 = arith.constant 0 : i32
    %67 = vector.broadcast %c0_i32_31 : i32 to vector<1x64xi32>
    %68 = arith.addi %58, %67 : vector<1x64xi32>
    %cst_32 = arith.constant 1.000000e+00 : f32
    %69 = vector.broadcast %cst_32 : f32 to vector<1x64xf32>
    %70 = arith.subf %69, %62 : vector<1x64xf32>
    %c0_i32_33 = arith.constant 0 : i32
    %71 = vector.broadcast %c0_i32_33 : i32 to vector<1x64xi32>
    %72 = arith.addi %59, %71 : vector<1x64xi32>
    %cst_34 = arith.constant 1.000000e+00 : f32
    %73 = vector.broadcast %cst_34 : f32 to vector<1x64xf32>
    %74 = arith.subf %73, %63 : vector<1x64xf32>
    %c16_i32 = arith.constant 16 : i32
    %75 = vector.broadcast %c16_i32 : i32 to vector<1x64xi32>
    %76 = arith.muli %68, %75 : vector<1x64xi32>
    %c4_i32 = arith.constant 4 : i32
    %77 = vector.broadcast %c4_i32 : i32 to vector<1x64xi32>
    %78 = arith.muli %72, %77 : vector<1x64xi32>
    %79 = arith.addi %76, %78 : vector<1x64xi32>
    %c0_i32_35 = arith.constant 0 : i32
    %80 = vector.broadcast %c0_i32_35 : i32 to vector<1x64xi32>
    %81 = arith.addi %60, %80 : vector<1x64xi32>
    %82 = arith.addi %79, %81 : vector<1x64xi32>
    %83 = vector.broadcast %82 : vector<1x64xi32> to vector<64x64xi32>
    %84 = arith.cmpi eq, %29, %83 : vector<64x64xi32>
    %85 = arith.mulf %66, %70 : vector<1x64xf32>
    %86 = arith.mulf %85, %74 : vector<1x64xf32>
    %cst_36 = arith.constant 0.000000e+00 : f32
    %87 = vector.shape_cast %86 : vector<1x64xf32> to vector<1x64xf32>
    %88 = vector.broadcast %87 : vector<1x64xf32> to vector<64x64xf32>
    %89 = vector.broadcast %cst_36 : f32 to vector<64x64xf32>
    %90 = arith.select %84, %88, %89 : vector<64x64xi1>, vector<64x64xf32>
    %91 = arith.addf %64, %90 : vector<64x64xf32>
    %c16_i32_37 = arith.constant 16 : i32
    %92 = vector.broadcast %c16_i32_37 : i32 to vector<1x64xi32>
    %93 = arith.muli %68, %92 : vector<1x64xi32>
    %c4_i32_38 = arith.constant 4 : i32
    %94 = vector.broadcast %c4_i32_38 : i32 to vector<1x64xi32>
    %95 = arith.muli %72, %94 : vector<1x64xi32>
    %96 = arith.addi %93, %95 : vector<1x64xi32>
    %c1_i32 = arith.constant 1 : i32
    %97 = vector.broadcast %c1_i32 : i32 to vector<1x64xi32>
    %98 = arith.addi %60, %97 : vector<1x64xi32>
    %99 = arith.addi %96, %98 : vector<1x64xi32>
    %100 = vector.broadcast %99 : vector<1x64xi32> to vector<64x64xi32>
    %101 = arith.cmpi eq, %29, %100 : vector<64x64xi32>
    %102 = arith.mulf %66, %70 : vector<1x64xf32>
    %103 = arith.mulf %102, %63 : vector<1x64xf32>
    %cst_39 = arith.constant 0.000000e+00 : f32
    %104 = vector.shape_cast %103 : vector<1x64xf32> to vector<1x64xf32>
    %105 = vector.broadcast %104 : vector<1x64xf32> to vector<64x64xf32>
    %106 = vector.broadcast %cst_39 : f32 to vector<64x64xf32>
    %107 = arith.select %101, %105, %106 : vector<64x64xi1>, vector<64x64xf32>
    %108 = arith.addf %91, %107 : vector<64x64xf32>
    %c1_i32_40 = arith.constant 1 : i32
    %109 = vector.broadcast %c1_i32_40 : i32 to vector<1x64xi32>
    %110 = arith.addi %59, %109 : vector<1x64xi32>
    %cst_41 = arith.constant 1.000000e+00 : f32
    %111 = vector.broadcast %cst_41 : f32 to vector<1x64xf32>
    %112 = arith.subf %111, %63 : vector<1x64xf32>
    %c16_i32_42 = arith.constant 16 : i32
    %113 = vector.broadcast %c16_i32_42 : i32 to vector<1x64xi32>
    %114 = arith.muli %68, %113 : vector<1x64xi32>
    %c4_i32_43 = arith.constant 4 : i32
    %115 = vector.broadcast %c4_i32_43 : i32 to vector<1x64xi32>
    %116 = arith.muli %110, %115 : vector<1x64xi32>
    %117 = arith.addi %114, %116 : vector<1x64xi32>
    %c0_i32_44 = arith.constant 0 : i32
    %118 = vector.broadcast %c0_i32_44 : i32 to vector<1x64xi32>
    %119 = arith.addi %60, %118 : vector<1x64xi32>
    %120 = arith.addi %117, %119 : vector<1x64xi32>
    %121 = vector.broadcast %120 : vector<1x64xi32> to vector<64x64xi32>
    %122 = arith.cmpi eq, %29, %121 : vector<64x64xi32>
    %123 = arith.mulf %66, %62 : vector<1x64xf32>
    %124 = arith.mulf %123, %112 : vector<1x64xf32>
    %cst_45 = arith.constant 0.000000e+00 : f32
    %125 = vector.shape_cast %124 : vector<1x64xf32> to vector<1x64xf32>
    %126 = vector.broadcast %125 : vector<1x64xf32> to vector<64x64xf32>
    %127 = vector.broadcast %cst_45 : f32 to vector<64x64xf32>
    %128 = arith.select %122, %126, %127 : vector<64x64xi1>, vector<64x64xf32>
    %129 = arith.addf %108, %128 : vector<64x64xf32>
    %c16_i32_46 = arith.constant 16 : i32
    %130 = vector.broadcast %c16_i32_46 : i32 to vector<1x64xi32>
    %131 = arith.muli %68, %130 : vector<1x64xi32>
    %c4_i32_47 = arith.constant 4 : i32
    %132 = vector.broadcast %c4_i32_47 : i32 to vector<1x64xi32>
    %133 = arith.muli %110, %132 : vector<1x64xi32>
    %134 = arith.addi %131, %133 : vector<1x64xi32>
    %c1_i32_48 = arith.constant 1 : i32
    %135 = vector.broadcast %c1_i32_48 : i32 to vector<1x64xi32>
    %136 = arith.addi %60, %135 : vector<1x64xi32>
    %137 = arith.addi %134, %136 : vector<1x64xi32>
    %138 = vector.broadcast %137 : vector<1x64xi32> to vector<64x64xi32>
    %139 = arith.cmpi eq, %29, %138 : vector<64x64xi32>
    %140 = arith.mulf %66, %62 : vector<1x64xf32>
    %141 = arith.mulf %140, %63 : vector<1x64xf32>
    %cst_49 = arith.constant 0.000000e+00 : f32
    %142 = vector.shape_cast %141 : vector<1x64xf32> to vector<1x64xf32>
    %143 = vector.broadcast %142 : vector<1x64xf32> to vector<64x64xf32>
    %144 = vector.broadcast %cst_49 : f32 to vector<64x64xf32>
    %145 = arith.select %139, %143, %144 : vector<64x64xi1>, vector<64x64xf32>
    %146 = arith.addf %129, %145 : vector<64x64xf32>
    %c1_i32_50 = arith.constant 1 : i32
    %147 = vector.broadcast %c1_i32_50 : i32 to vector<1x64xi32>
    %148 = arith.addi %58, %147 : vector<1x64xi32>
    %cst_51 = arith.constant 1.000000e+00 : f32
    %149 = vector.broadcast %cst_51 : f32 to vector<1x64xf32>
    %150 = arith.subf %149, %62 : vector<1x64xf32>
    %c0_i32_52 = arith.constant 0 : i32
    %151 = vector.broadcast %c0_i32_52 : i32 to vector<1x64xi32>
    %152 = arith.addi %59, %151 : vector<1x64xi32>
    %cst_53 = arith.constant 1.000000e+00 : f32
    %153 = vector.broadcast %cst_53 : f32 to vector<1x64xf32>
    %154 = arith.subf %153, %63 : vector<1x64xf32>
    %c16_i32_54 = arith.constant 16 : i32
    %155 = vector.broadcast %c16_i32_54 : i32 to vector<1x64xi32>
    %156 = arith.muli %148, %155 : vector<1x64xi32>
    %c4_i32_55 = arith.constant 4 : i32
    %157 = vector.broadcast %c4_i32_55 : i32 to vector<1x64xi32>
    %158 = arith.muli %152, %157 : vector<1x64xi32>
    %159 = arith.addi %156, %158 : vector<1x64xi32>
    %c0_i32_56 = arith.constant 0 : i32
    %160 = vector.broadcast %c0_i32_56 : i32 to vector<1x64xi32>
    %161 = arith.addi %60, %160 : vector<1x64xi32>
    %162 = arith.addi %159, %161 : vector<1x64xi32>
    %163 = vector.broadcast %162 : vector<1x64xi32> to vector<64x64xi32>
    %164 = arith.cmpi eq, %29, %163 : vector<64x64xi32>
    %165 = arith.mulf %61, %150 : vector<1x64xf32>
    %166 = arith.mulf %165, %154 : vector<1x64xf32>
    %cst_57 = arith.constant 0.000000e+00 : f32
    %167 = vector.shape_cast %166 : vector<1x64xf32> to vector<1x64xf32>
    %168 = vector.broadcast %167 : vector<1x64xf32> to vector<64x64xf32>
    %169 = vector.broadcast %cst_57 : f32 to vector<64x64xf32>
    %170 = arith.select %164, %168, %169 : vector<64x64xi1>, vector<64x64xf32>
    %171 = arith.addf %146, %170 : vector<64x64xf32>
    %c16_i32_58 = arith.constant 16 : i32
    %172 = vector.broadcast %c16_i32_58 : i32 to vector<1x64xi32>
    %173 = arith.muli %148, %172 : vector<1x64xi32>
    %c4_i32_59 = arith.constant 4 : i32
    %174 = vector.broadcast %c4_i32_59 : i32 to vector<1x64xi32>
    %175 = arith.muli %152, %174 : vector<1x64xi32>
    %176 = arith.addi %173, %175 : vector<1x64xi32>
    %c1_i32_60 = arith.constant 1 : i32
    %177 = vector.broadcast %c1_i32_60 : i32 to vector<1x64xi32>
    %178 = arith.addi %60, %177 : vector<1x64xi32>
    %179 = arith.addi %176, %178 : vector<1x64xi32>
    %180 = vector.broadcast %179 : vector<1x64xi32> to vector<64x64xi32>
    %181 = arith.cmpi eq, %29, %180 : vector<64x64xi32>
    %182 = arith.mulf %61, %150 : vector<1x64xf32>
    %183 = arith.mulf %182, %63 : vector<1x64xf32>
    %cst_61 = arith.constant 0.000000e+00 : f32
    %184 = vector.shape_cast %183 : vector<1x64xf32> to vector<1x64xf32>
    %185 = vector.broadcast %184 : vector<1x64xf32> to vector<64x64xf32>
    %186 = vector.broadcast %cst_61 : f32 to vector<64x64xf32>
    %187 = arith.select %181, %185, %186 : vector<64x64xi1>, vector<64x64xf32>
    %188 = arith.addf %171, %187 : vector<64x64xf32>
    %c1_i32_62 = arith.constant 1 : i32
    %189 = vector.broadcast %c1_i32_62 : i32 to vector<1x64xi32>
    %190 = arith.addi %59, %189 : vector<1x64xi32>
    %cst_63 = arith.constant 1.000000e+00 : f32
    %191 = vector.broadcast %cst_63 : f32 to vector<1x64xf32>
    %192 = arith.subf %191, %63 : vector<1x64xf32>
    %c16_i32_64 = arith.constant 16 : i32
    %193 = vector.broadcast %c16_i32_64 : i32 to vector<1x64xi32>
    %194 = arith.muli %148, %193 : vector<1x64xi32>
    %c4_i32_65 = arith.constant 4 : i32
    %195 = vector.broadcast %c4_i32_65 : i32 to vector<1x64xi32>
    %196 = arith.muli %190, %195 : vector<1x64xi32>
    %197 = arith.addi %194, %196 : vector<1x64xi32>
    %c0_i32_66 = arith.constant 0 : i32
    %198 = vector.broadcast %c0_i32_66 : i32 to vector<1x64xi32>
    %199 = arith.addi %60, %198 : vector<1x64xi32>
    %200 = arith.addi %197, %199 : vector<1x64xi32>
    %201 = vector.broadcast %200 : vector<1x64xi32> to vector<64x64xi32>
    %202 = arith.cmpi eq, %29, %201 : vector<64x64xi32>
    %203 = arith.mulf %61, %62 : vector<1x64xf32>
    %204 = arith.mulf %203, %192 : vector<1x64xf32>
    %cst_67 = arith.constant 0.000000e+00 : f32
    %205 = vector.shape_cast %204 : vector<1x64xf32> to vector<1x64xf32>
    %206 = vector.broadcast %205 : vector<1x64xf32> to vector<64x64xf32>
    %207 = vector.broadcast %cst_67 : f32 to vector<64x64xf32>
    %208 = arith.select %202, %206, %207 : vector<64x64xi1>, vector<64x64xf32>
    %209 = arith.addf %188, %208 : vector<64x64xf32>
    %c16_i32_68 = arith.constant 16 : i32
    %210 = vector.broadcast %c16_i32_68 : i32 to vector<1x64xi32>
    %211 = arith.muli %148, %210 : vector<1x64xi32>
    %c4_i32_69 = arith.constant 4 : i32
    %212 = vector.broadcast %c4_i32_69 : i32 to vector<1x64xi32>
    %213 = arith.muli %190, %212 : vector<1x64xi32>
    %214 = arith.addi %211, %213 : vector<1x64xi32>
    %c1_i32_70 = arith.constant 1 : i32
    %215 = vector.broadcast %c1_i32_70 : i32 to vector<1x64xi32>
    %216 = arith.addi %60, %215 : vector<1x64xi32>
    %217 = arith.addi %214, %216 : vector<1x64xi32>
    %218 = vector.broadcast %217 : vector<1x64xi32> to vector<64x64xi32>
    %219 = arith.cmpi eq, %29, %218 : vector<64x64xi32>
    %220 = arith.mulf %61, %62 : vector<1x64xf32>
    %221 = arith.mulf %220, %63 : vector<1x64xf32>
    %cst_71 = arith.constant 0.000000e+00 : f32
    %222 = vector.shape_cast %221 : vector<1x64xf32> to vector<1x64xf32>
    %223 = vector.broadcast %222 : vector<1x64xf32> to vector<64x64xf32>
    %224 = vector.broadcast %cst_71 : f32 to vector<64x64xf32>
    %225 = arith.select %219, %223, %224 : vector<64x64xi1>, vector<64x64xf32>
    %226 = arith.addf %209, %225 : vector<64x64xf32>
    %cst_72 = arith.constant dense<0.000000e+00> : vector<3x64xf32>
    %227 = tpu.matmul %35, %226, %cst_72 {dimension_numbers = #tpu.dot_dimension_numbers<[1], [0], [0], [1], [0, 0, 1, 1], [], []>} : vector<3x64xf32>, vector<64x64xf32>, vector<3x64xf32> -> vector<3x64xf32>
    %228 = arith.addf %37, %227 : vector<3x64xf32>
    %c0_73 = arith.constant 0 : index
    %c0_74 = arith.constant 0 : index
    %c0_75 = arith.constant 0 : index
    %229 = vector.load %arg7[%c0_73, %c0_74, %c0_75] : memref<2x3x64xf32, #tpu.memory_space<vmem>>, vector<1x3x64xf32>
    %230 = vector.shape_cast %229 : vector<1x3x64xf32> to vector<3x64xf32>
    %231 = vector.shape_cast %228 : vector<3x64xf32> to vector<1x3x64xf32>
    tpu.vector_store %arg7[%c0_73, %c0_74, %c0_75], %231 {strides = array<i32>} : memref<2x3x64xf32, #tpu.memory_space<vmem>>, vector<1x3x64xf32>,
    %c0_76 = arith.constant 0 : index
    %c0_77 = arith.constant 0 : index
    %232 = vector.load %arg2[%c0_76, %c0_77] : memref<3x64xf32, #tpu.memory_space<vmem>>, vector<3x64xf32>
    %233 = vector.extract_strided_slice %28 {offsets = [1, 0], sizes = [1, 64], strides = [1, 1]} : vector<2x192xf32> to vector<1x64xf32>
    %234 = vector.extract_strided_slice %28 {offsets = [1, 64], sizes = [1, 64], strides = [1, 1]} : vector<2x192xf32> to vector<1x64xf32>
    %235 = vector.extract_strided_slice %28 {offsets = [1, 128], sizes = [1, 64], strides = [1, 1]} : vector<2x192xf32> to vector<1x64xf32>
    %236 = tpu.concatenate %233, %234, %235 in 0 : vector<1x64xf32>, vector<1x64xf32>, vector<1x64xf32> -> vector<3x64xf32>
    %237 = arith.addf %232, %236 : vector<3x64xf32>
    %c1_78 = arith.constant 1 : index
    %c0_79 = arith.constant 0 : index
    %c0_80 = arith.constant 0 : index
    %238 = vector.load %arg1[%c1_78, %c0_79, %c0_80] : memref<2x3x64xf32, #tpu.memory_space<vmem>>, vector<1x3x64xf32>
    %239 = vector.shape_cast %238 : vector<1x3x64xf32> to vector<3x64xf32>
    %cst_81 = arith.constant dense<0x7F800000> : vector<3xf32>
    %240 = vector.multi_reduction <minimumf>, %239, %cst_81 [1] : vector<3x64xf32> to vector<3xf32>
    %241 = vector.shape_cast %240 : vector<3xf32> to vector<3x1xf32>
    %cst_82 = arith.constant dense<0xFF800000> : vector<3xf32>
    %242 = vector.multi_reduction <maximumf>, %239, %cst_82 [1] : vector<3x64xf32> to vector<3xf32>
    %243 = vector.shape_cast %242 : vector<3xf32> to vector<3x1xf32>
    %244 = vector.broadcast %241 : vector<3x1xf32> to vector<3x64xf32>
    %245 = arith.subf %239, %244 : vector<3x64xf32>
    %246 = arith.subf %243, %241 : vector<3x1xf32>
    %cst_83 = arith.constant 9.99999997E-7 : f32
    %247 = vector.broadcast %cst_83 : f32 to vector<3x1xf32>
    %248 = arith.addf %246, %247 : vector<3x1xf32>
    %249 = vector.broadcast %248 : vector<3x1xf32> to vector<3x64xf32>
    %250 = arith.divf %245, %249 : vector<3x64xf32>
    %cst_84 = arith.constant 3.000000e+00 : f32
    %251 = vector.broadcast %cst_84 : f32 to vector<3x64xf32>
    %252 = arith.mulf %250, %251 : vector<3x64xf32>
    %253 = arith.fptosi %252 : vector<3x64xf32> to vector<3x64xi32>
    %c0_i32_85 = arith.constant 0 : i32
    %c2_i32_86 = arith.constant 2 : i32
    %254 = vector.broadcast %c0_i32_85 : i32 to vector<3x64xi32>
    %255 = arith.maxsi %254, %253 : vector<3x64xi32>
    %256 = vector.broadcast %c2_i32_86 : i32 to vector<3x64xi32>
    %257 = arith.minsi %256, %255 : vector<3x64xi32>
    %258 = arith.sitofp %257 : vector<3x64xi32> to vector<3x64xf32>
    %259 = arith.subf %252, %258 : vector<3x64xf32>
    %260 = vector.extract_strided_slice %257 {offsets = [0, 0], sizes = [1, 64], strides = [1, 1]} : vector<3x64xi32> to vector<1x64xi32>
    %261 = vector.extract_strided_slice %257 {offsets = [1, 0], sizes = [1, 64], strides = [1, 1]} : vector<3x64xi32> to vector<1x64xi32>
    %262 = vector.extract_strided_slice %257 {offsets = [2, 0], sizes = [1, 64], strides = [1, 1]} : vector<3x64xi32> to vector<1x64xi32>
    %263 = vector.extract_strided_slice %259 {offsets = [0, 0], sizes = [1, 64], strides = [1, 1]} : vector<3x64xf32> to vector<1x64xf32>
    %264 = vector.extract_strided_slice %259 {offsets = [1, 0], sizes = [1, 64], strides = [1, 1]} : vector<3x64xf32> to vector<1x64xf32>
    %265 = vector.extract_strided_slice %259 {offsets = [2, 0], sizes = [1, 64], strides = [1, 1]} : vector<3x64xf32> to vector<1x64xf32>
    %cst_87 = arith.constant 0.000000e+00 : f32
    %266 = vector.broadcast %cst_87 : f32 to vector<64x64xf32>
    %cst_88 = arith.constant 1.000000e+00 : f32
    %267 = vector.broadcast %cst_88 : f32 to vector<1x64xf32>
    %268 = arith.subf %267, %263 : vector<1x64xf32>
    %c0_i32_89 = arith.constant 0 : i32
    %269 = vector.broadcast %c0_i32_89 : i32 to vector<1x64xi32>
    %270 = arith.addi %260, %269 : vector<1x64xi32>
    %cst_90 = arith.constant 1.000000e+00 : f32
    %271 = vector.broadcast %cst_90 : f32 to vector<1x64xf32>
    %272 = arith.subf %271, %264 : vector<1x64xf32>
    %c0_i32_91 = arith.constant 0 : i32
    %273 = vector.broadcast %c0_i32_91 : i32 to vector<1x64xi32>
    %274 = arith.addi %261, %273 : vector<1x64xi32>
    %cst_92 = arith.constant 1.000000e+00 : f32
    %275 = vector.broadcast %cst_92 : f32 to vector<1x64xf32>
    %276 = arith.subf %275, %265 : vector<1x64xf32>
    %c16_i32_93 = arith.constant 16 : i32
    %277 = vector.broadcast %c16_i32_93 : i32 to vector<1x64xi32>
    %278 = arith.muli %270, %277 : vector<1x64xi32>
    %c4_i32_94 = arith.constant 4 : i32
    %279 = vector.broadcast %c4_i32_94 : i32 to vector<1x64xi32>
    %280 = arith.muli %274, %279 : vector<1x64xi32>
    %281 = arith.addi %278, %280 : vector<1x64xi32>
    %c0_i32_95 = arith.constant 0 : i32
    %282 = vector.broadcast %c0_i32_95 : i32 to vector<1x64xi32>
    %283 = arith.addi %262, %282 : vector<1x64xi32>
    %284 = arith.addi %281, %283 : vector<1x64xi32>
    %285 = vector.broadcast %284 : vector<1x64xi32> to vector<64x64xi32>
    %286 = arith.cmpi eq, %29, %285 : vector<64x64xi32>
    %287 = arith.mulf %268, %272 : vector<1x64xf32>
    %288 = arith.mulf %287, %276 : vector<1x64xf32>
    %cst_96 = arith.constant 0.000000e+00 : f32
    %289 = vector.shape_cast %288 : vector<1x64xf32> to vector<1x64xf32>
    %290 = vector.broadcast %289 : vector<1x64xf32> to vector<64x64xf32>
    %291 = vector.broadcast %cst_96 : f32 to vector<64x64xf32>
    %292 = arith.select %286, %290, %291 : vector<64x64xi1>, vector<64x64xf32>
    %293 = arith.addf %266, %292 : vector<64x64xf32>
    %c16_i32_97 = arith.constant 16 : i32
    %294 = vector.broadcast %c16_i32_97 : i32 to vector<1x64xi32>
    %295 = arith.muli %270, %294 : vector<1x64xi32>
    %c4_i32_98 = arith.constant 4 : i32
    %296 = vector.broadcast %c4_i32_98 : i32 to vector<1x64xi32>
    %297 = arith.muli %274, %296 : vector<1x64xi32>
    %298 = arith.addi %295, %297 : vector<1x64xi32>
    %c1_i32_99 = arith.constant 1 : i32
    %299 = vector.broadcast %c1_i32_99 : i32 to vector<1x64xi32>
    %300 = arith.addi %262, %299 : vector<1x64xi32>
    %301 = arith.addi %298, %300 : vector<1x64xi32>
    %302 = vector.broadcast %301 : vector<1x64xi32> to vector<64x64xi32>
    %303 = arith.cmpi eq, %29, %302 : vector<64x64xi32>
    %304 = arith.mulf %268, %272 : vector<1x64xf32>
    %305 = arith.mulf %304, %265 : vector<1x64xf32>
    %cst_100 = arith.constant 0.000000e+00 : f32
    %306 = vector.shape_cast %305 : vector<1x64xf32> to vector<1x64xf32>
    %307 = vector.broadcast %306 : vector<1x64xf32> to vector<64x64xf32>
    %308 = vector.broadcast %cst_100 : f32 to vector<64x64xf32>
    %309 = arith.select %303, %307, %308 : vector<64x64xi1>, vector<64x64xf32>
    %310 = arith.addf %293, %309 : vector<64x64xf32>
    %c1_i32_101 = arith.constant 1 : i32
    %311 = vector.broadcast %c1_i32_101 : i32 to vector<1x64xi32>
    %312 = arith.addi %261, %311 : vector<1x64xi32>
    %cst_102 = arith.constant 1.000000e+00 : f32
    %313 = vector.broadcast %cst_102 : f32 to vector<1x64xf32>
    %314 = arith.subf %313, %265 : vector<1x64xf32>
    %c16_i32_103 = arith.constant 16 : i32
    %315 = vector.broadcast %c16_i32_103 : i32 to vector<1x64xi32>
    %316 = arith.muli %270, %315 : vector<1x64xi32>
    %c4_i32_104 = arith.constant 4 : i32
    %317 = vector.broadcast %c4_i32_104 : i32 to vector<1x64xi32>
    %318 = arith.muli %312, %317 : vector<1x64xi32>
    %319 = arith.addi %316, %318 : vector<1x64xi32>
    %c0_i32_105 = arith.constant 0 : i32
    %320 = vector.broadcast %c0_i32_105 : i32 to vector<1x64xi32>
    %321 = arith.addi %262, %320 : vector<1x64xi32>
    %322 = arith.addi %319, %321 : vector<1x64xi32>
    %323 = vector.broadcast %322 : vector<1x64xi32> to vector<64x64xi32>
    %324 = arith.cmpi eq, %29, %323 : vector<64x64xi32>
    %325 = arith.mulf %268, %264 : vector<1x64xf32>
    %326 = arith.mulf %325, %314 : vector<1x64xf32>
    %cst_106 = arith.constant 0.000000e+00 : f32
    %327 = vector.shape_cast %326 : vector<1x64xf32> to vector<1x64xf32>
    %328 = vector.broadcast %327 : vector<1x64xf32> to vector<64x64xf32>
    %329 = vector.broadcast %cst_106 : f32 to vector<64x64xf32>
    %330 = arith.select %324, %328, %329 : vector<64x64xi1>, vector<64x64xf32>
    %331 = arith.addf %310, %330 : vector<64x64xf32>
    %c16_i32_107 = arith.constant 16 : i32
    %332 = vector.broadcast %c16_i32_107 : i32 to vector<1x64xi32>
    %333 = arith.muli %270, %332 : vector<1x64xi32>
    %c4_i32_108 = arith.constant 4 : i32
    %334 = vector.broadcast %c4_i32_108 : i32 to vector<1x64xi32>
    %335 = arith.muli %312, %334 : vector<1x64xi32>
    %336 = arith.addi %333, %335 : vector<1x64xi32>
    %c1_i32_109 = arith.constant 1 : i32
    %337 = vector.broadcast %c1_i32_109 : i32 to vector<1x64xi32>
    %338 = arith.addi %262, %337 : vector<1x64xi32>
    %339 = arith.addi %336, %338 : vector<1x64xi32>
    %340 = vector.broadcast %339 : vector<1x64xi32> to vector<64x64xi32>
    %341 = arith.cmpi eq, %29, %340 : vector<64x64xi32>
    %342 = arith.mulf %268, %264 : vector<1x64xf32>
    %343 = arith.mulf %342, %265 : vector<1x64xf32>
    %cst_110 = arith.constant 0.000000e+00 : f32
    %344 = vector.shape_cast %343 : vector<1x64xf32> to vector<1x64xf32>
    %345 = vector.broadcast %344 : vector<1x64xf32> to vector<64x64xf32>
    %346 = vector.broadcast %cst_110 : f32 to vector<64x64xf32>
    %347 = arith.select %341, %345, %346 : vector<64x64xi1>, vector<64x64xf32>
    %348 = arith.addf %331, %347 : vector<64x64xf32>
    %c1_i32_111 = arith.constant 1 : i32
    %349 = vector.broadcast %c1_i32_111 : i32 to vector<1x64xi32>
    %350 = arith.addi %260, %349 : vector<1x64xi32>
    %cst_112 = arith.constant 1.000000e+00 : f32
    %351 = vector.broadcast %cst_112 : f32 to vector<1x64xf32>
    %352 = arith.subf %351, %264 : vector<1x64xf32>
    %c0_i32_113 = arith.constant 0 : i32
    %353 = vector.broadcast %c0_i32_113 : i32 to vector<1x64xi32>
    %354 = arith.addi %261, %353 : vector<1x64xi32>
    %cst_114 = arith.constant 1.000000e+00 : f32
    %355 = vector.broadcast %cst_114 : f32 to vector<1x64xf32>
    %356 = arith.subf %355, %265 : vector<1x64xf32>
    %c16_i32_115 = arith.constant 16 : i32
    %357 = vector.broadcast %c16_i32_115 : i32 to vector<1x64xi32>
    %358 = arith.muli %350, %357 : vector<1x64xi32>
    %c4_i32_116 = arith.constant 4 : i32
    %359 = vector.broadcast %c4_i32_116 : i32 to vector<1x64xi32>
    %360 = arith.muli %354, %359 : vector<1x64xi32>
    %361 = arith.addi %358, %360 : vector<1x64xi32>
    %c0_i32_117 = arith.constant 0 : i32
    %362 = vector.broadcast %c0_i32_117 : i32 to vector<1x64xi32>
    %363 = arith.addi %262, %362 : vector<1x64xi32>
    %364 = arith.addi %361, %363 : vector<1x64xi32>
    %365 = vector.broadcast %364 : vector<1x64xi32> to vector<64x64xi32>
    %366 = arith.cmpi eq, %29, %365 : vector<64x64xi32>
    %367 = arith.mulf %263, %352 : vector<1x64xf32>
    %368 = arith.mulf %367, %356 : vector<1x64xf32>
    %cst_118 = arith.constant 0.000000e+00 : f32
    %369 = vector.shape_cast %368 : vector<1x64xf32> to vector<1x64xf32>
    %370 = vector.broadcast %369 : vector<1x64xf32> to vector<64x64xf32>
    %371 = vector.broadcast %cst_118 : f32 to vector<64x64xf32>
    %372 = arith.select %366, %370, %371 : vector<64x64xi1>, vector<64x64xf32>
    %373 = arith.addf %348, %372 : vector<64x64xf32>
    %c16_i32_119 = arith.constant 16 : i32
    %374 = vector.broadcast %c16_i32_119 : i32 to vector<1x64xi32>
    %375 = arith.muli %350, %374 : vector<1x64xi32>
    %c4_i32_120 = arith.constant 4 : i32
    %376 = vector.broadcast %c4_i32_120 : i32 to vector<1x64xi32>
    %377 = arith.muli %354, %376 : vector<1x64xi32>
    %378 = arith.addi %375, %377 : vector<1x64xi32>
    %c1_i32_121 = arith.constant 1 : i32
    %379 = vector.broadcast %c1_i32_121 : i32 to vector<1x64xi32>
    %380 = arith.addi %262, %379 : vector<1x64xi32>
    %381 = arith.addi %378, %380 : vector<1x64xi32>
    %382 = vector.broadcast %381 : vector<1x64xi32> to vector<64x64xi32>
    %383 = arith.cmpi eq, %29, %382 : vector<64x64xi32>
    %384 = arith.mulf %263, %352 : vector<1x64xf32>
    %385 = arith.mulf %384, %265 : vector<1x64xf32>
    %cst_122 = arith.constant 0.000000e+00 : f32
    %386 = vector.shape_cast %385 : vector<1x64xf32> to vector<1x64xf32>
    %387 = vector.broadcast %386 : vector<1x64xf32> to vector<64x64xf32>
    %388 = vector.broadcast %cst_122 : f32 to vector<64x64xf32>
    %389 = arith.select %383, %387, %388 : vector<64x64xi1>, vector<64x64xf32>
    %390 = arith.addf %373, %389 : vector<64x64xf32>
    %c1_i32_123 = arith.constant 1 : i32
    %391 = vector.broadcast %c1_i32_123 : i32 to vector<1x64xi32>
    %392 = arith.addi %261, %391 : vector<1x64xi32>
    %cst_124 = arith.constant 1.000000e+00 : f32
    %393 = vector.broadcast %cst_124 : f32 to vector<1x64xf32>
    %394 = arith.subf %393, %265 : vector<1x64xf32>
    %c16_i32_125 = arith.constant 16 : i32
    %395 = vector.broadcast %c16_i32_125 : i32 to vector<1x64xi32>
    %396 = arith.muli %350, %395 : vector<1x64xi32>
    %c4_i32_126 = arith.constant 4 : i32
    %397 = vector.broadcast %c4_i32_126 : i32 to vector<1x64xi32>
    %398 = arith.muli %392, %397 : vector<1x64xi32>
    %399 = arith.addi %396, %398 : vector<1x64xi32>
    %c0_i32_127 = arith.constant 0 : i32
    %400 = vector.broadcast %c0_i32_127 : i32 to vector<1x64xi32>
    %401 = arith.addi %262, %400 : vector<1x64xi32>
    %402 = arith.addi %399, %401 : vector<1x64xi32>
    %403 = vector.broadcast %402 : vector<1x64xi32> to vector<64x64xi32>
    %404 = arith.cmpi eq, %29, %403 : vector<64x64xi32>
    %405 = arith.mulf %263, %264 : vector<1x64xf32>
    %406 = arith.mulf %405, %394 : vector<1x64xf32>
    %cst_128 = arith.constant 0.000000e+00 : f32
    %407 = vector.shape_cast %406 : vector<1x64xf32> to vector<1x64xf32>
    %408 = vector.broadcast %407 : vector<1x64xf32> to vector<64x64xf32>
    %409 = vector.broadcast %cst_128 : f32 to vector<64x64xf32>
    %410 = arith.select %404, %408, %409 : vector<64x64xi1>, vector<64x64xf32>
    %411 = arith.addf %390, %410 : vector<64x64xf32>
    %c16_i32_129 = arith.constant 16 : i32
    %412 = vector.broadcast %c16_i32_129 : i32 to vector<1x64xi32>
    %413 = arith.muli %350, %412 : vector<1x64xi32>
    %c4_i32_130 = arith.constant 4 : i32
    %414 = vector.broadcast %c4_i32_130 : i32 to vector<1x64xi32>
    %415 = arith.muli %392, %414 : vector<1x64xi32>
    %416 = arith.addi %413, %415 : vector<1x64xi32>
    %c1_i32_131 = arith.constant 1 : i32
    %417 = vector.broadcast %c1_i32_131 : i32 to vector<1x64xi32>
    %418 = arith.addi %262, %417 : vector<1x64xi32>
    %419 = arith.addi %416, %418 : vector<1x64xi32>
    %420 = vector.broadcast %419 : vector<1x64xi32> to vector<64x64xi32>
    %421 = arith.cmpi eq, %29, %420 : vector<64x64xi32>
    %422 = arith.mulf %263, %264 : vector<1x64xf32>
    %423 = arith.mulf %422, %265 : vector<1x64xf32>
    %cst_132 = arith.constant 0.000000e+00 : f32
    %424 = vector.shape_cast %423 : vector<1x64xf32> to vector<1x64xf32>
    %425 = vector.broadcast %424 : vector<1x64xf32> to vector<64x64xf32>
    %426 = vector.broadcast %cst_132 : f32 to vector<64x64xf32>
    %427 = arith.select %421, %425, %426 : vector<64x64xi1>, vector<64x64xf32>
    %428 = arith.addf %411, %427 : vector<64x64xf32>
    %cst_133 = arith.constant dense<0.000000e+00> : vector<3x64xf32>
    %429 = tpu.matmul %237, %428, %cst_133 {dimension_numbers = #tpu.dot_dimension_numbers<[1], [0], [0], [1], [0, 0, 1, 1], [], []>} : vector<3x64xf32>, vector<64x64xf32>, vector<3x64xf32> -> vector<3x64xf32>
    %430 = arith.addf %239, %429 : vector<3x64xf32>
    %c1_134 = arith.constant 1 : index
    %c0_135 = arith.constant 0 : index
    %c0_136 = arith.constant 0 : index
    %431 = vector.load %arg7[%c1_134, %c0_135, %c0_136] : memref<2x3x64xf32, #tpu.memory_space<vmem>>, vector<1x3x64xf32>
    %432 = vector.shape_cast %431 : vector<1x3x64xf32> to vector<3x64xf32>
    %433 = vector.shape_cast %430 : vector<3x64xf32> to vector<1x3x64xf32>
    tpu.vector_store %arg7[%c1_134, %c0_135, %c0_136], %433 {strides = array<i32>} : memref<2x3x64xf32, #tpu.memory_space<vmem>>, vector<1x3x64xf32>,
    return
  }
}

</mosaic_0001>

<bundles_post_ra>
// kernel: keypoint_deformer_forward.3
= control target key start
LH: loop header
LB: loop body
LE: loop exit
PB: predicated region body
PF: predicated region fallthrough
CT: control target
= control target key end

     0   :  { %v1374_v0 = vmov 0.0   ;;  %vm38_vm0 = vcmask 64512   ;;  %vm1375_vm1 = vmmov 0   ;;  %vm408_vm2 = vcmask 518144   ;;  %s1377_s14 = smov 64   ;;  %s2162_s3 = inlined_call_operand.vmem [shape: f32[24,128], index: 3, kind: input, shape index: {}]   ;;  %s2163_s0 = inlined_call_operand.vmem [shape: f32[2,3,2,8], index: 0, kind: input, shape index: {}]   ;;  %s2164_s5 = inlined_call_operand.vmem [shape: f32[128,192], index: 5, kind: input, shape index: {}]   ;;  %s2165_s1 = inlined_call_operand.vmem [shape: f32[2,3,64], index: 1, kind: input, shape index: {}]   ;;  %s2166_s4 = inlined_call_operand.vmem [shape: f32[1,128], index: 4, kind: input, shape index: {}]   ;;  %s2167_s6 = inlined_call_operand.vmem [shape: f32[1,192], index: 6, kind: input, shape index: {}]   ;;  %s2168_s2 = inlined_call_operand.vmem [shape: f32[3,64], index: 2, kind: input, shape index: {}]   ;;  %s2169_s7 = inlined_call_operand.vmem [shape: f32[2,3,64], index: 7, kind: output, shape index: {}]  }
   0x1   :  { %1251 = vmatprep.subr.mxu0 %v1374_v0  ;;  %v37_v1 = vld [vmem:[%s2162_s3 + $0x8] sm:$0xff]  ;;  %1256 = vmatprep.subr.mxu1 %v1374_v0  ;;  %v36_v2 = vld [vmem:[%s2162_s3] sm:$0xff]  ;;  %v185_v9 = vld [vmem:[%s2162_s3 + $0x10] sm:$0xff] }
   0x2   :  { %v1217_v3 = vld [vmem:[%s2163_s0 + $0x8] sm:$0x3]  ;;  %1252 = vmatpush3.msra.mxu0 %v37_v1  ;;  %1253 = vmatprep.mubr.msk.f32.mxu0 %vm1375_vm1, %v1374_v0  ;;  %v31_v4 = vld [vmem:[%s2163_s0 + $0x2] sm:$0x3]  ;;  %v1216_v5 = vld [vmem:[%s2163_s0 + $0x6] sm:$0x3] }
   0x3   :  { %v30_v6 = vld [vmem:[%s2163_s0] sm:$0x3]  ;;  %1257 = vmatpush3.msra.mxu1 %v36_v2  ;;  %1258 = vmatprep.mubr.msk.f32.mxu1 %vm1375_vm1, %v1374_v0  ;;  %v34_v7 = vsub.f32 %v1217_v3, %v31_v4  ;;  %v1218_v10 = vld [vmem:[%s2163_s0 + $0xa] sm:$0x3]  ;;  %v32_v11 = vld [vmem:[%s2163_s0 + $0x4] sm:$0x3] }
   0x4   :  { %v33_v8 = vsub.f32 %v1216_v5, %v30_v6  ;;  %1261 = vmatprep.subr.mxu0 %v1374_v0  ;;  %v270_v12 = vld [vmem:[%s2164_s5 + $0x8] sm:$0xff]  ;;  %v272_v13 = vld [vmem:[%s2164_s5 + $0x18] sm:$0xff]  ;;  %v269_v14 = vld [vmem:[%s2164_s5] sm:$0xff]  ;;  %v35_v15 = vsub.f32 %v1218_v10, %v32_v11 }
   0x5   :  { %1254 = vmatmul.mubr.msk.f32.vlgmr.msra.gmra.mrb[0].mxu0 %vm38_vm0, %v34_v7  ;;  %v1304_v16 = vpack.c.bf16 %v272_v13, %v270_v12  ;;  %v271_v17 = vld [vmem:[%s2164_s5 + $0x10] sm:$0xff]  ;;  %v274_v18 = vld [vmem:[%s2164_s5 + $0x28] sm:$0xff]  ;;  %v276_v19 = vld [vmem:[%s2164_s5 + $0x38] sm:$0xff] }
   0x6   :  { %1259 = vmatmul.mubr.msk.f32.vlgmr.msra.gmra.mrb[0].mxu1 %vm38_vm0, %v33_v8  ;;  %1262 = vmatpush3.msra.mxu0 %v185_v9  ;;  %v1306_v20 = vpack.c.bf16 %v271_v17, %v269_v14  ;;  %v1308_v21 = vpack.c.bf16 %v276_v19, %v274_v18  ;;  %v273_v22 = vld [vmem:[%s2164_s5 + $0x20] sm:$0xff]  ;;  %v275_v23 = vld [vmem:[%s2164_s5 + $0x30] sm:$0xff]  ;;  %v278_v24 = vld [vmem:[%s2164_s5 + $0x48] sm:$0xff] }
   0x7   :  { %1263 = vmatprep.mubr.msk.f32.mxu0 %vm1375_vm1, %v1374_v0  ;;  %1305 = vmatprep.subr.bf16.mxu1 %v1304_v16  ;;  %v280_v25 = vld [vmem:[%s2164_s5 + $0x58] sm:$0xff]  ;;  %v1310_v26 = vpack.c.bf16 %v275_v23, %v273_v22  ;;  %v277_v28 = vld [vmem:[%s2164_s5 + $0x40] sm:$0xff]  ;;  %v279_v29 = vld [vmem:[%s2164_s5 + $0x50] sm:$0xff] }
   0x8   :  { %377 = vmatprep.mubr.f32.mxu1 %v1374_v0  ;;  %1307 = vmatpush1.bf16.msra.mxu1 %v1306_v20  ;;  %v1312_v27 = vpack.c.bf16 %v280_v25, %v278_v24  ;;  %v282_v30 = vld [vmem:[%s2164_s5 + $0x68] sm:$0xff]  ;;  %v284_v31 = vld [vmem:[%s2164_s5 + $0x78] sm:$0xff]  ;;  %v1314_v32 = vpack.c.bf16 %v279_v29, %v277_v28  ;;  %v281_v34 = vld [vmem:[%s2164_s5 + $0x60] sm:$0xff] }
   0x9   :  { %1264 = vmatmul.mubr.msk.f32.vlgmr.msra.gmra.mrb[2].mxu0 %vm38_vm0, %v35_v15  ;;  %1309 = vmatprep.subr.bf16.mxu1 %v1308_v21  ;;  %v1316_v33 = vpack.c.bf16 %v284_v31, %v282_v30  ;;  %v283_v35 = vld [vmem:[%s2164_s5 + $0x70] sm:$0xff]  ;;  %v286_v36 = vld [vmem:[%s2164_s5 + $0x88] sm:$0xff]  ;;  %v288_v37 = vld [vmem:[%s2164_s5 + $0x98] sm:$0xff] }
   0xa   :  { %1282 = vmatprep.mubr.msk.f32.mxu0 %vm1375_vm1, %v1374_v0  ;;  %v1318_v38 = vpack.c.bf16 %v283_v35, %v281_v34  ;;  %v1320_v39 = vpack.c.bf16 %v288_v37, %v286_v36  ;;  %v285_v40 = vld [vmem:[%s2164_s5 + $0x80] sm:$0xff]  ;;  %v287_v41 = vld [vmem:[%s2164_s5 + $0x90] sm:$0xff]  ;;  %v290_v42 = vld [vmem:[%s2164_s5 + $0xa8] sm:$0xff] }
   0xb   :  { %v292_v43 = vld [vmem:[%s2164_s5 + $0xb8] sm:$0xff]  ;;  %v1322_v44 = vpack.c.bf16 %v287_v41, %v285_v40  ;;  %v289_v46 = vld [vmem:[%s2164_s5 + $0xa0] sm:$0xff]  ;;  %v291_v47 = vld [vmem:[%s2164_s5 + $0xb0] sm:$0xff] }
   0xc   :  { %1311 = vmatpush1.bf16.msra.mxu1 %v1310_v26  ;;  %v1324_v45 = vpack.c.bf16 %v292_v43, %v290_v42  ;;  %v1326_v48 = vpack.c.bf16 %v291_v47, %v289_v46  ;;  %v294_v49 = vld [vmem:[%s2164_s5 + $0xc8] sm:$0xff]  ;;  %v296_v50 = vld [vmem:[%s2164_s5 + $0xd8] sm:$0xff]  ;;  %v293_v52 = vld [vmem:[%s2164_s5 + $0xc0] sm:$0xff] }
   0xd   :  { %1313 = vmatprep.subr.bf16.mxu1 %v1312_v27  ;;  %v1328_v51 = vpack.c.bf16 %v296_v50, %v294_v49  ;;  %v295_v53 = vld [vmem:[%s2164_s5 + $0xd0] sm:$0xff]  ;;  %v298_v55 = vld [vmem:[%s2164_s5 + $0xe8] sm:$0xff]  ;;  %v300_v56 = vld [vmem:[%s2164_s5 + $0xf8] sm:$0xff] }
   0xe   :  { %v1330_v54 = vpack.c.bf16 %v295_v53, %v293_v52  ;;  %v1332_v57 = vpack.c.bf16 %v300_v56, %v298_v55  ;;  %v297_v58 = vld [vmem:[%s2164_s5 + $0xe0] sm:$0xff]  ;;  %v299_v59 = vld [vmem:[%s2164_s5 + $0xf0] sm:$0xff] }
   0xf   :  { %v1334_v60 = vpack.c.bf16 %v299_v59, %v297_v58  ;;  %v407_v61 = vld [vmem:[%s2165_s1] sm:$0x7]  ;;  %v1562_v62 = vld [vmem:[%s2165_s1 + $0x4] sm:$0x7] }
  0x10   :  { %1315 = vmatpush1.bf16.msra.mxu1 %v1314_v32  ;;  %v409_v63 = vsel %vm408_vm2, %v407_v61, inf  ;;  %v817_v1 = vsel %vm408_vm2, %v1562_v62, inf  ;;  %v412_v2 = vsel %vm408_vm2, %v407_v61, -inf  ;;  %v820_v3 = vsel %vm408_vm2, %v1562_v62, -inf  ;;  %v1222_v10 = vld [vmem:[%s2166_s4] ss:$0 sm:$0xff] }
  0x11   :  { %1317 = vmatprep.subr.bf16.mxu1 %v1316_v33  ;;  %410 = vmin.xlane.f32.xlu0 %v409_v63  ;;  %v303_v33 = vlaneseq }
  0x12   :  { %818 = vmin.xlane.f32.xlu1 %v817_v1 }
  0x13   :  { %v1573_v40 = vshrl.u32 %v303_v33, 7 }
  0x14   :  { %1319 = vmatpush1.bf16.msra.mxu1 %v1318_v38 }
  0x15   :  { %1321 = vmatprep.subr.bf16.mxu1 %v1320_v39  ;;  %413 = vmax.xlane.f32.xlu0 %v412_v2 }
  0x16   :  { %821 = vmax.xlane.f32.xlu1 %v820_v3 }
  0x18   :  { %1323 = vmatpush1.bf16.msra.mxu1 %v1322_v44 }
  0x19   :  { %1325 = vmatprep.subr.bf16.mxu1 %v1324_v45 }
  0x1c   :  { %1327 = vmatpush1.bf16.msra.mxu1 %v1326_v48 }
  0x1d   :  { %1329 = vmatprep.subr.bf16.mxu1 %v1328_v51  ;;  %v1576_v51 = vsub.s32 0, %v1573_v40 }
  0x20   :  { %1331 = vmatpush1.bf16.msra.mxu1 %v1330_v54 }
  0x21   :  { %1333 = vmatprep.subr.bf16.mxu1 %v1332_v57 }
  0x24   :  { %1335 = vmatpush1.bf16.msra.mxu1 %v1334_v60 }
  0x9e   :  { %v411_v15 = vpop.xlane.xlu0 %410 }
  0x9f   :  { %v415_v19 = vsub.f32 %v407_v61, %v411_v15 }
  0xa2   :  { %v414_v16 = vpop.xlane.xlu0 %413 }
  0xa3   :  { %v416_v17 = vsub.f32 %v414_v16, %v411_v15 }
  0xa5   :  { %v417_v18 = vadd.f32 1e-06, %v416_v17 }
  0xa7   :  { %1368 = vrcp.f32 %v417_v18 }
  0xb1   :  { %v1369_v20 = vpop.eup %1368 }
  0xb2   :  { %v419_v21 = vmul.f32 %v1369_v20, %v415_v19 }
  0xb4   :  { %v420_v22 = vmul.f32 3.0, %v419_v21  ;;  %v1618_v21 = vadd.s32 8, %v1573_v40 }
  0xb6   :  { %v1360_v23 = vtrunc.f32 %v420_v22 }
  0xb8   :  { %v1361_v24 = vcvt.f32.s32 %v1360_v23  ;;  %v1376_v23 = vmov 0.0|0.0  }
  0xb9   :  { %1336 = vmatprep.subr.bf16.mxu0 %v1376_v23 }
  0xba   :  { %vm422_vm3 = vcmp.gt.s32.totalorder %v1361_v24, 0 }
  0xbb   :  { %v423_v25 = vsel %vm422_vm3, %v1361_v24, 0 }
  0xbc   :  { %vm424_vm4 = vcmp.lt.s32.totalorder %v423_v25, 2 }
  0xbd   :  { %v425_v26 = vsel %vm424_vm4, %v423_v25, 2 }
  0xbe   :  { %v426_v27 = vcvt.s32.f32 %v425_v26  ;;  %v474_v28 = vadd.s32 1, %v425_v26  ;;  %v430_v30 = vmul.u32 4, %v425_v26  ;;  %v429_v34 = vmul.u32 16, %v425_v26 }
  0xbf   :  { %v433_v41 = vrot.slane %v425_v26, 2 }
  0xc0   :  { %v427_v29 = vsub.f32 %v420_v22, %v426_v27  ;;  %v513_v31 = vmul.u32 4, %v474_v28  ;;  %v431_v35 = vrot.slane %v430_v30, 1  ;;  %v587_v37 = vmul.u32 16, %v474_v28  ;;  %v1638_v27 = vpop.xlane.xlu1 %818 }
  0xc1   :  { %v475_v43 = vrot.slane %v474_v28, 2 }
  0xc2   :  { %v428_v32 = vsub.f32 1.0, %v427_v29  ;;  %v514_v36 = vrot.slane %v513_v31, 1  ;;  %v529_v39 = vrot.slane %v427_v29, 1  ;;  %v432_v42 = vadd.s32 %v431_v35, %v429_v34 }
  0xc3   :  { %v588_v45 = vadd.s32 %v587_v37, %v431_v35  ;;  %v490_v48 = vrot.slane %v427_v29, 2 }
  0xc4   :  { %v448_v38 = vrot.slane %v428_v32, 1  ;;  %v515_v44 = vadd.s32 %v514_v36, %v429_v34  ;;  %v451_v47 = vrot.slane %v428_v32, 2  ;;  %v531_v49 = vmul.f32 %v529_v39, %v428_v32 }
  0xc5   :  { %v658_v52 = vadd.s32 %v587_v37, %v514_v36  ;;  %v434_v53 = vadd.s32 %v433_v41, %v432_v42  ;;  %v476_v54 = vadd.s32 %v475_v43, %v432_v42  ;;  %v589_v56 = vadd.s32 %v588_v45, %v433_v41 }
  0xc6   :  { %v450_v46 = vmul.f32 %v448_v38, %v428_v32  ;;  %v602_v50 = vmul.f32 %v448_v38, %v427_v29  ;;  %v516_v55 = vadd.s32 %v515_v44, %v433_v41  ;;  %v532_v59 = vmul.f32 %v531_v49, %v451_v47 }
  0xc7   :  { %v672_v60 = vmul.f32 %v529_v39, %v427_v29  ;;  %v553_v61 = vadd.s32 %v515_v44, %v475_v43  ;;  %v566_v63 = vmul.f32 %v531_v49, %v490_v48  ;;  %v624_v2 = vadd.s32 %v588_v45, %v475_v43 }
  0xc8   :  { %v453_v57 = vmul.f32 %v451_v47, %v450_v46  ;;  %v492_v58 = vmul.f32 %v490_v48, %v450_v46  ;;  %v603_v1 = vmul.f32 %v602_v50, %v451_v47  ;;  %v637_v3 = vmul.f32 %v602_v50, %v490_v48  ;;  %v822_v46 = vpop.xlane.xlu1 %821 }
  0xc9   :  { %v1609_v16 = vrot.slane %v624_v2, %v1576_v51  ;;  %v694_v19 = vadd.s32 %v658_v52, %v475_v43  ;;  %v707_v20 = vmul.f32 %v672_v60, %v490_v48 }
  0xca   :  { %v1606_v15 = vrot.slane %v603_v1, %v1576_v51  ;;  %v1612_v17 = vrot.slane %v637_v3, %v1576_v51 }
  0xcb   :  { %v1649_v34 = vrot.slane %v694_v19, %v1576_v51  ;;  %vm629_vm15 = vcmp.eq.s32.totalorder %v1573_v40, %v1609_v16  ;;  %vm630_vm0 = vcmp.eq.s32.totalorder %v1618_v21, %v1609_v16 }
  0xcc   :  { %v642_v45 = vsel %vm629_vm15, %v1612_v17, 0.0 }
  0xd8   :  { %v108_v4 = vpop.f32.mrb[0].mxu0 }
  0xd9   :  { %v181_v5 = vpop.f32.mrb[0].mxu1  ;;  %v1255_v7 = vpop.f32.mrb[1].mxu0 }
  0xda   :  { %v182_v6 = vadd.f32 %v181_v5, %v108_v4  ;;  %v1260_v8 = vpop.f32.mrb[1].mxu1  ;;  %v659_v4 = vadd.s32 %v658_v52, %v433_v41  ;;  %v1579_v5 = vrot.slane %v434_v53, %v1576_v51  ;;  %v1585_v7 = vrot.slane %v516_v55, %v1576_v51 }
  0xdb   :  { %v1588_v8 = vrot.slane %v589_v56, %v1576_v51  ;;  %v1659_v41 = vrot.slane %v707_v20, %v1576_v51  ;;  %v1683_v55 = vadd.s32 24, %v1573_v40  ;;  %v824_v56 = vsub.f32 %v822_v46, %v1638_v27 }
  0xdc   :  { %v255_v9 = vpop.f32.mrb[2].mxu0  ;;  %v1615_v18 = vrot.slane %v659_v4, %v1576_v51  ;;  %vm439_vm5 = vcmp.eq.s32.totalorder %v1573_v40, %v1579_v5  ;;  %vm521_vm7 = vcmp.eq.s32.totalorder %v1573_v40, %v1585_v7  ;;  %vm440_vm8 = vcmp.eq.s32.totalorder %v1618_v21, %v1579_v5 }
  0xdd   :  { %v259_v11 = vadd.f32 %v255_v9, %v182_v6  ;;  %v1265_v12 = vpop.f32.mrb[3].mxu0  ;;  %v1582_v6 = vrot.slane %v476_v54, %v1576_v51  ;;  %v1591_v9 = vrot.slane %v453_v57, %v1576_v51  ;;  %vm522_vm10 = vcmp.eq.s32.totalorder %v1618_v21, %v1585_v7 }
  0xde   :  { %v673_v12 = vmul.f32 %v672_v60, %v451_v47  ;;  %vm594_vm13 = vcmp.eq.s32.totalorder %v1573_v40, %v1588_v8  ;;  %vm595_vm14 = vcmp.eq.s32.totalorder %v1618_v21, %v1588_v8  ;;  %v643_v47 = vsel %vm630_vm0, %v1612_v17, 0.0 }
  0xdf   :  { %v267_v13 = vadd.f32 %v1222_v10, %v259_v11  ;;  %v1594_v10 = vrot.slane %v492_v58, %v1576_v51  ;;  %v1597_v11 = vrot.slane %v532_v59, %v1576_v51  ;;  %vm481_vm6 = vcmp.eq.s32.totalorder %v1573_v40, %v1582_v6 }
  0xe0   :  { %v1625_v22 = vrot.slane %v673_v12, %v1576_v51  ;;  %v458_v24 = vsel %vm439_vm5, %v1591_v9, 0.0  ;;  %vm482_vm9 = vcmp.eq.s32.totalorder %v1618_v21, %v1582_v6  ;;  %v459_v28 = vsel %vm440_vm8, %v1591_v9, 0.0 }
  0xe1   :  { %v268_v14 = vmax.f32 %v267_v13, 0.0  ;;  %v1600_v13 = vrot.slane %v553_v61, %v1576_v51  ;;  %v497_v25 = vsel %vm481_vm6, %v1594_v10, 0.0  ;;  %v498_v29 = vsel %vm482_vm9, %v1594_v10, 0.0 }
  0xe2   :  { %v505_v26 = vadd.f32 %v497_v25, %v458_v24  ;;  %v537_v30 = vsel %vm521_vm7, %v1597_v11, 0.0  ;;  %v538_v31 = vsel %vm522_vm10, %v1597_v11, 0.0  ;;  %v506_v32 = vadd.f32 %v498_v29, %v459_v28 }
  0xe3   :  { %378 = vmatmul.mubr.f32.vlgmr.msra.gmra.mrb[2].mxu1 %v268_v14  ;;  %v1603_v14 = vrot.slane %v566_v63, %v1576_v51  ;;  %vm558_vm11 = vcmp.eq.s32.totalorder %v1573_v40, %v1600_v13  ;;  %vm559_vm12 = vcmp.eq.s32.totalorder %v1618_v21, %v1600_v13  ;;  %v608_v39 = vsel %vm594_vm13, %v1606_v15, 0.0 }
  0xe4   :  { %v545_v33 = vadd.f32 %v537_v30, %v505_v26  ;;  %v546_v37 = vadd.f32 %v538_v31, %v506_v32  ;;  %v609_v42 = vsel %vm595_vm14, %v1606_v15, 0.0  ;;  %vm664_vm3 = vcmp.eq.s32.totalorder %v1573_v40, %v1615_v18 }
  0xe5   :  { %v571_v35 = vsel %vm558_vm11, %v1603_v14, 0.0  ;;  %v572_v36 = vsel %vm559_vm12, %v1603_v14, 0.0  ;;  %vm665_vm4 = vcmp.eq.s32.totalorder %v1618_v21, %v1615_v18  ;;  %vm699_vm5 = vcmp.eq.s32.totalorder %v1573_v40, %v1649_v34 }
  0xe6   :  { %v579_v38 = vadd.f32 %v571_v35, %v545_v33  ;;  %v580_v43 = vadd.f32 %v572_v36, %v546_v37  ;;  %v678_v50 = vsel %vm664_vm3, %v1625_v22, 0.0  ;;  %v679_v52 = vsel %vm665_vm4, %v1625_v22, 0.0 }
  0xe7   :  { %vm700_vm6 = vcmp.eq.s32.totalorder %v1618_v21, %v1649_v34  ;;  %v712_v53 = vsel %vm699_vm5, %v1659_v41, 0.0  ;;  %v1680_v54 = vadd.s32 16, %v1573_v40  ;;  %vm442_vm8 = vcmp.eq.s32.totalorder %v1683_v55, %v1579_v5 }
  0xe8   :  { %v616_v44 = vadd.f32 %v608_v39, %v579_v38  ;;  %v617_v48 = vadd.f32 %v609_v42, %v580_v43  ;;  %v713_v59 = vsel %vm700_vm6, %v1659_v41, 0.0  ;;  %vm484_vm10 = vcmp.eq.s32.totalorder %v1683_v55, %v1582_v6 }
  0xe9   :  { %vm441_vm7 = vcmp.eq.s32.totalorder %v1680_v54, %v1579_v5  ;;  %vm483_vm9 = vcmp.eq.s32.totalorder %v1680_v54, %v1582_v6  ;;  %v461_v1 = vsel %vm442_vm8, %v1591_v9, 0.0  ;;  %v500_v3 = vsel %vm484_vm10, %v1594_v10, 0.0 }
  0xea   :  { %v650_v49 = vadd.f32 %v642_v45, %v616_v44  ;;  %v651_v57 = vadd.f32 %v643_v47, %v617_v48  ;;  %v460_v63 = vsel %vm441_vm7, %v1591_v9, 0.0  ;;  %v499_v2 = vsel %vm483_vm9, %v1594_v10, 0.0 }
  0xeb   :  { %vm523_vm11 = vcmp.eq.s32.totalorder %v1680_v54, %v1585_v7  ;;  %vm524_vm12 = vcmp.eq.s32.totalorder %v1683_v55, %v1585_v7  ;;  %v507_v12 = vadd.f32 %v499_v2, %v460_v63  ;;  %v508_v19 = vadd.f32 %v500_v3, %v461_v1 }
  0xec   :  { %v686_v58 = vadd.f32 %v678_v50, %v650_v49  ;;  %v687_v60 = vadd.f32 %v679_v52, %v651_v57  ;;  %v539_v20 = vsel %vm523_vm11, %v1597_v11, 0.0  ;;  %v540_v24 = vsel %vm524_vm12, %v1597_v11, 0.0 }
  0xed   :  { %vm560_vm13 = vcmp.eq.s32.totalorder %v1680_v54, %v1600_v13  ;;  %vm561_vm14 = vcmp.eq.s32.totalorder %v1683_v55, %v1600_v13  ;;  %vm596_vm15 = vcmp.eq.s32.totalorder %v1680_v54, %v1588_v8  ;;  %v547_v26 = vadd.f32 %v539_v20, %v507_v12 }
  0xee   :  { %v720_v61 = vadd.f32 %v712_v53, %v686_v58  ;;  %v721_v4 = vadd.f32 %v713_v59, %v687_v60  ;;  %v548_v28 = vadd.f32 %v540_v24, %v508_v19  ;;  %v573_v29 = vsel %vm560_vm13, %v1603_v14, 0.0 }
  0xef   :  { %v574_v30 = vsel %vm561_vm14, %v1603_v14, 0.0  ;;  %vm597_vm0 = vcmp.eq.s32.totalorder %v1683_v55, %v1588_v8  ;;  %v610_v31 = vsel %vm596_vm15, %v1606_v15, 0.0  ;;  %vm631_vm3 = vcmp.eq.s32.totalorder %v1680_v54, %v1609_v16 }
  0xf0   :  { %v1337_v25 = vpack.c.bf16 %v721_v4, %v720_v61  ;;  %v581_v32 = vadd.f32 %v573_v29, %v547_v26  ;;  %v582_v33 = vadd.f32 %v574_v30, %v548_v28  ;;  %v611_v35 = vsel %vm597_vm0, %v1606_v15, 0.0 }
  0xf1   :  { %vm632_vm4 = vcmp.eq.s32.totalorder %v1683_v55, %v1609_v16  ;;  %v644_v36 = vsel %vm631_vm3, %v1612_v17, 0.0  ;;  %vm666_vm5 = vcmp.eq.s32.totalorder %v1680_v54, %v1615_v18  ;;  %vm667_vm6 = vcmp.eq.s32.totalorder %v1683_v55, %v1615_v18 }
  0xf2   :  { %1338 = vmatpush3.bf16.msra.mxu0 %v1337_v25  ;;  %v825_v37 = vadd.f32 1e-06, %v824_v56  ;;  %v618_v38 = vadd.f32 %v610_v31, %v581_v32  ;;  %v619_v39 = vadd.f32 %v611_v35, %v582_v33  ;;  %v645_v42 = vsel %vm632_vm4, %v1612_v17, 0.0 }
  0xf3   :  { %1339 = vmatprep.subr.bf16.mxu0 %v1376_v23  ;;  %v680_v43 = vsel %vm666_vm5, %v1625_v22, 0.0  ;;  %v681_v44 = vsel %vm667_vm6, %v1625_v22, 0.0  ;;  %vm701_vm7 = vcmp.eq.s32.totalorder %v1680_v54, %v1649_v34  ;;  %vm702_vm8 = vcmp.eq.s32.totalorder %v1683_v55, %v1649_v34 }
  0xf4   :  { %v652_v45 = vadd.f32 %v644_v36, %v618_v38  ;;  %v653_v46 = vadd.f32 %v645_v42, %v619_v39  ;;  %v1735_v47 = vadd.s32 32, %v1573_v40  ;;  %v714_v48 = vsel %vm701_vm7, %v1659_v41, 0.0 }
  0xf5   :  { %v715_v49 = vsel %vm702_vm8, %v1659_v41, 0.0  ;;  %v1740_v53 = vadd.s32 40, %v1573_v40  ;;  %1370 = vrcp.f32 %v825_v37  ;;  %v823_v12 = vsub.f32 %v1562_v62, %v1638_v27 }
  0xf6   :  { %v688_v50 = vadd.f32 %v680_v43, %v652_v45  ;;  %v689_v52 = vadd.f32 %v681_v44, %v653_v46  ;;  %vm443_vm9 = vcmp.eq.s32.totalorder %v1735_v47, %v1579_v5  ;;  %vm485_vm10 = vcmp.eq.s32.totalorder %v1735_v47, %v1582_v6 }
  0xf7   :  { %vm444_vm11 = vcmp.eq.s32.totalorder %v1740_v53, %v1579_v5  ;;  %vm486_vm12 = vcmp.eq.s32.totalorder %v1740_v53, %v1582_v6  ;;  %v462_v59 = vsel %vm443_vm9, %v1591_v9, 0.0  ;;  %v501_v60 = vsel %vm485_vm10, %v1594_v10, 0.0 }
  0xf8   :  { %v722_v56 = vadd.f32 %v714_v48, %v688_v50  ;;  %v723_v57 = vadd.f32 %v715_v49, %v689_v52  ;;  %vm525_vm13 = vcmp.eq.s32.totalorder %v1735_v47, %v1585_v7  ;;  %v463_v61 = vsel %vm444_vm11, %v1591_v9, 0.0 }
  0xf9   :  { %v502_v63 = vsel %vm486_vm12, %v1594_v10, 0.0  ;;  %v509_v1 = vadd.f32 %v501_v60, %v462_v59  ;;  %vm526_vm14 = vcmp.eq.s32.totalorder %v1740_v53, %v1585_v7  ;;  %v541_v2 = vsel %vm525_vm13, %v1597_v11, 0.0 }
  0xfa   :  { %v1340_v58 = vpack.c.bf16 %v723_v57, %v722_v56  ;;  %v510_v3 = vadd.f32 %v502_v63, %v463_v61  ;;  %vm562_vm15 = vcmp.eq.s32.totalorder %v1735_v47, %v1600_v13  ;;  %v542_v19 = vsel %vm526_vm14, %v1597_v11, 0.0 }
  0xfb   :  { %v549_v20 = vadd.f32 %v541_v2, %v509_v1  ;;  %vm563_vm0 = vcmp.eq.s32.totalorder %v1740_v53, %v1600_v13  ;;  %v575_v24 = vsel %vm562_vm15, %v1603_v14, 0.0  ;;  %vm598_vm3 = vcmp.eq.s32.totalorder %v1735_v47, %v1588_v8 }
  0xfc   :  { %1341 = vmatpush3.bf16.msra.mxu0 %v1340_v58  ;;  %v550_v25 = vadd.f32 %v542_v19, %v510_v3  ;;  %v576_v28 = vsel %vm563_vm0, %v1603_v14, 0.0  ;;  %vm599_vm4 = vcmp.eq.s32.totalorder %v1740_v53, %v1588_v8  ;;  %v612_v30 = vsel %vm598_vm3, %v1606_v15, 0.0 }
  0xfd   :  { %1342 = vmatprep.subr.bf16.mxu0 %v1376_v23  ;;  %v583_v29 = vadd.f32 %v575_v24, %v549_v20  ;;  %v613_v31 = vsel %vm599_vm4, %v1606_v15, 0.0  ;;  %vm633_vm5 = vcmp.eq.s32.totalorder %v1735_v47, %v1609_v16  ;;  %vm634_vm6 = vcmp.eq.s32.totalorder %v1740_v53, %v1609_v16 }
  0xfe   :  { %v584_v62 = vadd.f32 %v576_v28, %v550_v25  ;;  %v646_v35 = vsel %vm633_vm5, %v1612_v17, 0.0  ;;  %v647_v36 = vsel %vm634_vm6, %v1612_v17, 0.0  ;;  %vm668_vm7 = vcmp.eq.s32.totalorder %v1735_v47, %v1615_v18 }
  0xff   :  { %v1371_v4 = vpop.eup %1370  ;;  %v620_v32 = vadd.f32 %v612_v30, %v583_v29  ;;  %vm669_vm8 = vcmp.eq.s32.totalorder %v1740_v53, %v1615_v18  ;;  %v682_v42 = vsel %vm668_vm7, %v1625_v22, 0.0  ;;  %vm703_vm9 = vcmp.eq.s32.totalorder %v1735_v47, %v1649_v34 }
 0x100   :  { %v827_v26 = vmul.f32 %v1371_v4, %v823_v12  ;;  %v621_v33 = vadd.f32 %v613_v31, %v584_v62  ;;  %v683_v43 = vsel %vm669_vm8, %v1625_v22, 0.0  ;;  %vm704_vm10 = vcmp.eq.s32.totalorder %v1740_v53, %v1649_v34 }
 0x101   :  { %v654_v37 = vadd.f32 %v646_v35, %v620_v32  ;;  %v716_v46 = vsel %vm703_vm9, %v1659_v41, 0.0  ;;  %v717_v48 = vsel %vm704_vm10, %v1659_v41, 0.0  ;;  %v1797_v49 = vadd.s32 48, %v1573_v40 }
 0x102   :  { %v1773_v27 = vmul.f32 3.0, %v827_v26  ;;  %v655_v39 = vadd.f32 %v647_v36, %v621_v33  ;;  %v1800_v50 = vadd.s32 56, %v1573_v40 }
 0x103   :  { %v690_v44 = vadd.f32 %v682_v42, %v654_v37  ;;  %vm445_vm11 = vcmp.eq.s32.totalorder %v1797_v49, %v1579_v5  ;;  %vm487_vm13 = vcmp.eq.s32.totalorder %v1797_v49, %v1582_v6  ;;  %vm527_vm15 = vcmp.eq.s32.totalorder %v1797_v49, %v1585_v7 }
 0x104   :  { %v1362_v38 = vtrunc.f32 %v1773_v27  ;;  %v691_v45 = vadd.f32 %v683_v43, %v655_v39  ;;  %vm446_vm12 = vcmp.eq.s32.totalorder %v1800_v50, %v1579_v5  ;;  %vm488_vm14 = vcmp.eq.s32.totalorder %v1800_v50, %v1582_v6 }
 0x105   :  { %v724_v56 = vadd.f32 %v716_v46, %v690_v44  ;;  %v464_v59 = vsel %vm445_vm11, %v1591_v9, 0.0  ;;  %v465_v60 = vsel %vm446_vm12, %v1591_v9, 0.0  ;;  %v503_v61 = vsel %vm487_vm13, %v1594_v10, 0.0 }
 0x106   :  { %v1363_v52 = vcvt.f32.s32 %v1362_v38  ;;  %v725_v57 = vadd.f32 %v717_v48, %v691_v45  ;;  %v504_v63 = vsel %vm488_vm14, %v1594_v10, 0.0  ;;  %v511_v1 = vadd.f32 %v503_v61, %v464_v59 }
 0x107   :  { %vm528_vm0 = vcmp.eq.s32.totalorder %v1800_v50, %v1585_v7  ;;  %v512_v5 = vadd.f32 %v504_v63, %v465_v60  ;;  %v543_v6 = vsel %vm527_vm15, %v1597_v11, 0.0  ;;  %vm564_vm3 = vcmp.eq.s32.totalorder %v1797_v49, %v1600_v13 }
 0x108   :  { %v1343_v58 = vpack.c.bf16 %v725_v57, %v724_v56  ;;  %v544_v2 = vsel %vm528_vm0, %v1597_v11, 0.0  ;;  %v551_v9 = vadd.f32 %v543_v6, %v511_v1  ;;  %vm565_vm4 = vcmp.eq.s32.totalorder %v1800_v50, %v1600_v13 }
 0x109   :  { %v577_v10 = vsel %vm564_vm3, %v1603_v14, 0.0  ;;  %vm600_vm5 = vcmp.eq.s32.totalorder %v1797_v49, %v1588_v8  ;;  %v552_v7 = vadd.f32 %v544_v2, %v512_v5  ;;  %v578_v3 = vsel %vm565_vm4, %v1603_v14, 0.0 }
 0x10a   :  { %1344 = vmatpush3.bf16.msra.mxu0 %v1343_v58  ;;  %vm601_vm6 = vcmp.eq.s32.totalorder %v1800_v50, %v1588_v8  ;;  %v614_v11 = vsel %vm600_vm5, %v1606_v15, 0.0  ;;  %v585_v4 = vadd.f32 %v577_v10, %v551_v9  ;;  %vm635_vm7 = vcmp.eq.s32.totalorder %v1797_v49, %v1609_v16 }
 0x10b   :  { %1345 = vmatprep.subr.bf16.mxu0 %v1376_v23  ;;  %v615_v12 = vsel %vm601_vm6, %v1606_v15, 0.0  ;;  %vm636_vm8 = vcmp.eq.s32.totalorder %v1800_v50, %v1609_v16  ;;  %vm830_vm9 = vcmp.gt.s32.totalorder %v1363_v52, 0  ;;  %v586_v13 = vadd.f32 %v578_v3, %v552_v7 }
 0x10c   :  { %v648_v19 = vsel %vm635_vm7, %v1612_v17, 0.0  ;;  %vm670_vm10 = vcmp.eq.s32.totalorder %v1797_v49, %v1615_v18  ;;  %v622_v14 = vadd.f32 %v614_v11, %v585_v4  ;;  %v649_v8 = vsel %vm636_vm8, %v1612_v17, 0.0 }
 0x10d   :  { %vm671_vm11 = vcmp.eq.s32.totalorder %v1800_v50, %v1615_v18  ;;  %vm705_vm12 = vcmp.eq.s32.totalorder %v1797_v49, %v1649_v34  ;;  %v623_v15 = vadd.f32 %v615_v12, %v586_v13  ;;  %v684_v20 = vsel %vm670_vm10, %v1625_v22, 0.0 }
 0x10e   :  { %vm706_vm13 = vcmp.eq.s32.totalorder %v1800_v50, %v1649_v34  ;;  %v831_v16 = vsel %vm830_vm9, %v1363_v52, 0  ;;  %v656_v24 = vadd.f32 %v648_v19, %v622_v14  ;;  %v685_v25 = vsel %vm671_vm11, %v1625_v22, 0.0 }
 0x10f   :  { %v657_v26 = vadd.f32 %v649_v8, %v623_v15  ;;  %v718_v28 = vsel %vm705_vm12, %v1659_v41, 0.0  ;;  %v719_v29 = vsel %vm706_vm13, %v1659_v41, 0.0  ;;  %vm832_vm14 = vcmp.lt.s32.totalorder %v831_v16, 2 }
 0x110   :  { %v692_v17 = vadd.f32 %v684_v20, %v656_v24  ;;  %v833_v31 = vsel %vm832_vm14, %v831_v16, 2 }
 0x111   :  { %v693_v18 = vadd.f32 %v685_v25, %v657_v26  ;;  %v834_v33 = vcvt.s32.f32 %v833_v31  ;;  %v882_v35 = vadd.s32 1, %v833_v31  ;;  %v838_v22 = vmul.u32 4, %v833_v31 }
 0x112   :  { %v726_v62 = vadd.f32 %v718_v28, %v692_v17  ;;  %v837_v38 = vmul.u32 16, %v833_v31  ;;  %v841_v46 = vrot.slane %v833_v31, 2 }
 0x113   :  { %v727_v30 = vadd.f32 %v719_v29, %v693_v18  ;;  %v835_v34 = vsub.f32 %v1773_v27, %v834_v33  ;;  %v921_v37 = vmul.u32 4, %v882_v35  ;;  %v839_v39 = vrot.slane %v838_v22, 1 }
 0x114   :  { %v995_v42 = vmul.u32 16, %v882_v35  ;;  %v883_v48 = vrot.slane %v882_v35, 2 }
 0x115   :  { %v1346_v32 = vpack.c.bf16 %v727_v30, %v726_v62  ;;  %v836_v36 = vsub.f32 1.0, %v835_v34  ;;  %v922_v43 = vrot.slane %v921_v37, 1  ;;  %v937_v44 = vrot.slane %v835_v34, 1 }
 0x116   :  { %v840_v45 = vadd.s32 %v839_v39, %v837_v38  ;;  %v996_v52 = vadd.s32 %v995_v42, %v839_v39  ;;  %v898_v60 = vrot.slane %v835_v34, 2 }
 0x117   :  { %1347 = vmatpush3.bf16.msra.mxu0 %v1346_v32  ;;  %v856_v41 = vrot.slane %v836_v36, 1  ;;  %v859_v57 = vrot.slane %v836_v36, 2  ;;  %v923_v58 = vadd.s32 %v922_v43, %v837_v38  ;;  %v939_v59 = vmul.f32 %v937_v44, %v836_v36 }
 0x118   :  { %1348 = vmatprep.subr.bf16.mxu0 %v1376_v23  ;;  %v842_v61 = vadd.s32 %v841_v46, %v840_v45  ;;  %v884_v63 = vadd.s32 %v883_v48, %v840_v45  ;;  %v997_v1 = vadd.s32 %v996_v52, %v841_v46  ;;  %v1066_v9 = vadd.s32 %v995_v42, %v922_v43 }
 0x119   :  { %v858_v56 = vmul.f32 %v856_v41, %v836_v36  ;;  %v1010_v27 = vmul.f32 %v856_v41, %v835_v34  ;;  %v924_v6 = vadd.s32 %v923_v58, %v841_v46  ;;  %v940_v2 = vmul.f32 %v939_v59, %v859_v57 }
 0x11a   :  { %v961_v7 = vadd.s32 %v923_v58, %v883_v48  ;;  %v974_v3 = vmul.f32 %v939_v59, %v898_v60  ;;  %v1032_v4 = vadd.s32 %v996_v52, %v883_v48  ;;  %v1080_v13 = vmul.f32 %v937_v44, %v835_v34 }
 0x11b   :  { %v861_v5 = vmul.f32 %v859_v57, %v858_v56  ;;  %v900_v10 = vmul.f32 %v898_v60, %v858_v56  ;;  %v1011_v11 = vmul.f32 %v1010_v27, %v859_v57  ;;  %v1045_v12 = vmul.f32 %v1010_v27, %v898_v60 }
 0x11c   :  { %v1854_v19 = vrot.slane %v842_v61, %v1576_v51  ;;  %v1857_v14 = vrot.slane %v884_v63, %v1576_v51  ;;  %v1860_v8 = vrot.slane %v997_v1, %v1576_v51  ;;  %v1866_v20 = vrot.slane %v924_v6, %v1576_v51 }
 0x11d   :  { %v1863_v15 = vrot.slane %v861_v5, %v1576_v51  ;;  %v1869_v16 = vrot.slane %v940_v2, %v1576_v51  ;;  %v1067_v24 = vadd.s32 %v1066_v9, %v841_v46  ;;  %v1872_v25 = vrot.slane %v900_v10, %v1576_v51 }
 0x11e   :  { %v1875_v26 = vrot.slane %v961_v7, %v1576_v51  ;;  %v1878_v28 = vrot.slane %v974_v3, %v1576_v51  ;;  %v1881_v17 = vrot.slane %v1011_v11, %v1576_v51  ;;  %v1884_v29 = vrot.slane %v1032_v4, %v1576_v51  ;;  %v301_v4 = vld [vmem:[%s2167_s6] sm:$0x3] }
 0x11f   :  { %v1887_v18 = vrot.slane %v1045_v12, %v1576_v51  ;;  %v1081_v62 = vmul.f32 %v1080_v13, %v859_v57  ;;  %v1102_v30 = vadd.s32 %v1066_v9, %v883_v48  ;;  %vm853_vm15 = vcmp.eq.s32.totalorder %v1797_v49, %v1854_v19 }
 0x120   :  { %vm854_vm0 = vcmp.eq.s32.totalorder %v1800_v50, %v1854_v19  ;;  %vm895_vm3 = vcmp.eq.s32.totalorder %v1797_v49, %v1857_v14  ;;  %vm896_vm4 = vcmp.eq.s32.totalorder %v1800_v50, %v1857_v14  ;;  %v1898_v31 = vrot.slane %v1067_v24, %v1576_v51 }
 0x121   :  { %v1115_v32 = vmul.f32 %v1080_v13, %v898_v60  ;;  %v872_v33 = vsel %vm853_vm15, %v1863_v15, 0.0  ;;  %v873_v34 = vsel %vm854_vm0, %v1863_v15, 0.0  ;;  %v911_v35 = vsel %vm895_vm3, %v1872_v25, 0.0 }
 0x122   :  { %v912_v22 = vsel %vm896_vm4, %v1872_v25, 0.0  ;;  %vm935_vm5 = vcmp.eq.s32.totalorder %v1797_v49, %v1866_v20  ;;  %vm936_vm6 = vcmp.eq.s32.totalorder %v1800_v50, %v1866_v20  ;;  %v1909_v36 = vrot.slane %v1081_v62, %v1576_v51 }
 0x123   :  { %v1912_v37 = vrot.slane %v1102_v30, %v1576_v51  ;;  %v919_v38 = vadd.f32 %v911_v35, %v872_v33  ;;  %v920_v39 = vadd.f32 %v912_v22, %v873_v34  ;;  %v951_v42 = vsel %vm935_vm5, %v1869_v16, 0.0 }
 0x124   :  { %v952_v41 = vsel %vm936_vm6, %v1869_v16, 0.0  ;;  %vm972_vm7 = vcmp.eq.s32.totalorder %v1797_v49, %v1875_v26  ;;  %vm973_vm8 = vcmp.eq.s32.totalorder %v1800_v50, %v1875_v26  ;;  %v1921_v43 = vrot.slane %v1115_v32, %v1576_v51 }
 0x125   :  { %v959_v44 = vadd.f32 %v951_v42, %v919_v38  ;;  %v960_v45 = vadd.f32 %v952_v41, %v920_v39  ;;  %v985_v46 = vsel %vm972_vm7, %v1878_v28, 0.0  ;;  %v986_v48 = vsel %vm973_vm8, %v1878_v28, 0.0 }
 0x126   :  { %vm1008_vm9 = vcmp.eq.s32.totalorder %v1797_v49, %v1860_v8  ;;  %vm1009_vm10 = vcmp.eq.s32.totalorder %v1800_v50, %v1860_v8  ;;  %vm1043_vm11 = vcmp.eq.s32.totalorder %v1797_v49, %v1884_v29  ;;  %vm1044_vm12 = vcmp.eq.s32.totalorder %v1800_v50, %v1884_v29 }
 0x127   :  { %v993_v52 = vadd.f32 %v985_v46, %v959_v44  ;;  %v994_v56 = vadd.f32 %v986_v48, %v960_v45  ;;  %v1022_v57 = vsel %vm1008_vm9, %v1881_v17, 0.0  ;;  %v1023_v58 = vsel %vm1009_vm10, %v1881_v17, 0.0 }
 0x128   :  { %v1056_v59 = vsel %vm1043_vm11, %v1887_v18, 0.0  ;;  %vm1078_vm13 = vcmp.eq.s32.totalorder %v1797_v49, %v1898_v31  ;;  %vm1079_vm14 = vcmp.eq.s32.totalorder %v1800_v50, %v1898_v31  ;;  %v1057_v61 = vsel %vm1044_vm12, %v1887_v18, 0.0 }
 0x129   :  { %v1030_v60 = vadd.f32 %v1022_v57, %v993_v52  ;;  %v1031_v27 = vadd.f32 %v1023_v58, %v994_v56  ;;  %v1092_v63 = vsel %vm1078_vm13, %v1909_v36, 0.0  ;;  %v1093_v1 = vsel %vm1079_vm14, %v1909_v36, 0.0 }
 0x12a   :  { %vm1113_vm15 = vcmp.eq.s32.totalorder %v1797_v49, %v1912_v37  ;;  %vm1114_vm0 = vcmp.eq.s32.totalorder %v1800_v50, %v1912_v37  ;;  %v306_v50 = vrot.slane %v301_v4, %v1576_v51  ;;  %vm847_vm3 = vcmp.eq.s32.totalorder %v1573_v40, %v1854_v19 }
 0x12b   :  { %v1064_v5 = vadd.f32 %v1056_v59, %v1030_v60  ;;  %v1065_v6 = vadd.f32 %v1057_v61, %v1031_v27  ;;  %v1126_v2 = vsel %vm1113_vm15, %v1921_v43, 0.0  ;;  %v1127_v9 = vsel %vm1114_vm0, %v1921_v43, 0.0 }
 0x12c   :  { %vm848_vm4 = vcmp.eq.s32.totalorder %v1618_v21, %v1854_v19  ;;  %vm889_vm5 = vcmp.eq.s32.totalorder %v1573_v40, %v1857_v14  ;;  %vm890_vm6 = vcmp.eq.s32.totalorder %v1618_v21, %v1857_v14  ;;  %v866_v51 = vsel %vm847_vm3, %v1863_v15, 0.0 }
 0x12d   :  { %v1100_v10 = vadd.f32 %v1092_v63, %v1064_v5  ;;  %v1101_v7 = vadd.f32 %v1093_v1, %v1065_v6  ;;  %v867_v30 = vsel %vm848_vm4, %v1863_v15, 0.0  ;;  %v905_v32 = vsel %vm889_vm5, %v1872_v25, 0.0 }
 0x12e   :  { %v906_v33 = vsel %vm890_vm6, %v1872_v25, 0.0  ;;  %vm929_vm7 = vcmp.eq.s32.totalorder %v1573_v40, %v1866_v20  ;;  %vm930_vm8 = vcmp.eq.s32.totalorder %v1618_v21, %v1866_v20  ;;  %v913_v34 = vadd.f32 %v905_v32, %v866_v51 }
 0x12f   :  { %v1949_v3 = vadd.f32 %v1126_v2, %v1100_v10  ;;  %v1951_v11 = vadd.f32 %v1127_v9, %v1101_v7  ;;  %v914_v35 = vadd.f32 %v906_v33, %v867_v30  ;;  %v945_v22 = vsel %vm929_vm7, %v1869_v16, 0.0 }
 0x130   :  { %v946_v38 = vsel %vm930_vm8, %v1869_v16, 0.0  ;;  %vm966_vm9 = vcmp.eq.s32.totalorder %v1573_v40, %v1875_v26  ;;  %vm967_vm10 = vcmp.eq.s32.totalorder %v1618_v21, %v1875_v26  ;;  %v309_v39 = vsub.s32 1, %v1573_v40 }
 0x131   :  { %v1358_v49 = vpack.c.bf16 %v1951_v11, %v1949_v3  ;;  %v953_v42 = vadd.f32 %v945_v22, %v913_v34  ;;  %v954_v41 = vadd.f32 %v946_v38, %v914_v35  ;;  %v979_v44 = vsel %vm966_vm9, %v1878_v28, 0.0  ;;  %v1373_v3 = vld [vmem:[%s2165_s1 + $0x4] sm:$0x7] }
 0x132   :  { %v980_v45 = vsel %vm967_vm10, %v1878_v28, 0.0  ;;  %vm1002_vm11 = vcmp.eq.s32.totalorder %v1573_v40, %v1860_v8  ;;  %vm1003_vm12 = vcmp.eq.s32.totalorder %v1618_v21, %v1860_v8  ;;  %vm849_vm13 = vcmp.eq.s32.totalorder %v1680_v54, %v1854_v19 }
 0x133   :  { %vm891_vm14 = vcmp.eq.s32.totalorder %v1680_v54, %v1857_v14  ;;  %vm850_vm15 = vcmp.eq.s32.totalorder %v1683_v55, %v1854_v19  ;;  %vm892_vm0 = vcmp.eq.s32.totalorder %v1683_v55, %v1857_v14  ;;  %v2002_v46 = vrot.slane %v301_v4, %v309_v39 }
 0x134   :  { %v987_v48 = vadd.f32 %v979_v44, %v953_v42  ;;  %v988_v52 = vadd.f32 %v980_v45, %v954_v41  ;;  %v1016_v56 = vsel %vm1002_vm11, %v1881_v17, 0.0  ;;  %v1017_v57 = vsel %vm1003_vm12, %v1881_v17, 0.0 }
 0x135   :  { %vm1037_vm3 = vcmp.eq.s32.totalorder %v1573_v40, %v1884_v29  ;;  %v868_v58 = vsel %vm849_vm13, %v1863_v15, 0.0  ;;  %v907_v59 = vsel %vm891_vm14, %v1872_v25, 0.0  ;;  %v869_v60 = vsel %vm850_vm15, %v1863_v15, 0.0 }
 0x136   :  { %v908_v27 = vsel %vm892_vm0, %v1872_v25, 0.0  ;;  %vm931_vm4 = vcmp.eq.s32.totalorder %v1680_v54, %v1866_v20  ;;  %vm932_vm5 = vcmp.eq.s32.totalorder %v1683_v55, %v1866_v20  ;;  %vm851_vm6 = vcmp.eq.s32.totalorder %v1735_v47, %v1854_v19 }
 0x137   :  { %vm852_vm7 = vcmp.eq.s32.totalorder %v1740_v53, %v1854_v19  ;;  %vm893_vm8 = vcmp.eq.s32.totalorder %v1735_v47, %v1857_v14  ;;  %vm894_vm9 = vcmp.eq.s32.totalorder %v1740_v53, %v1857_v14  ;;  %v1024_v61 = vadd.f32 %v1016_v56, %v987_v48 }
 0x138   :  { %vm1038_vm10 = vcmp.eq.s32.totalorder %v1618_v21, %v1884_v29  ;;  %v1050_v63 = vsel %vm1037_vm3, %v1887_v18, 0.0  ;;  %v915_v1 = vadd.f32 %v907_v59, %v868_v58  ;;  %v916_v5 = vadd.f32 %v908_v27, %v869_v60 }
 0x139   :  { %v947_v6 = vsel %vm931_vm4, %v1869_v16, 0.0  ;;  %v948_v2 = vsel %vm932_vm5, %v1869_v16, 0.0  ;;  %vm968_vm11 = vcmp.eq.s32.totalorder %v1680_v54, %v1875_v26  ;;  %v870_v19 = vsel %vm851_vm6, %v1863_v15, 0.0 }
 0x13a   :  { %v871_v9 = vsel %vm852_vm7, %v1863_v15, 0.0  ;;  %v909_v14 = vsel %vm893_vm8, %v1872_v25, 0.0  ;;  %v910_v10 = vsel %vm894_vm9, %v1872_v25, 0.0  ;;  %v1051_v7 = vsel %vm1038_vm10, %v1887_v18, 0.0 }
 0x13b   :  { %vm969_vm12 = vcmp.eq.s32.totalorder %v1683_v55, %v1875_v26  ;;  %vm933_vm13 = vcmp.eq.s32.totalorder %v1735_v47, %v1866_v20  ;;  %vm934_vm14 = vcmp.eq.s32.totalorder %v1740_v53, %v1866_v20  ;;  %v1025_v4 = vadd.f32 %v1017_v57, %v988_v52 }
 0x13c   :  { %vm1072_vm15 = vcmp.eq.s32.totalorder %v1573_v40, %v1898_v31  ;;  %v955_v15 = vadd.f32 %v947_v6, %v915_v1  ;;  %vm1004_vm0 = vcmp.eq.s32.totalorder %v1680_v54, %v1860_v8  ;;  %v956_v25 = vadd.f32 %v948_v2, %v916_v5 }
 0x13d   :  { %vm1073_vm3 = vcmp.eq.s32.totalorder %v1618_v21, %v1898_v31  ;;  %v982_v51 = vsel %vm969_vm12, %v1878_v28, 0.0  ;;  %v949_v20 = vsel %vm933_vm13, %v1869_v16, 0.0  ;;  %v950_v30 = vsel %vm934_vm14, %v1869_v16, 0.0 }
 0x13e   :  { %v1086_v32 = vsel %vm1072_vm15, %v1909_v36, 0.0  ;;  %vm1005_vm4 = vcmp.eq.s32.totalorder %v1683_v55, %v1860_v8  ;;  %vm970_vm5 = vcmp.eq.s32.totalorder %v1735_v47, %v1875_v26  ;;  %vm971_vm6 = vcmp.eq.s32.totalorder %v1740_v53, %v1875_v26 }
 0x13f   :  { %v1058_v33 = vadd.f32 %v1050_v63, %v1024_v61  ;;  %vm1107_vm7 = vcmp.eq.s32.totalorder %v1573_v40, %v1912_v37  ;;  %v1018_v16 = vsel %vm1004_vm0, %v1881_v17, 0.0  ;;  %v990_v35 = vadd.f32 %v982_v51, %v956_v25 }
 0x140   :  { %vm1039_vm8 = vcmp.eq.s32.totalorder %v1680_v54, %v1884_v29  ;;  %v1087_v26 = vsel %vm1073_vm3, %v1909_v36, 0.0  ;;  %v1019_v39 = vsel %vm1005_vm4, %v1881_v17, 0.0  ;;  %v983_v42 = vsel %vm970_vm5, %v1878_v28, 0.0 }
 0x141   :  { %v984_v41 = vsel %vm971_vm6, %v1878_v28, 0.0  ;;  %vm1108_vm9 = vcmp.eq.s32.totalorder %v1618_v21, %v1912_v37  ;;  %vm1040_vm10 = vcmp.eq.s32.totalorder %v1683_v55, %v1884_v29  ;;  %vm1007_vm12 = vcmp.eq.s32.totalorder %v1740_v53, %v1860_v8 }
 0x142   :  { %v1059_v44 = vadd.f32 %v1051_v7, %v1025_v4  ;;  %v1120_v45 = vsel %vm1107_vm7, %v1921_v43, 0.0  ;;  %v1027_v52 = vadd.f32 %v1019_v39, %v990_v35  ;;  %vm1074_vm13 = vcmp.eq.s32.totalorder %v1680_v54, %v1898_v31  ;;  %v1372_v39 = vld [vmem:[%s2165_s1] sm:$0x7] }
 0x143   :  { %v1121_v57 = vsel %vm1108_vm9, %v1921_v43, 0.0  ;;  %v1053_v58 = vsel %vm1040_vm10, %v1887_v18, 0.0  ;;  %v1021_v59 = vsel %vm1007_vm12, %v1881_v17, 0.0  ;;  %v1094_v60 = vadd.f32 %v1086_v32, %v1058_v33 }
 0x144   :  { %vm1075_vm14 = vcmp.eq.s32.totalorder %v1683_v55, %v1898_v31  ;;  %vm1041_vm15 = vcmp.eq.s32.totalorder %v1735_v47, %v1884_v29  ;;  %vm1042_vm0 = vcmp.eq.s32.totalorder %v1740_v53, %v1884_v29  ;;  %v1095_v40 = vadd.f32 %v1087_v26, %v1059_v44 }
 0x145   :  { %v1088_v61 = vsel %vm1074_vm13, %v1909_v36, 0.0  ;;  %vm1109_vm3 = vcmp.eq.s32.totalorder %v1680_v54, %v1912_v37  ;;  %v1061_v63 = vadd.f32 %v1053_v58, %v1027_v52  ;;  %vm402_vm4 = vcmask 1040384  }
 0x146   :  { %v1089_v6 = vsel %vm1075_vm14, %v1909_v36, 0.0  ;;  %v1054_v2 = vsel %vm1041_vm15, %v1887_v18, 0.0  ;;  %v1055_v29 = vsel %vm1042_vm0, %v1887_v18, 0.0  ;;  %vm404_vm5 = vcmask 1041408  }
 0x147   :  { %vm1110_vm6 = vcmp.eq.s32.totalorder %v1683_v55, %v1912_v37  ;;  %vm1076_vm7 = vcmp.eq.s32.totalorder %v1735_v47, %v1898_v31  ;;  %vm728_vm9 = vcmask 523264   ;;  %vm1111_vm10 = vcmp.eq.s32.totalorder %v1735_v47, %v1912_v37 }
 0x148   :  { %v1090_v25 = vsel %vm1076_vm7, %v1909_v36, 0.0  ;;  %v1124_v33 = vsel %vm1111_vm10, %v1921_v43, 0.0 }
 0x1b6   :  { %v379_v12 = vpop.f32.mrb[2].mxu1 }
 0x1b7   :  { %v1959_v13 = vadd.f32 %v379_v12, %v306_v50  ;;  %v1961_v24 = vpop.f32.mrb[3].mxu1  ;;  %v981_v50 = vsel %vm968_vm11, %v1878_v28, 0.0  ;;  %v917_v12 = vadd.f32 %v909_v14, %v870_v19  ;;  %vm1006_vm11 = vcmp.eq.s32.totalorder %v1735_v47, %v1860_v8 }
 0x1b8   :  { %v989_v34 = vadd.f32 %v981_v50, %v955_v15  ;;  %v1052_v28 = vsel %vm1039_vm8, %v1887_v18, 0.0  ;;  %v1020_v8 = vsel %vm1006_vm11, %v1881_v17, 0.0  ;;  %v382_v17 = vadd.f32 %v1961_v24, %v2002_v46  ;;  %v393_v18 = vld [vmem:[%s2168_s2] sm:$0x7] }
 0x1b9   :  { %807 = vrot.lane.b32.xlu1 %v1959_v13, %s1377_s14  ;;  %v395_v62 = vrot.slane %v1959_v13, 7  ;;  %v957_v22 = vadd.f32 %v949_v20, %v917_v12  ;;  %vm1077_vm8 = vcmp.eq.s32.totalorder %v1740_v53, %v1898_v31  ;;  %v1128_v24 = vadd.f32 %v1120_v45, %v1094_v60 }
 0x1ba   :  { %v1026_v48 = vadd.f32 %v1018_v16, %v989_v34  ;;  %v1129_v46 = vadd.f32 %v1121_v57, %v1095_v40  ;;  %v400_v14 = vrot.slane %v382_v17, 6  ;;  %v1123_v15 = vsel %vm1110_vm6, %v1921_v43, 0.0 }
 0x1bb   :  { %396 = vrot.lane.b32.xlu0 %v395_v62, %s1377_s14  ;;  %v918_v62 = vadd.f32 %v910_v10, %v871_v9  ;;  %v991_v21 = vadd.f32 %v983_v42, %v957_v22  ;;  %v1122_v9 = vsel %vm1109_vm3, %v1921_v43, 0.0  ;;  %v1097_v10 = vadd.f32 %v1089_v6, %v1061_v63 }
 0x1bc   :  { %v1060_v27 = vadd.f32 %v1052_v28, %v1026_v48  ;;  %v1091_v50 = vsel %vm1077_vm8, %v1909_v36, 0.0  ;;  %vm1112_vm11 = vcmp.eq.s32.totalorder %v1740_v53, %v1912_v37  ;;  %v805_v16 = vrot.slane %v1959_v13, 1 }
 0x1bd   :  { %v958_v38 = vadd.f32 %v950_v30, %v918_v62  ;;  %v1028_v1 = vadd.f32 %v1020_v8, %v991_v21  ;;  %v1349_v62 = vpack.c.bf16 %v1129_v46, %v1128_v24  ;;  %v1131_v20 = vadd.f32 %v1123_v15, %v1097_v10 }
 0x1be   :  { %v1096_v19 = vadd.f32 %v1088_v61, %v1060_v27  ;;  %v1125_v36 = vsel %vm1112_vm11, %v1921_v43, 0.0 }
 0x1bf   :  { %v992_v56 = vadd.f32 %v984_v41, %v958_v38  ;;  %v1062_v7 = vadd.f32 %v1054_v2, %v1028_v1  ;;  %v810_v38 = vrot.slane %v382_v17, 7 }
 0x1c0   :  { %v1130_v51 = vadd.f32 %v1122_v9, %v1096_v19 }
 0x1c1   :  { %v1029_v5 = vadd.f32 %v1021_v59, %v992_v56  ;;  %v1098_v30 = vadd.f32 %v1090_v25, %v1062_v7 }
 0x1c2   :  { %v1352_v47 = vpack.c.bf16 %v1131_v20, %v1130_v51 }
 0x1c3   :  { %v1063_v4 = vadd.f32 %v1055_v29, %v1029_v5  ;;  %v1132_v53 = vadd.f32 %v1124_v33, %v1098_v30 }
 0x1c5   :  { %v1099_v32 = vadd.f32 %v1091_v50, %v1063_v4 }
 0x1c7   :  { %v1133_v37 = vadd.f32 %v1125_v36, %v1099_v32 }
 0x1c9   :  { %v1355_v35 = vpack.c.bf16 %v1133_v37, %v1132_v53 }
 0x22b   :  { %v808_v34 = vpop.permute.xlu1 %807 }
 0x22c   :  { %v812_v22 = vsel %vm402_vm4, %v805_v16, %v808_v34 }
 0x22d   :  { %v397_v55 = vpop.permute.xlu0 %396  ;;  %v813_v43 = vsel %vm404_vm5, %v812_v22, %v810_v38 }
 0x22e   :  { %v403_v31 = vsel %vm402_vm4, %v1959_v13, %v397_v55 }
 0x22f   :  { %v405_v54 = vsel %vm404_vm5, %v403_v31, %v400_v14 }
 0x230   :  { %v406_v12 = vadd.f32 %v405_v54, %v393_v18 }
 0x232   :  { %1283 = vmatmul.mubr.msk.f32.vlgmr.msra.gmra.mrb[4].mxu0 %vm728_vm9, %v406_v12 }
 0x233   :  { %1350 = vmatpush3.bf16.msra.mxu0 %v1349_v62  ;;  %1301 = vmatprep.mubr.msk.f32.mxu0 %vm1375_vm1, %v1374_v0  ;;  %v804_v0 = vld [vmem:[%s2168_s2] sm:$0x7] }
 0x234   :  { %1351 = vmatprep.subr.bf16.mxu0 %v1376_v23  ;;  %v814_v13 = vadd.f32 %v813_v43, %v804_v0 }
 0x237   :  { %1353 = vmatpush3.bf16.msra.mxu0 %v1352_v47 }
 0x238   :  { %1354 = vmatprep.subr.bf16.mxu0 %v1376_v23 }
 0x23b   :  { %1356 = vmatpush3.bf16.msra.mxu0 %v1355_v35 }
 0x23c   :  { %1357 = vmatprep.subr.bf16.mxu0 %v1376_v23 }
 0x23f   :  { %1359 = vmatpush3.bf16.msra.mxu0 %v1358_v49 }
 0x242   :  { %1302 = vmatmul.mubr.msk.f32.vlgmr.msra.gmra.mrb[6].mxu0 %vm728_vm9, %v814_v13 }
 0x305   :  { %v798_v26 = vpop.f32.mrb[4].mxu0 }
 0x306   :  { %v802_v42 = vadd.f32 %v1372_v39, %v798_v26  ;;  %v1284_v23 = vpop.f32.mrb[5].mxu0 }
 0x308   :  { %803 = vst.msk [vmem:[%s2169_s7] sm:$0x7] %vm408_vm2, %v802_v42 }
 0x315   :  { %v1205_v41 = vpop.f32.mrb[6].mxu0 }
 0x316   :  { %v1209_v11 = vadd.f32 %v1373_v3, %v1205_v41  ;;  %v1303_v49 = vpop.f32.mrb[7].mxu0 }
 0x318   :  { %1226 = vst.msk [vmem:[%s2169_s7 + $0x4] sm:$0x7] %vm408_vm2, %v1209_v11 }

// kernel: keypoint_deformer_forward.2
= control target key start
LH: loop header
LB: loop body
LE: loop exit
PB: predicated region body
PF: predicated region fallthrough
CT: control target
= control target key end

     0   :  { %s3202_s27 = smov 0   ;;  %s4301_s0 = inlined_call_operand.vmem [shape: f32[2,128,3], index: 0, kind: input, shape index: {}]   ;;  %s4302_s1 = inlined_call_operand.vmem [shape: f32[2,3,2,64], index: 1, kind: input, shape index: {}]   ;;  %s4303_s2 = inlined_call_operand.vmem [shape: f32[3,64], index: 2, kind: input, shape index: {}]   ;;  %s4304_s3 = inlined_call_operand.vmem [shape: f32[1,64], index: 3, kind: input, shape index: {}]   ;;  %s4305_s4 = inlined_call_operand.vmem [shape: f32[1,64], index: 4, kind: input, shape index: {}]   ;;  %s4306_s5 = inlined_call_operand.vmem [shape: f32[1,64], index: 5, kind: input, shape index: {}]   ;;  %s4307_s6 = inlined_call_operand.vmem [shape: f32[64,128], index: 6, kind: input, shape index: {}]   ;;  %s4308_s7 = inlined_call_operand.vmem [shape: f32[1,128], index: 7, kind: input, shape index: {}]   ;;  %s4309_s8 = inlined_call_operand.vmem [shape: f32[1,128], index: 8, kind: input, shape index: {}]   ;;  %s4310_s9 = inlined_call_operand.vmem [shape: f32[1,128], index: 9, kind: input, shape index: {}]   ;;  %s4311_s10 = inlined_call_operand.vmem [shape: f32[128,64], index: 10, kind: input, shape index: {}]   ;;  %s4312_s11 = inlined_call_operand.vmem [shape: f32[1,64], index: 11, kind: input, shape index: {}]   ;;  %s4313_s12 = inlined_call_operand.vmem [shape: f32[1,64], index: 12, kind: input, shape index: {}]   ;;  %s4314_s13 = inlined_call_operand.vmem [shape: f32[1,64], index: 13, kind: input, shape index: {}]   ;;  %s4315_s14 = inlined_call_operand.vmem [shape: f32[64,128], index: 14, kind: input, shape index: {}]   ;;  %s4316_s15 = inlined_call_operand.vmem [shape: f32[1,128], index: 15, kind: input, shape index: {}]   ;;  %s4317_s16 = inlined_call_operand.vmem [shape: f32[128,24], index: 16, kind: input, shape index: {}]   ;;  %s4318_s17 = inlined_call_operand.vmem [shape: f32[1,24], index: 17, kind: input, shape index: {}]   ;;  %s4319_s18 = inlined_call_operand.vmem [shape: f32[2,3,2,8], index: 18, kind: output, shape index: {}]  }
   0x1   :  { %4320 = sst [smem:[#allocation2_spill]] %s4301_s0 }
   0x2   :  { %4321 = sst [smem:[#allocation3_spill]] %s4302_s1 }
   0x3   :  { %4322 = sst [smem:[#allocation4_spill]] %s4303_s2 }
   0x4 LB: > { %s2582_s28 = sadd.s32 4294967295, %s3078_s27   ;;  %p2586_p0 = scmp.ge.s32.totalorder %s3078_s27, 1  ;;  %s3078_s27 = sphi %s3202_s27, %s28_s27  }
   0x5   : > { %p522_p1 = scmp.lt.s32.totalorder %s3078_s27, 3 }
   0x7   : > { %p523_p2 = pnand %p2586_p0, %p522_p1 }
   0x8   : > { %s4323_s0 = sld [smem:[#allocation4_spill]] (!%p523_p2)  ;;  %vm669_vm0 = vcmask (!%p523_p2), 1042432   ;;  %p581_p3 = scmp.lt.s32.totalorder (!%p523_p2), %s2582_s28, 1  ;;  %vm620_vm1 = vcmask (!%p523_p2), 23552   ;;  %v1011_v17 = vld [vmem:[%s4307_s6] sm:$0xff] (!%p523_p2)  ;;  %v1012_v18 = vld [vmem:[%s4307_s6 + $0x8] sm:$0xff] (!%p523_p2) }
   0x9   : > { %526 = sbr.rel (%p523_p2) target bundleno = 6344 (0x18c8), region = 92  ;;  %s4324_s21 = sld [smem:[#allocation2_spill]] (!%p523_p2)  ;;  %v2922_v19 = vpack.c.bf16 (!%p523_p2), %v1012_v18, %v1011_v17  ;;  %v1013_v20 = vld [vmem:[%s4307_s6 + $0x10] sm:$0xff] (!%p523_p2)  ;;  %v1014_v21 = vld [vmem:[%s4307_s6 + $0x18] sm:$0xff] (!%p523_p2)  ;;  %v1015_v23 = vld [vmem:[%s4307_s6 + $0x20] sm:$0xff] (!%p523_p2)  ;;  %vm818_vm2 = vcmask (!%p523_p2), 523264  }
   0xa   : > { %v2926_v22 = vpack.c.bf16 (!%p523_p2), %v1014_v21, %v1013_v20  ;;  %v1016_v24 = vld [vmem:[%s4307_s6 + $0x28] sm:$0xff] (!%p523_p2)  ;;  %v1017_v26 = vld [vmem:[%s4307_s6 + $0x30] sm:$0xff] (!%p523_p2)  ;;  %v1018_v27 = vld [vmem:[%s4307_s6 + $0x38] sm:$0xff] (!%p523_p2)  ;;  %vm3081_vm3 = vmmov (!%p523_p2), 0   ;;  %vm1779_vm4 = vcmask (!%p523_p2), 1040384   ;;  %s4325_s26 = sld [smem:[#allocation3_spill]] (!%p523_p2) }
   0xb   : > { %2923 = vmatprep.subr.bf16.mxu1 (!%p523_p2), %v2922_v19  ;;  %v2930_v25 = vpack.c.bf16 (!%p523_p2), %v1016_v24, %v1015_v23  ;;  %v2934_v28 = vpack.c.bf16 (!%p523_p2), %v1018_v27, %v1017_v26  ;;  %v3280_v29 = vld [vmem:[%s4304_s3] ss:$0 sm:$0xff] (!%p523_p2)  ;;  %vm2136_vm5 = vcmask (!%p523_p2), 517120  }
   0xc   : > { %2925 = vmatpush3.bf16.msra.mxu1 (!%p523_p2), %v2922_v19 }
   0xd   : > { %2927 = vmatprep.subr.bf16.mxu1 (!%p523_p2), %v2926_v22 }
   0xe   : > { %v612_v0 = vld [vmem:[%s4323_s0] sm:$0x7] (!%p523_p2) }
   0xf   : > { %2746 = vmatprep.subr.msk.mxu0 (!%p523_p2), %vm669_vm0, %v612_v0 }
  0x10   : > { %2747 = vmatpush3.msk.msra.mxu0 %vm669_vm0, %v612_v0  ;;  %s4327_s28 = smov (!%p581_p3, %s2582_s28), 1  ;;  %2929 = vmatpush3.bf16.msra.mxu1 %v2926_v22 }
  0x11   : > { %s2646_s19 = sshll.u32 %s4327_s28, 7  ;;  %2931 = vmatprep.subr.bf16.mxu1 %v2930_v25  ;;  %s3006_s23 = smul.u32 6, %s4327_s28 }
  0x12   : > { %s3219_s22 = scalar_lea.vmem %s4324_s21, %s2646_s19 }
  0x13   : > { %v596_v1 = vld [vmem:[%s3219_s22] sm:$0xff]  ;;  %v597_v2 = vld [vmem:[%s3219_s22 + $0x8] sm:$0xff]  ;;  %v598_v3 = vld [vmem:[%s3219_s22 + $0x10] sm:$0xff]  ;;  %s590_s29 = scalar_lea.vmem %s4325_s26, %s3006_s23  ;;  %s595_s19 = scalar_lea.vmem %s4319_s18, %s3006_s23 }
  0x14   : > { %2748 = vmatprep.mubr.msk.f32.mxu0 %vm620_vm1, %v596_v1  ;;  %v599_v4 = vld [vmem:[%s3219_s22 + $0x18] sm:$0xff]  ;;  %v600_v5 = vld [vmem:[%s3219_s22 + $0x20] sm:$0xff]  ;;  %v601_v6 = vld [vmem:[%s3219_s22 + $0x28] sm:$0xff]  ;;  %2933 = vmatpush3.bf16.msra.mxu1 %v2930_v25 }
  0x15   : > { %2749 = vmatmul.mubr.msk.f32.vlgmr.msra.gmra.mrb[0].mxu0 %vm620_vm1, %v597_v2  ;;  %v602_v7 = vld [vmem:[%s3219_s22 + $0x30] sm:$0xff]  ;;  %v603_v8 = vld [vmem:[%s3219_s22 + $0x38] sm:$0xff]  ;;  %v604_v9 = vld [vmem:[%s3219_s22 + $0x40] sm:$0xff]  ;;  %2935 = vmatprep.subr.bf16.mxu1 %v2934_v28 }
  0x16   : > { %2751 = vmatprep.mubr.msk.f32.mxu0 %vm620_vm1, %v598_v3  ;;  %v605_v10 = vld [vmem:[%s3219_s22 + $0x48] sm:$0xff]  ;;  %v606_v11 = vld [vmem:[%s3219_s22 + $0x50] sm:$0xff]  ;;  %v607_v12 = vld [vmem:[%s3219_s22 + $0x58] sm:$0xff] }
  0x17   : > { %v608_v13 = vld [vmem:[%s3219_s22 + $0x60] sm:$0xff]  ;;  %v609_v14 = vld [vmem:[%s3219_s22 + $0x68] sm:$0xff]  ;;  %v610_v15 = vld [vmem:[%s3219_s22 + $0x70] sm:$0xff] }
  0x18   : > { %v611_v16 = vld [vmem:[%s3219_s22 + $0x78] sm:$0xff]  ;;  %2937 = vmatpush3.bf16.msra.mxu1 %v2934_v28 }
  0x19   : > { %2752 = vmatmul.mubr.msk.f32.gmra.mrb[2].mxu0 %vm620_vm1, %v599_v4 }
  0x1a   : > { %2754 = vmatprep.mubr.msk.f32.mxu0 %vm620_vm1, %v600_v5 }
  0x1d   : > { %2755 = vmatmul.mubr.msk.f32.gmra.mrb[4].mxu0 %vm620_vm1, %v601_v6 }
  0x1e   : > { %2757 = vmatprep.mubr.msk.f32.mxu0 %vm620_vm1, %v602_v7 }
  0x21   : > { %2758 = vmatmul.mubr.msk.f32.gmra.mrb[6].mxu0 %vm620_vm1, %v603_v8 }
  0x22   : > { %2760 = vmatprep.mubr.msk.f32.mxu0 %vm620_vm1, %v604_v9 }
  0x25   : > { %2761 = vmatmul.mubr.msk.f32.gmra.mrb[8].mxu0 %vm620_vm1, %v605_v10 }
  0x26   : > { %2763 = vmatprep.mubr.msk.f32.mxu0 %vm620_vm1, %v606_v11 }
  0x29   : > { %2764 = vmatmul.mubr.msk.f32.gmra.mrb[10].mxu0 %vm620_vm1, %v607_v12 }
  0x2a   : > { %2766 = vmatprep.mubr.msk.f32.mxu0 %vm620_vm1, %v608_v13 }
  0x2d   : > { %2767 = vmatmul.mubr.msk.f32.gmra.mrb[12].mxu0 %vm620_vm1, %v609_v14 }
  0x2e   : > { %2769 = vmatprep.mubr.msk.f32.mxu0 %vm620_vm1, %v610_v15 }
  0x31   : > { %2770 = vmatmul.mubr.msk.f32.gmra.mrb[14].mxu0 %vm620_vm1, %v611_v16 }
  0xe8   : > { %v2750_v30 = vpop.f32.mrb[0].mxu0 }
  0xe9   : > { %v3283_v31 = vadd.f32 %v2750_v30, %v3280_v29  ;;  %v739_v32 = vpop.f32.mrb[1].mxu0 }
  0xea   : > { %v3286_v33 = vadd.f32 %v3280_v29, %v739_v32 }
  0xeb   : > { %v820_v34 = vsel %vm818_vm2, %v3283_v31, 0.0  ;;  %v859_v35 = vmul.f32 %v3283_v31, %v3283_v31 }
  0xec   : > { %v819_v36 = vsel %vm818_vm2, %v3286_v33, 0.0  ;;  %v858_v37 = vmul.f32 %v3286_v33, %v3286_v33  ;;  %v2753_v38 = vpop.f32.mrb[2].mxu0 }
  0xed   : > { %v875_v39 = vsel %vm818_vm2, %v859_v35, 0.0  ;;  %v821_v40 = vadd.f32 %v820_v34, %v819_v36  ;;  %v3298_v41 = vadd.f32 %v2753_v38, %v3280_v29  ;;  %v749_v42 = vpop.f32.mrb[3].mxu0 }
  0xee   : > { %v874_v43 = vsel %vm818_vm2, %v858_v37, 0.0  ;;  %v3302_v44 = vadd.f32 %v3280_v29, %v749_v42 }
  0xef   : > { %v876_v45 = vadd.f32 %v875_v39, %v874_v43  ;;  %v861_v46 = vmul.f32 %v3298_v41, %v3298_v41  ;;  %v824_v53 = vsel %vm818_vm2, %v3298_v41, 0.0 }
  0xf0   : > { %v822_v47 = vsel %vm818_vm2, %v3302_v44, 0.0  ;;  %v860_v48 = vmul.f32 %v3302_v44, %v3302_v44  ;;  %v2756_v49 = vpop.f32.mrb[4].mxu0 }
  0xf1   : > { %v823_v50 = vadd.f32 %v822_v47, %v821_v40  ;;  %v3311_v51 = vadd.f32 %v2756_v49, %v3280_v29  ;;  %v759_v52 = vpop.f32.mrb[5].mxu0  ;;  %v879_v58 = vsel %vm818_vm2, %v861_v46, 0.0 }
  0xf2   : > { %v877_v54 = vsel %vm818_vm2, %v860_v48, 0.0  ;;  %v3317_v55 = vadd.f32 %v3280_v29, %v759_v52 }
  0xf3   : > { %v878_v56 = vadd.f32 %v877_v54, %v876_v45  ;;  %v825_v57 = vadd.f32 %v824_v53, %v823_v50  ;;  %v863_v59 = vmul.f32 %v3311_v51, %v3311_v51  ;;  %v828_v3 = vsel %vm818_vm2, %v3311_v51, 0.0 }
  0xf4   : > { %v826_v60 = vsel %vm818_vm2, %v3317_v55, 0.0  ;;  %v862_v61 = vmul.f32 %v3317_v55, %v3317_v55  ;;  %v2759_v62 = vpop.f32.mrb[6].mxu0 }
  0xf5   : > { %v827_v63 = vadd.f32 %v826_v60, %v825_v57  ;;  %v880_v0 = vadd.f32 %v879_v58, %v878_v56  ;;  %v3327_v1 = vadd.f32 %v2759_v62, %v3280_v29  ;;  %v769_v2 = vpop.f32.mrb[7].mxu0  ;;  %v883_v8 = vsel %vm818_vm2, %v863_v59, 0.0 }
  0xf6   : > { %v881_v4 = vsel %vm818_vm2, %v862_v61, 0.0  ;;  %v3333_v5 = vadd.f32 %v3280_v29, %v769_v2 }
  0xf7   : > { %v882_v6 = vadd.f32 %v881_v4, %v880_v0  ;;  %v829_v7 = vadd.f32 %v828_v3, %v827_v63  ;;  %v865_v9 = vmul.f32 %v3327_v1, %v3327_v1  ;;  %v832_v17 = vsel %vm818_vm2, %v3327_v1, 0.0 }
  0xf8   : > { %v830_v10 = vsel %vm818_vm2, %v3333_v5, 0.0  ;;  %v864_v11 = vmul.f32 %v3333_v5, %v3333_v5  ;;  %v2762_v12 = vpop.f32.mrb[8].mxu0 }
  0xf9   : > { %v831_v13 = vadd.f32 %v830_v10, %v829_v7  ;;  %v884_v14 = vadd.f32 %v883_v8, %v882_v6  ;;  %v3343_v15 = vadd.f32 %v2762_v12, %v3280_v29  ;;  %v779_v16 = vpop.f32.mrb[9].mxu0  ;;  %v887_v22 = vsel %vm818_vm2, %v865_v9, 0.0 }
  0xfa   : > { %v885_v18 = vsel %vm818_vm2, %v864_v11, 0.0  ;;  %v3349_v19 = vadd.f32 %v3280_v29, %v779_v16 }
  0xfb   : > { %v886_v20 = vadd.f32 %v885_v18, %v884_v14  ;;  %v833_v21 = vadd.f32 %v832_v17, %v831_v13  ;;  %v867_v23 = vmul.f32 %v3343_v15, %v3343_v15  ;;  %v836_v34 = vsel %vm818_vm2, %v3343_v15, 0.0 }
  0xfc   : > { %v834_v24 = vsel %vm818_vm2, %v3349_v19, 0.0  ;;  %v866_v25 = vmul.f32 %v3349_v19, %v3349_v19  ;;  %v2765_v26 = vpop.f32.mrb[10].mxu0 }
  0xfd   : > { %v835_v27 = vadd.f32 %v834_v24, %v833_v21  ;;  %v888_v28 = vadd.f32 %v887_v22, %v886_v20  ;;  %v3359_v30 = vadd.f32 %v2765_v26, %v3280_v29  ;;  %v789_v32 = vpop.f32.mrb[11].mxu0  ;;  %v891_v39 = vsel %vm818_vm2, %v867_v23, 0.0 }
  0xfe   : > { %v889_v35 = vsel %vm818_vm2, %v866_v25, 0.0  ;;  %v3365_v36 = vadd.f32 %v3280_v29, %v789_v32 }
  0xff   : > { %v890_v37 = vadd.f32 %v889_v35, %v888_v28  ;;  %v837_v38 = vadd.f32 %v836_v34, %v835_v27  ;;  %v869_v40 = vmul.f32 %v3359_v30, %v3359_v30  ;;  %v840_v50 = vsel %vm818_vm2, %v3359_v30, 0.0 }
 0x100   : > { %v838_v42 = vsel %vm818_vm2, %v3365_v36, 0.0  ;;  %v868_v43 = vmul.f32 %v3365_v36, %v3365_v36  ;;  %v2768_v45 = vpop.f32.mrb[12].mxu0 }
 0x101   : > { %v839_v46 = vadd.f32 %v838_v42, %v837_v38  ;;  %v892_v47 = vadd.f32 %v891_v39, %v890_v37  ;;  %v3375_v48 = vadd.f32 %v2768_v45, %v3280_v29  ;;  %v799_v49 = vpop.f32.mrb[13].mxu0  ;;  %v895_v57 = vsel %vm818_vm2, %v869_v40, 0.0 }
 0x102   : > { %v893_v52 = vsel %vm818_vm2, %v868_v43, 0.0  ;;  %v3381_v53 = vadd.f32 %v3280_v29, %v799_v49 }
 0x103   : > { %v894_v54 = vadd.f32 %v893_v52, %v892_v47  ;;  %v841_v56 = vadd.f32 %v840_v50, %v839_v46  ;;  %v871_v58 = vmul.f32 %v3375_v48, %v3375_v48  ;;  %v844_v3 = vsel %vm818_vm2, %v3375_v48, 0.0 }
 0x104   : > { %v842_v59 = vsel %vm818_vm2, %v3381_v53, 0.0  ;;  %v870_v60 = vmul.f32 %v3381_v53, %v3381_v53  ;;  %v2771_v61 = vpop.f32.mrb[14].mxu0 }
 0x105   : > { %v843_v62 = vadd.f32 %v842_v59, %v841_v56  ;;  %v896_v63 = vadd.f32 %v895_v57, %v894_v54  ;;  %v3391_v0 = vadd.f32 %v2771_v61, %v3280_v29  ;;  %v809_v2 = vpop.f32.mrb[15].mxu0  ;;  %v899_v9 = vsel %vm818_vm2, %v871_v58, 0.0 }
 0x106   : > { %v897_v4 = vsel %vm818_vm2, %v870_v60, 0.0  ;;  %v810_v6 = vadd.f32 %v3280_v29, %v809_v2 }
 0x107   : > { %v898_v7 = vadd.f32 %v897_v4, %v896_v63  ;;  %v845_v8 = vadd.f32 %v844_v3, %v843_v62  ;;  %v873_v10 = vmul.f32 %v3391_v0, %v3391_v0  ;;  %v848_v16 = vsel %vm818_vm2, %v3391_v0, 0.0 }
 0x108   : > { %v846_v11 = vsel %vm818_vm2, %v810_v6, 0.0  ;;  %v872_v12 = vmul.f32 %v810_v6, %v810_v6 }
 0x109   : > { %v847_v13 = vadd.f32 %v846_v11, %v845_v8  ;;  %v900_v14 = vadd.f32 %v899_v9, %v898_v7  ;;  %v903_v29 = vsel %vm818_vm2, %v873_v10, 0.0 }
 0x10a   : > { %v901_v17 = vsel %vm818_vm2, %v872_v12, 0.0 }
 0x10b   : > { %v849_v18 = vadd.f32 %v848_v16, %v847_v13  ;;  %v902_v20 = vadd.f32 %v901_v17, %v900_v14 }
 0x10d   : > { %v850_v21 = vrot.slane %v849_v18, 4  ;;  %v904_v22 = vadd.f32 %v903_v29, %v902_v20 }
 0x10f   : > { %v851_v23 = vadd.f32 %v850_v21, %v849_v18  ;;  %v905_v24 = vrot.slane %v904_v22, 4 }
 0x111   : > { %v852_v25 = vrot.slane %v851_v23, 2  ;;  %v906_v26 = vadd.f32 %v905_v24, %v904_v22 }
 0x113   : > { %v853_v27 = vadd.f32 %v852_v25, %v851_v23  ;;  %v907_v28 = vrot.slane %v906_v26, 2 }
 0x115   : > { %v854_v32 = vrot.slane %v853_v27, 1  ;;  %v908_v34 = vadd.f32 %v907_v28, %v906_v26 }
 0x117   : > { %v855_v35 = vadd.f32 %v854_v32, %v853_v27  ;;  %v909_v37 = vrot.slane %v908_v34, 1 }
 0x119   : > { %v3405_v38 = vmul.f32 0.0078125, %v855_v35  ;;  %v910_v39 = vadd.f32 %v909_v37, %v908_v34 }
 0x11b   : > { %v911_v40 = vmul.f32 0.0078125, %v910_v39  ;;  %v912_v42 = vmul.f32 %v3405_v38, %v3405_v38  ;;  %v929_v43 = vsub.f32 %v810_v6, %v3405_v38  ;;  %v915_v45 = vsub.f32 %v3286_v33, %v3405_v38 }
 0x11c   : > { %v916_v46 = vsub.f32 %v3283_v31, %v3405_v38  ;;  %v917_v47 = vsub.f32 %v3302_v44, %v3405_v38  ;;  %v918_v49 = vsub.f32 %v3298_v41, %v3405_v38  ;;  %v919_v50 = vsub.f32 %v3317_v55, %v3405_v38 }
 0x11d   : > { %v913_v52 = vsub.f32 %v911_v40, %v912_v42  ;;  %v920_v54 = vsub.f32 %v3311_v51, %v3405_v38  ;;  %v921_v56 = vsub.f32 %v3333_v5, %v3405_v38  ;;  %v922_v33 = vsub.f32 %v3327_v1, %v3405_v38 }
 0x11e   : > { %v923_v31 = vsub.f32 %v3349_v19, %v3405_v38  ;;  %v924_v44 = vsub.f32 %v3343_v15, %v3405_v38  ;;  %v925_v41 = vsub.f32 %v3365_v36, %v3405_v38  ;;  %v926_v55 = vsub.f32 %v3359_v30, %v3405_v38  ;;  %v3443_v15 = vld [vmem:[%s4305_s4] ss:$0 sm:$0xff] }
 0x11f   : > { %v914_v57 = vmax.f32 %v913_v52, 0.0  ;;  %v927_v51 = vsub.f32 %v3381_v53, %v3405_v38  ;;  %v928_v5 = vsub.f32 %v3375_v48, %v3405_v38  ;;  %v930_v1 = vsub.f32 %v3391_v0, %v3405_v38  ;;  %v3448_v53 = vld [vmem:[%s4306_s5] ss:$0 sm:$0xff] }
 0x121   : > { %v931_v19 = vadd.f32 1e-05, %v914_v57 }
 0x123   : > { %3066 = vrsqrt.f32 %v931_v19 }
 0x12d   : > { %v3067_v58 = vpop.eup %3066 }
 0x12e   : > { %v947_v36 = vmul.f32 %v3067_v58, %v929_v43  ;;  %v933_v30 = vmul.f32 %v3067_v58, %v915_v45  ;;  %v934_v59 = vmul.f32 %v3067_v58, %v916_v46  ;;  %v935_v60 = vmul.f32 %v3067_v58, %v917_v47 }
 0x12f   : > { %v936_v48 = vmul.f32 %v3067_v58, %v918_v49  ;;  %v937_v61 = vmul.f32 %v3067_v58, %v919_v50  ;;  %v938_v62 = vmul.f32 %v3067_v58, %v920_v54  ;;  %v939_v63 = vmul.f32 %v3067_v58, %v921_v56 }
 0x130   : > { %v956_v0 = vmul.f32 %v3443_v15, %v933_v30  ;;  %v957_v2 = vmul.f32 %v3443_v15, %v934_v59  ;;  %v958_v3 = vmul.f32 %v3443_v15, %v935_v60  ;;  %v940_v10 = vmul.f32 %v3067_v58, %v922_v33  ;;  %v1379_v59 = vld [vmem:[%s4311_s10 + $0x8] sm:$0xff] }
 0x131   : > { %v959_v4 = vmul.f32 %v3443_v15, %v936_v48  ;;  %v960_v6 = vmul.f32 %v3443_v15, %v937_v61  ;;  %v961_v16 = vmul.f32 %v3443_v15, %v938_v62  ;;  %v962_v17 = vmul.f32 %v3443_v15, %v939_v63  ;;  %v1381_v48 = vld [vmem:[%s4311_s10 + $0x18] sm:$0xff]  ;;  %v1382_v62 = vld [vmem:[%s4311_s10 + $0x20] sm:$0xff]  ;;  %v1383_v63 = vld [vmem:[%s4311_s10 + $0x28] sm:$0xff] }
 0x132   : > { %v979_v7 = vadd.f32 %v3448_v53, %v956_v0  ;;  %v980_v8 = vadd.f32 %v3448_v53, %v957_v2  ;;  %v981_v9 = vadd.f32 %v3448_v53, %v958_v3  ;;  %v941_v20 = vmul.f32 %v3067_v58, %v923_v31  ;;  %v1384_v2 = vld [vmem:[%s4311_s10 + $0x30] sm:$0xff]  ;;  %v1385_v3 = vld [vmem:[%s4311_s10 + $0x38] sm:$0xff] }
 0x133   : > { %v982_v13 = vadd.f32 %v3448_v53, %v959_v4  ;;  %v983_v14 = vadd.f32 %v3448_v53, %v960_v6  ;;  %v942_v29 = vmul.f32 %v3067_v58, %v924_v44  ;;  %v943_v21 = vmul.f32 %v3067_v58, %v925_v41  ;;  %v1386_v6 = vld [vmem:[%s4311_s10 + $0x40] sm:$0xff] }
 0x134   : > { %v995_v11 = vmax.f32 %v979_v7, 0.0  ;;  %v996_v12 = vmax.f32 %v980_v8, 0.0  ;;  %v997_v18 = vmax.f32 %v981_v9, 0.0  ;;  %v944_v22 = vmul.f32 %v3067_v58, %v926_v55  ;;  %v1387_v7 = vld [vmem:[%s4311_s10 + $0x48] sm:$0xff]  ;;  %v1388_v8 = vld [vmem:[%s4311_s10 + $0x50] sm:$0xff] }
 0x135   : > { %v945_v23 = vmul.f32 %v3067_v58, %v927_v51  ;;  %v946_v24 = vmul.f32 %v3067_v58, %v928_v5  ;;  %v998_v25 = vmax.f32 %v982_v13, 0.0  ;;  %v984_v26 = vadd.f32 %v3448_v53, %v961_v16  ;;  %v1391_v13 = vld [vmem:[%s4311_s10 + $0x68] sm:$0xff]  ;;  %v1392_v16 = vld [vmem:[%s4311_s10 + $0x70] sm:$0xff] }
 0x136   : > { %2788 = vmatprep.mubr.msk.f32.mxu1 %vm818_vm2, %v995_v11  ;;  %v963_v27 = vmul.f32 %v3443_v15, %v940_v10  ;;  %v999_v28 = vmax.f32 %v983_v14, 0.0  ;;  %v985_v32 = vadd.f32 %v3448_v53, %v962_v17  ;;  %v964_v34 = vmul.f32 %v3443_v15, %v941_v20  ;;  %v1389_v10 = vld [vmem:[%s4311_s10 + $0x58] sm:$0xff]  ;;  %v3549_v20 = vld [vmem:[%s4308_s7] ss:$0 sm:$0xff] }
 0x137   : > { %2789 = vmatmul.mubr.msk.f32.vlgmr.msra.gmra.mrb[0].mxu1 %vm818_vm2, %v996_v12  ;;  %v948_v35 = vmul.f32 %v3067_v58, %v930_v1  ;;  %v1000_v37 = vmax.f32 %v984_v26, 0.0  ;;  %v965_v39 = vmul.f32 %v3443_v15, %v942_v29  ;;  %v966_v43 = vmul.f32 %v3443_v15, %v943_v21  ;;  %v1390_v12 = vld [vmem:[%s4311_s10 + $0x60] sm:$0xff]  ;;  %v1393_v17 = vld [vmem:[%s4311_s10 + $0x78] sm:$0xff] }
 0x138   : > { %2791 = vmatprep.mubr.msk.f32.mxu1 %vm818_vm2, %v997_v18  ;;  %v986_v38 = vadd.f32 %v3448_v53, %v963_v27  ;;  %v1001_v40 = vmax.f32 %v985_v32, 0.0  ;;  %v987_v42 = vadd.f32 %v3448_v53, %v964_v34  ;;  %v967_v47 = vmul.f32 %v3443_v15, %v944_v22 }
 0x139   : > { %v988_v46 = vadd.f32 %v3448_v53, %v965_v39  ;;  %v989_v50 = vadd.f32 %v3448_v53, %v966_v43  ;;  %v968_v52 = vmul.f32 %v3443_v15, %v945_v23  ;;  %v969_v33 = vmul.f32 %v3443_v15, %v946_v24 }
 0x13a   : > { %v1002_v45 = vmax.f32 %v986_v38, 0.0  ;;  %v1003_v49 = vmax.f32 %v987_v42, 0.0  ;;  %v990_v56 = vadd.f32 %v3448_v53, %v967_v47  ;;  %v970_v31 = vmul.f32 %v3443_v15, %v947_v36 }
 0x13b   : > { %2792 = vmatmul.mubr.msk.f32.gmra.mrb[2].mxu1 %vm818_vm2, %v998_v25  ;;  %v1004_v54 = vmax.f32 %v988_v46, 0.0  ;;  %v1005_v44 = vmax.f32 %v989_v50, 0.0  ;;  %v991_v41 = vadd.f32 %v3448_v53, %v968_v52  ;;  %v992_v57 = vadd.f32 %v3448_v53, %v969_v33 }
 0x13c   : > { %2794 = vmatprep.mubr.msk.f32.mxu1 %vm818_vm2, %v999_v28  ;;  %v1006_v55 = vmax.f32 %v990_v56, 0.0  ;;  %v971_v51 = vmul.f32 %v3443_v15, %v948_v35  ;;  %v993_v1 = vadd.f32 %v3448_v53, %v970_v31  ;;  %v1378_v15 = vld [vmem:[%s4311_s10] sm:$0xff]  ;;  %v2946_v0 = vpack.c.bf16 %v1383_v63, %v1382_v62 }
 0x13d   : > { %v1007_v5 = vmax.f32 %v991_v41, 0.0  ;;  %v1008_v19 = vmax.f32 %v992_v57, 0.0  ;;  %v2938_v60 = vpack.c.bf16 %v1379_v59, %v1378_v15  ;;  %v2950_v4 = vpack.c.bf16 %v1385_v3, %v1384_v2 }
 0x13e   : > { %v994_v58 = vadd.f32 %v3448_v53, %v971_v51  ;;  %v1009_v36 = vmax.f32 %v993_v1, 0.0  ;;  %v1380_v53 = vld [vmem:[%s4311_s10 + $0x10] sm:$0xff]  ;;  %v2954_v9 = vpack.c.bf16 %v1387_v7, %v1386_v6  ;;  %v2958_v11 = vpack.c.bf16 %v1389_v10, %v1388_v8 }
 0x13f   : > { %2795 = vmatmul.mubr.msk.f32.gmra.mrb[4].mxu1 %vm818_vm2, %v1000_v37  ;;  %2939 = vmatprep.subr.bf16.mxu0 %v2938_v60  ;;  %v2942_v61 = vpack.c.bf16 %v1381_v48, %v1380_v53  ;;  %v2962_v14 = vpack.c.bf16 %v1391_v13, %v1390_v12  ;;  %v2966_v18 = vpack.c.bf16 %v1393_v17, %v1392_v16 }
 0x140   : > { %2797 = vmatprep.mubr.msk.f32.mxu1 %vm818_vm2, %v1001_v40  ;;  %v1010_v30 = vmax.f32 %v994_v58, 0.0  ;;  %2941 = vmatpush3.bf16.msra.mxu0 %v2938_v60 }
 0x141   : > { %2943 = vmatprep.subr.bf16.mxu0 %v2942_v61 }
 0x143   : > { %2798 = vmatmul.mubr.msk.f32.gmra.mrb[6].mxu1 %vm818_vm2, %v1002_v45 }
 0x144   : > { %2800 = vmatprep.mubr.msk.f32.mxu1 %vm818_vm2, %v1003_v49  ;;  %2945 = vmatpush3.bf16.msra.mxu0 %v2942_v61 }
 0x145   : > { %2947 = vmatprep.subr.bf16.mxu0 %v2946_v0 }
 0x147   : > { %2801 = vmatmul.mubr.msk.f32.gmra.mrb[8].mxu1 %vm818_vm2, %v1004_v54 }
 0x148   : > { %2803 = vmatprep.mubr.msk.f32.mxu1 %vm818_vm2, %v1005_v44  ;;  %2949 = vmatpush3.bf16.msra.mxu0 %v2946_v0 }
 0x149   : > { %2951 = vmatprep.subr.bf16.mxu0 %v2950_v4 }
 0x14b   : > { %2804 = vmatmul.mubr.msk.f32.gmra.mrb[10].mxu1 %vm818_vm2, %v1006_v55 }
 0x14c   : > { %2806 = vmatprep.mubr.msk.f32.mxu1 %vm818_vm2, %v1007_v5  ;;  %2953 = vmatpush3.bf16.msra.mxu0 %v2950_v4 }
 0x14d   : > { %2955 = vmatprep.subr.bf16.mxu0 %v2954_v9 }
 0x14f   : > { %2807 = vmatmul.mubr.msk.f32.gmra.mrb[12].mxu1 %vm818_vm2, %v1008_v19 }
 0x150   : > { %2809 = vmatprep.mubr.msk.f32.mxu1 %vm818_vm2, %v1009_v36  ;;  %2957 = vmatpush3.bf16.msra.mxu0 %v2954_v9 }
 0x151   : > { %2959 = vmatprep.subr.bf16.mxu0 %v2958_v11 }
 0x153   : > { %2810 = vmatmul.mubr.msk.f32.gmra.mrb[14].mxu1 %vm818_vm2, %v1010_v30 }
 0x154   : > { %2961 = vmatpush3.bf16.msra.mxu0 %v2958_v11 }
 0x155   : > { %2963 = vmatprep.subr.bf16.mxu0 %v2962_v14 }
 0x158   : > { %2965 = vmatpush3.bf16.msra.mxu0 %v2962_v14 }
 0x159   : > { %2967 = vmatprep.subr.bf16.mxu0 %v2966_v18 }
 0x15c   : > { %2969 = vmatpush3.bf16.msra.mxu0 %v2966_v18 }
 0x20a   : > { %v2790_v29 = vpop.f32.mrb[0].mxu1 }
 0x20b   : > { %v3552_v21 = vadd.f32 %v2790_v29, %v3549_v20  ;;  %v1140_v22 = vpop.f32.mrb[1].mxu1 }
 0x20c   : > { %v3555_v23 = vadd.f32 %v3549_v20, %v1140_v22 }
 0x20d   : > { %v1242_v24 = vmul.f32 %v3552_v21, %v3552_v21 }
 0x20e   : > { %v1219_v25 = vadd.f32 %v3552_v21, %v3555_v23  ;;  %v1241_v26 = vmul.f32 %v3555_v23, %v3555_v23  ;;  %v2793_v27 = vpop.f32.mrb[2].mxu1 }
 0x20f   : > { %v1150_v28 = vpop.f32.mrb[3].mxu1  ;;  %v3564_v34 = vadd.f32 %v2793_v27, %v3549_v20 }
 0x210   : > { %v1257_v32 = vadd.f32 %v1242_v24, %v1241_v26  ;;  %v3567_v35 = vadd.f32 %v3549_v20, %v1150_v28 }
 0x211   : > { %v1244_v43 = vmul.f32 %v3564_v34, %v3564_v34 }
 0x212   : > { %v1220_v37 = vadd.f32 %v1219_v25, %v3567_v35  ;;  %v1243_v38 = vmul.f32 %v3567_v35, %v3567_v35  ;;  %v2796_v39 = vpop.f32.mrb[4].mxu1 }
 0x213   : > { %v3573_v40 = vadd.f32 %v2796_v39, %v3549_v20  ;;  %v1160_v42 = vpop.f32.mrb[5].mxu1 }
 0x214   : > { %v1258_v45 = vadd.f32 %v1257_v32, %v1243_v38  ;;  %v3578_v46 = vadd.f32 %v3549_v20, %v1160_v42  ;;  %v1221_v47 = vadd.f32 %v1220_v37, %v3564_v34 }
 0x215   : > { %v1246_v56 = vmul.f32 %v3573_v40, %v3573_v40 }
 0x216   : > { %v1222_v49 = vadd.f32 %v1221_v47, %v3578_v46  ;;  %v1245_v50 = vmul.f32 %v3578_v46, %v3578_v46  ;;  %v1259_v52 = vadd.f32 %v1258_v45, %v1244_v43  ;;  %v2799_v54 = vpop.f32.mrb[6].mxu1 }
 0x217   : > { %v1170_v33 = vpop.f32.mrb[7].mxu1  ;;  %v3587_v44 = vadd.f32 %v2799_v54, %v3549_v20 }
 0x218   : > { %v1260_v31 = vadd.f32 %v1259_v52, %v1245_v50  ;;  %v3590_v41 = vadd.f32 %v3549_v20, %v1170_v33  ;;  %v1223_v55 = vadd.f32 %v1222_v49, %v3573_v40 }
 0x219   : > { %v1248_v36 = vmul.f32 %v3587_v44, %v3587_v44 }
 0x21a   : > { %v1224_v57 = vadd.f32 %v1223_v55, %v3590_v41  ;;  %v1247_v51 = vmul.f32 %v3590_v41, %v3590_v41  ;;  %v1261_v5 = vadd.f32 %v1260_v31, %v1246_v56  ;;  %v2802_v1 = vpop.f32.mrb[8].mxu1 }
 0x21b   : > { %v3597_v19 = vadd.f32 %v2802_v1, %v3549_v20  ;;  %v1180_v58 = vpop.f32.mrb[9].mxu1 }
 0x21c   : > { %v1262_v30 = vadd.f32 %v1261_v5, %v1247_v51  ;;  %v3602_v15 = vadd.f32 %v3549_v20, %v1180_v58  ;;  %v1225_v59 = vadd.f32 %v1224_v57, %v3587_v44 }
 0x21d   : > { %v1250_v62 = vmul.f32 %v3597_v19, %v3597_v19 }
 0x21e   : > { %v1226_v60 = vadd.f32 %v1225_v59, %v3602_v15  ;;  %v1249_v53 = vmul.f32 %v3602_v15, %v3602_v15  ;;  %v1263_v48 = vadd.f32 %v1262_v30, %v1248_v36  ;;  %v2805_v61 = vpop.f32.mrb[10].mxu1 }
 0x21f   : > { %v1190_v63 = vpop.f32.mrb[11].mxu1  ;;  %v3611_v2 = vadd.f32 %v2805_v61, %v3549_v20 }
 0x220   : > { %v1264_v0 = vadd.f32 %v1263_v48, %v1249_v53  ;;  %v3614_v3 = vadd.f32 %v3549_v20, %v1190_v63  ;;  %v1227_v4 = vadd.f32 %v1226_v60, %v3597_v19 }
 0x221   : > { %v1252_v12 = vmul.f32 %v3611_v2, %v3611_v2 }
 0x222   : > { %v1228_v6 = vadd.f32 %v1227_v4, %v3614_v3  ;;  %v1251_v7 = vmul.f32 %v3614_v3, %v3614_v3  ;;  %v1265_v8 = vadd.f32 %v1264_v0, %v1250_v62  ;;  %v2808_v9 = vpop.f32.mrb[12].mxu1 }
 0x223   : > { %v3621_v10 = vadd.f32 %v2808_v9, %v3549_v20  ;;  %v1200_v11 = vpop.f32.mrb[13].mxu1  ;;  %v3667_v9 = vld [vmem:[%s4310_s9] ss:$0 sm:$0xff] }
 0x224   : > { %v1266_v13 = vadd.f32 %v1265_v8, %v1251_v7  ;;  %v3626_v14 = vadd.f32 %v3549_v20, %v1200_v11  ;;  %v1229_v16 = vadd.f32 %v1228_v6, %v3611_v2 }
 0x225   : > { %v1254_v24 = vmul.f32 %v3621_v10, %v3621_v10 }
 0x226   : > { %v1230_v17 = vadd.f32 %v1229_v16, %v3626_v14  ;;  %v1253_v18 = vmul.f32 %v3626_v14, %v3626_v14  ;;  %v1267_v29 = vadd.f32 %v1266_v13, %v1252_v12  ;;  %v2811_v22 = vpop.f32.mrb[14].mxu1 }
 0x227   : > { %v1210_v25 = vpop.f32.mrb[15].mxu1  ;;  %v3635_v27 = vadd.f32 %v2811_v22, %v3549_v20 }
 0x228   : > { %v1268_v26 = vadd.f32 %v1267_v29, %v1253_v18  ;;  %v1211_v28 = vadd.f32 %v3549_v20, %v1210_v25  ;;  %v1231_v32 = vadd.f32 %v1230_v17, %v3621_v10 }
 0x229   : > { %v1256_v42 = vmul.f32 %v3635_v27, %v3635_v27 }
 0x22a   : > { %v1232_v37 = vadd.f32 %v1231_v32, %v1211_v28  ;;  %v1255_v38 = vmul.f32 %v1211_v28, %v1211_v28  ;;  %v1269_v39 = vadd.f32 %v1268_v26, %v1254_v24 }
 0x22c   : > { %v1233_v43 = vadd.f32 %v1232_v37, %v3635_v27  ;;  %v1270_v45 = vadd.f32 %v1269_v39, %v1255_v38 }
 0x22e   : > { %v1234_v47 = vrot.slane %v1233_v43, 4  ;;  %v1271_v49 = vadd.f32 %v1270_v45, %v1256_v42 }
 0x230   : > { %v1235_v50 = vadd.f32 %v1234_v47, %v1233_v43  ;;  %v1272_v52 = vrot.slane %v1271_v49, 4 }
 0x232   : > { %v1236_v54 = vrot.slane %v1235_v50, 2  ;;  %v1273_v56 = vadd.f32 %v1272_v52, %v1271_v49 }
 0x234   : > { %v1237_v33 = vadd.f32 %v1236_v54, %v1235_v50  ;;  %v1274_v31 = vrot.slane %v1273_v56, 2 }
 0x236   : > { %v1238_v20 = vrot.slane %v1237_v33, 1  ;;  %v1275_v55 = vadd.f32 %v1274_v31, %v1273_v56 }
 0x238   : > { %v1239_v57 = vadd.f32 %v1238_v20, %v1237_v33  ;;  %v1276_v51 = vrot.slane %v1275_v55, 1 }
 0x23a   : > { %v1240_v5 = vmul.f32 0.0078125, %v1239_v57  ;;  %v1277_v1 = vadd.f32 %v1276_v51, %v1275_v55 }
 0x23c   : > { %v1278_v58 = vmul.f32 0.0078125, %v1277_v1  ;;  %v1279_v36 = vmul.f32 %v1240_v5, %v1240_v5  ;;  %v1296_v30 = vsub.f32 %v1211_v28, %v1240_v5  ;;  %v1282_v59 = vsub.f32 %v3555_v23, %v1240_v5 }
 0x23d   : > { %v1283_v60 = vsub.f32 %v3552_v21, %v1240_v5  ;;  %v1284_v53 = vsub.f32 %v3567_v35, %v1240_v5  ;;  %v1285_v48 = vsub.f32 %v3564_v34, %v1240_v5  ;;  %v1286_v61 = vsub.f32 %v3578_v46, %v1240_v5 }
 0x23e   : > { %v1280_v62 = vsub.f32 %v1278_v58, %v1279_v36  ;;  %v1287_v63 = vsub.f32 %v3573_v40, %v1240_v5  ;;  %v1288_v0 = vsub.f32 %v3590_v41, %v1240_v5  ;;  %v1289_v4 = vsub.f32 %v3587_v44, %v1240_v5  ;;  %v3660_v44 = vld [vmem:[%s4309_s8] ss:$0 sm:$0xff] }
 0x23f   : > { %v1290_v6 = vsub.f32 %v3602_v15, %v1240_v5  ;;  %v1291_v7 = vsub.f32 %v3597_v19, %v1240_v5  ;;  %v1292_v23 = vsub.f32 %v3614_v3, %v1240_v5  ;;  %v1293_v21 = vsub.f32 %v3611_v2, %v1240_v5 }
 0x240   : > { %v1281_v35 = vmax.f32 %v1280_v62, 0.0  ;;  %v1294_v34 = vsub.f32 %v3626_v14, %v1240_v5  ;;  %v1295_v46 = vsub.f32 %v3621_v10, %v1240_v5  ;;  %v1297_v8 = vsub.f32 %v3635_v27, %v1240_v5 }
 0x242   : > { %v1298_v40 = vadd.f32 1e-05, %v1281_v35 }
 0x244   : > { %3068 = vrsqrt.f32 %v1298_v40 }
 0x24e   : > { %v3069_v41 = vpop.eup %3068 }
 0x24f   : > { %v3662_v19 = vmul.f32 %v3069_v41, %v1296_v30  ;;  %v1300_v15 = vmul.f32 %v3069_v41, %v1282_v59  ;;  %v1301_v3 = vmul.f32 %v3069_v41, %v1283_v60  ;;  %v1302_v2 = vmul.f32 %v3069_v41, %v1284_v53 }
 0x250   : > { %v1303_v10 = vmul.f32 %v3069_v41, %v1285_v48  ;;  %v1304_v11 = vmul.f32 %v3069_v41, %v1286_v61  ;;  %v1305_v12 = vmul.f32 %v3069_v41, %v1287_v63  ;;  %v1306_v13 = vmul.f32 %v3069_v41, %v1288_v0 }
 0x251   : > { %v1323_v14 = vmul.f32 %v3660_v44, %v1300_v15  ;;  %v1324_v16 = vmul.f32 %v3660_v44, %v1301_v3  ;;  %v1325_v17 = vmul.f32 %v3660_v44, %v1302_v2  ;;  %v1307_v18 = vmul.f32 %v3069_v41, %v1289_v4  ;;  %v1783_v2 = vld [vmem:[%s4315_s14 + $0x10] sm:$0xff] }
 0x252   : > { %v1326_v29 = vmul.f32 %v3660_v44, %v1303_v10  ;;  %v1327_v22 = vmul.f32 %v3660_v44, %v1304_v11  ;;  %v1328_v38 = vmul.f32 %v3660_v44, %v1305_v12  ;;  %v1329_v39 = vmul.f32 %v3660_v44, %v1306_v13  ;;  %v1784_v11 = vld [vmem:[%s4315_s14 + $0x18] sm:$0xff] }
 0x253   : > { %v1346_v24 = vadd.f32 %v3667_v9, %v1323_v14  ;;  %v1347_v25 = vadd.f32 %v3667_v9, %v1324_v16  ;;  %v1348_v26 = vadd.f32 %v3667_v9, %v1325_v17  ;;  %v1308_v43 = vmul.f32 %v3069_v41, %v1290_v6  ;;  %v1785_v14 = vld [vmem:[%s4315_s14 + $0x20] sm:$0xff]  ;;  %v1786_v16 = vld [vmem:[%s4315_s14 + $0x28] sm:$0xff] }
 0x254   : > { %v1349_v32 = vadd.f32 %v3667_v9, %v1326_v29  ;;  %v1350_v37 = vadd.f32 %v3667_v9, %v1327_v22  ;;  %v1309_v45 = vmul.f32 %v3069_v41, %v1291_v7  ;;  %v1310_v47 = vmul.f32 %v3069_v41, %v1292_v23  ;;  %v1788_v29 = vld [vmem:[%s4315_s14 + $0x38] sm:$0xff] }
 0x255   : > { %v1362_v27 = vmax.f32 %v1346_v24, 0.0  ;;  %v1363_v28 = vmax.f32 %v1347_v25, 0.0  ;;  %v1364_v42 = vmax.f32 %v1348_v26, 0.0  ;;  %v1311_v49 = vmul.f32 %v3069_v41, %v1293_v21  ;;  %v1870_v24 = vld [vmem:[%s4317_s16] sm:$0xff]  ;;  %v1871_v25 = vld [vmem:[%s4317_s16 + $0x8] sm:$0xff]  ;;  %v1872_v26 = vld [vmem:[%s4317_s16 + $0x10] sm:$0xff] }
 0x256   : > { %v1312_v50 = vmul.f32 %v3069_v41, %v1294_v34  ;;  %v1313_v52 = vmul.f32 %v3069_v41, %v1295_v46  ;;  %v1315_v54 = vmul.f32 %v3069_v41, %v1297_v8  ;;  %v1365_v56 = vmax.f32 %v1349_v32, 0.0 }
 0x257   : > { %2844 = vmatprep.mubr.f32.mxu0 %v1362_v27  ;;  %v1351_v33 = vadd.f32 %v3667_v9, %v1328_v38  ;;  %v1330_v31 = vmul.f32 %v3660_v44, %v1307_v18  ;;  %v1366_v20 = vmax.f32 %v1350_v37, 0.0  ;;  %v1352_v55 = vadd.f32 %v3667_v9, %v1329_v39  ;;  %v1787_v18 = vld [vmem:[%s4315_s14 + $0x30] sm:$0xff]  ;;  %v1874_v37 = vld [vmem:[%s4317_s16 + $0x20] sm:$0xff]  ;;  %v1875_v38 = vld [vmem:[%s4317_s16 + $0x28] sm:$0xff] }
 0x258   : > { %2845 = vmatmul.mubr.f32.vlgmr.msra.gmra.mrb[16].mxu0 %v1363_v28  ;;  %v1331_v57 = vmul.f32 %v3660_v44, %v1308_v43  ;;  %v1332_v1 = vmul.f32 %v3660_v44, %v1309_v45  ;;  %v1333_v30 = vmul.f32 %v3660_v44, %v1310_v47  ;;  %v1334_v53 = vmul.f32 %v3660_v44, %v1311_v49  ;;  %v1873_v28 = vld [vmem:[%s4317_s16 + $0x18] sm:$0xff]  ;;  %v1878_v47 = vld [vmem:[%s4317_s16 + $0x40] sm:$0xff]  ;;  %v1879_v49 = vld [vmem:[%s4317_s16 + $0x48] sm:$0xff] }
 0x259   : > { %2847 = vmatprep.mubr.f32.mxu0 %v1364_v42  ;;  %v1367_v51 = vmax.f32 %v1351_v33, 0.0  ;;  %v1353_v5 = vadd.f32 %v3667_v9, %v1330_v31  ;;  %v1368_v58 = vmax.f32 %v1352_v55, 0.0  ;;  %v1335_v62 = vmul.f32 %v3660_v44, %v1312_v50  ;;  %v1876_v42 = vld [vmem:[%s4317_s16 + $0x30] sm:$0xff]  ;;  %v1877_v43 = vld [vmem:[%s4317_s16 + $0x38] sm:$0xff]  ;;  %v3769_v50 = vld [vmem:[%s4312_s11] ss:$0 sm:$0xff] }
 0x25a   : > { %v1354_v36 = vadd.f32 %v3667_v9, %v1331_v57  ;;  %v1355_v60 = vadd.f32 %v3667_v9, %v1332_v1  ;;  %v1356_v61 = vadd.f32 %v3667_v9, %v1333_v30  ;;  %v1357_v0 = vadd.f32 %v3667_v9, %v1334_v53  ;;  %v1882_v1 = vld [vmem:[%s4317_s16 + $0x60] sm:$0xff] }
 0x25b   : > { %v1369_v59 = vmax.f32 %v1353_v5, 0.0  ;;  %v1336_v4 = vmul.f32 %v3660_v44, %v1313_v52  ;;  %v1358_v7 = vadd.f32 %v3667_v9, %v1335_v62  ;;  %v1337_v23 = vmul.f32 %v3660_v44, %v3662_v19  ;;  %v1781_v19 = vld [vmem:[%s4315_s14] sm:$0xff] }
 0x25c   : > { %2848 = vmatmul.mubr.f32.gmra.mrb[18].mxu0 %v1365_v56  ;;  %v1370_v48 = vmax.f32 %v1354_v36, 0.0  ;;  %v1371_v63 = vmax.f32 %v1355_v60, 0.0  ;;  %v1372_v6 = vmax.f32 %v1356_v61, 0.0  ;;  %v1373_v21 = vmax.f32 %v1357_v0, 0.0  ;;  %v1881_v56 = vld [vmem:[%s4317_s16 + $0x58] sm:$0xff] }
 0x25d   : > { %2850 = vmatprep.mubr.f32.mxu0 %v1366_v20  ;;  %v1359_v35 = vadd.f32 %v3667_v9, %v1336_v4  ;;  %v1338_v34 = vmul.f32 %v3660_v44, %v1315_v54  ;;  %v1374_v46 = vmax.f32 %v1358_v7, 0.0  ;;  %v1360_v8 = vadd.f32 %v3667_v9, %v1337_v23  ;;  %v1782_v44 = vld [vmem:[%s4315_s14 + $0x8] sm:$0xff]  ;;  %v1880_v54 = vld [vmem:[%s4317_s16 + $0x50] sm:$0xff] }
 0x25e   : > { %v3080_v10 = vmov 0.0|0.0   ;;  %v3082_v12 = vmov 0.0   ;;  %v2974_v13 = vpack.c.bf16 %v1784_v11, %v1783_v2  ;;  %v2977_v17 = vpack.c.bf16 %v1786_v16, %v1785_v14 }
 0x25f   : > { %v1375_v40 = vmax.f32 %v1359_v35, 0.0  ;;  %v1361_v41 = vadd.f32 %v3667_v9, %v1338_v34  ;;  %v1376_v15 = vmax.f32 %v1360_v8, 0.0  ;;  %2970 = vmatprep.subr.bf16.mxu1 %v3080_v10  ;;  %v2971_v9 = vpack.c.bf16 %v1782_v44, %v1781_v19  ;;  %2884 = vmatprep.mubr.msk.f32.mxu1 %vm3081_vm3, %v3082_v12 }
 0x260   : > { %2851 = vmatmul.mubr.f32.gmra.mrb[20].mxu0 %v1367_v51  ;;  %2982 = vmatprep.subr.bf16.mxu0 %v3080_v10  ;;  %v2980_v22 = vpack.c.bf16 %v1788_v29, %v1787_v18  ;;  %v2983_v27 = vpack.c.bf16 %v1871_v25, %v1870_v24  ;;  %v2986_v32 = vpack.c.bf16 %v1873_v28, %v1872_v26 }
 0x261   : > { %2853 = vmatprep.mubr.f32.mxu0 %v1368_v58  ;;  %v1377_v3 = vmax.f32 %v1361_v41, 0.0  ;;  %2972 = vmatpush3.bf16.msra.mxu1 %v2971_v9  ;;  %v2989_v39 = vpack.c.bf16 %v1875_v38, %v1874_v37  ;;  %v2992_v45 = vpack.c.bf16 %v1877_v43, %v1876_v42  ;;  %v2995_v52 = vpack.c.bf16 %v1879_v49, %v1878_v47  ;;  %v1883_v58 = vld [vmem:[%s4317_s16 + $0x68] sm:$0xff] }
 0x262   : > { %2973 = vmatprep.subr.bf16.mxu1 %v3080_v10  ;;  %2984 = vmatpush3.bf16.msra.mxu0 %v2983_v27  ;;  %v2998_v57 = vpack.c.bf16 %v1881_v56, %v1880_v54  ;;  %v3001_v0 = vpack.c.bf16 %v1883_v58, %v1882_v1 }
 0x263   : > { %2985 = vmatprep.subr.bf16.mxu0 %v3080_v10 }
 0x264   : > { %2854 = vmatmul.mubr.f32.gmra.mrb[22].mxu0 %v1369_v59 }
 0x265   : > { %2856 = vmatprep.mubr.f32.mxu0 %v1370_v48  ;;  %2975 = vmatpush3.bf16.msra.mxu1 %v2974_v13 }
 0x266   : > { %2976 = vmatprep.subr.bf16.mxu1 %v3080_v10  ;;  %2987 = vmatpush3.bf16.msra.mxu0 %v2986_v32 }
 0x267   : > { %2988 = vmatprep.subr.bf16.mxu0 %v3080_v10 }
 0x268   : > { %2857 = vmatmul.mubr.f32.gmra.mrb[24].mxu0 %v1371_v63 }
 0x269   : > { %2859 = vmatprep.mubr.f32.mxu0 %v1372_v6  ;;  %2978 = vmatpush3.bf16.msra.mxu1 %v2977_v17 }
 0x26a   : > { %2979 = vmatprep.subr.bf16.mxu1 %v3080_v10  ;;  %2990 = vmatpush3.bf16.msra.mxu0 %v2989_v39 }
 0x26b   : > { %2991 = vmatprep.subr.bf16.mxu0 %v3080_v10 }
 0x26c   : > { %2860 = vmatmul.mubr.f32.gmra.mrb[26].mxu0 %v1373_v21 }
 0x26d   : > { %2862 = vmatprep.mubr.f32.mxu0 %v1374_v46  ;;  %2981 = vmatpush3.bf16.msra.mxu1 %v2980_v22 }
 0x26e   : > { %2993 = vmatpush3.bf16.msra.mxu0 %v2992_v45 }
 0x26f   : > { %2994 = vmatprep.subr.bf16.mxu0 %v3080_v10 }
 0x270   : > { %2863 = vmatmul.mubr.f32.gmra.mrb[28].mxu0 %v1375_v40 }
 0x271   : > { %2865 = vmatprep.mubr.f32.mxu0 %v1376_v15 }
 0x272   : > { %2996 = vmatpush3.bf16.msra.mxu0 %v2995_v52 }
 0x273   : > { %2997 = vmatprep.subr.bf16.mxu0 %v3080_v10 }
 0x274   : > { %2866 = vmatmul.mubr.f32.gmra.mrb[30].mxu0 %v1377_v3 }
 0x275   : > { %2919 = vmatprep.mubr.msk.f32.mxu0 %vm3081_vm3, %v3082_v12 }
 0x276   : > { %2999 = vmatpush3.bf16.msra.mxu0 %v2998_v57 }
 0x277   : > { %3000 = vmatprep.subr.bf16.mxu0 %v3080_v10 }
 0x27a   : > { %3002 = vmatpush3.bf16.msra.mxu0 %v3001_v0 }
 0x27b   : > { %3003 = vmatprep.subr.bf16.mxu0 %v3080_v10 }
 0x32b   : > { %v2846_v33 = vpop.f32.mrb[16].mxu0 }
 0x32c   : > { %v3779_v31 = vadd.f32 %v2846_v33, %v3769_v50  ;;  %v1467_v20 = vpop.f32.mrb[17].mxu0 }
 0x32d   : > { %v3782_v55 = vadd.f32 %v3769_v50, %v1467_v20 }
 0x32e   : > { %v1547_v51 = vsel %vm818_vm2, %v3779_v31, 0.0  ;;  %v1585_v5 = vmul.f32 %v3779_v31, %v3779_v31 }
 0x32f   : > { %v1546_v36 = vsel %vm818_vm2, %v3782_v55, 0.0  ;;  %v1584_v30 = vmul.f32 %v3782_v55, %v3782_v55  ;;  %v2849_v59 = vpop.f32.mrb[18].mxu0 }
 0x330   : > { %v1601_v60 = vsel %vm818_vm2, %v1585_v5, 0.0  ;;  %v1548_v53 = vadd.f32 %v1547_v51, %v1546_v36  ;;  %v3801_v48 = vadd.f32 %v2849_v59, %v3769_v50  ;;  %v1477_v61 = vpop.f32.mrb[19].mxu0 }
 0x331   : > { %v1600_v62 = vsel %vm818_vm2, %v1584_v30, 0.0  ;;  %v3805_v63 = vadd.f32 %v3769_v50, %v1477_v61 }
 0x332   : > { %v1602_v4 = vadd.f32 %v1601_v60, %v1600_v62  ;;  %v1587_v6 = vmul.f32 %v3801_v48, %v3801_v48  ;;  %v1551_v8 = vsel %vm818_vm2, %v3801_v48, 0.0 }
 0x333   : > { %v1549_v7 = vsel %vm818_vm2, %v3805_v63, 0.0  ;;  %v1586_v23 = vmul.f32 %v3805_v63, %v3805_v63  ;;  %v2852_v21 = vpop.f32.mrb[20].mxu0 }
 0x334   : > { %v1550_v35 = vadd.f32 %v1549_v7, %v1548_v53  ;;  %v3815_v34 = vadd.f32 %v2852_v21, %v3769_v50  ;;  %v1487_v46 = vpop.f32.mrb[21].mxu0  ;;  %v1605_v19 = vsel %vm818_vm2, %v1587_v6, 0.0 }
 0x335   : > { %v1603_v40 = vsel %vm818_vm2, %v1586_v23, 0.0  ;;  %v3821_v41 = vadd.f32 %v3769_v50, %v1487_v46 }
 0x336   : > { %v1604_v15 = vadd.f32 %v1603_v40, %v1602_v4  ;;  %v1552_v3 = vadd.f32 %v1551_v8, %v1550_v35  ;;  %v1589_v44 = vmul.f32 %v3815_v34, %v3815_v34  ;;  %v1555_v10 = vsel %vm818_vm2, %v3815_v34, 0.0 }
 0x337   : > { %v1553_v2 = vsel %vm818_vm2, %v3821_v41, 0.0  ;;  %v1588_v9 = vmul.f32 %v3821_v41, %v3821_v41  ;;  %v2855_v11 = vpop.f32.mrb[22].mxu0 }
 0x338   : > { %v1554_v13 = vadd.f32 %v1553_v2, %v1552_v3  ;;  %v1606_v14 = vadd.f32 %v1605_v19, %v1604_v15  ;;  %v3832_v16 = vadd.f32 %v2855_v11, %v3769_v50  ;;  %v1497_v17 = vpop.f32.mrb[23].mxu0  ;;  %v1609_v25 = vsel %vm818_vm2, %v1589_v44, 0.0 }
 0x339   : > { %v1607_v18 = vsel %vm818_vm2, %v1588_v9, 0.0  ;;  %v3838_v29 = vadd.f32 %v3769_v50, %v1497_v17 }
 0x33a   : > { %v1608_v22 = vadd.f32 %v1607_v18, %v1606_v14  ;;  %v1556_v24 = vadd.f32 %v1555_v10, %v1554_v13  ;;  %v1591_v26 = vmul.f32 %v3832_v16, %v3832_v16  ;;  %v1559_v43 = vsel %vm818_vm2, %v3832_v16, 0.0 }
 0x33b   : > { %v1557_v27 = vsel %vm818_vm2, %v3838_v29, 0.0  ;;  %v1590_v28 = vmul.f32 %v3838_v29, %v3838_v29  ;;  %v2858_v32 = vpop.f32.mrb[24].mxu0 }
 0x33c   : > { %v1558_v37 = vadd.f32 %v1557_v27, %v1556_v24  ;;  %v1610_v38 = vadd.f32 %v1609_v25, %v1608_v22  ;;  %v3848_v39 = vadd.f32 %v2858_v32, %v3769_v50  ;;  %v1507_v42 = vpop.f32.mrb[25].mxu0  ;;  %v1613_v54 = vsel %vm818_vm2, %v1591_v26, 0.0 }
 0x33d   : > { %v1611_v45 = vsel %vm818_vm2, %v1590_v28, 0.0  ;;  %v3854_v47 = vadd.f32 %v3769_v50, %v1507_v42 }
 0x33e   : > { %v1612_v49 = vadd.f32 %v1611_v45, %v1610_v38  ;;  %v1560_v52 = vadd.f32 %v1559_v43, %v1558_v37  ;;  %v1593_v56 = vmul.f32 %v3848_v39, %v3848_v39  ;;  %v1563_v36 = vsel %vm818_vm2, %v3848_v39, 0.0 }
 0x33f   : > { %v1561_v33 = vsel %vm818_vm2, %v3854_v47, 0.0  ;;  %v1592_v20 = vmul.f32 %v3854_v47, %v3854_v47  ;;  %v2861_v57 = vpop.f32.mrb[26].mxu0 }
 0x340   : > { %v1562_v51 = vadd.f32 %v1561_v33, %v1560_v52  ;;  %v1614_v5 = vadd.f32 %v1613_v54, %v1612_v49  ;;  %v3864_v1 = vadd.f32 %v2861_v57, %v3769_v50  ;;  %v1517_v58 = vpop.f32.mrb[27].mxu0  ;;  %v1617_v61 = vsel %vm818_vm2, %v1593_v56, 0.0 }
 0x341   : > { %v1615_v30 = vsel %vm818_vm2, %v1592_v20, 0.0  ;;  %v3870_v59 = vadd.f32 %v3769_v50, %v1517_v58 }
 0x342   : > { %v1616_v60 = vadd.f32 %v1615_v30, %v1614_v5  ;;  %v1564_v53 = vadd.f32 %v1563_v36, %v1562_v51  ;;  %v1595_v62 = vmul.f32 %v3864_v1, %v3864_v1  ;;  %v1567_v46 = vsel %vm818_vm2, %v3864_v1, 0.0 }
 0x343   : > { %v1565_v0 = vsel %vm818_vm2, %v3870_v59, 0.0  ;;  %v1594_v4 = vmul.f32 %v3870_v59, %v3870_v59  ;;  %v2864_v6 = vpop.f32.mrb[28].mxu0 }
 0x344   : > { %v1566_v7 = vadd.f32 %v1565_v0, %v1564_v53  ;;  %v1618_v23 = vadd.f32 %v1617_v61, %v1616_v60  ;;  %v3880_v21 = vadd.f32 %v2864_v6, %v3769_v50  ;;  %v1527_v35 = vpop.f32.mrb[29].mxu0  ;;  %v1621_v19 = vsel %vm818_vm2, %v1595_v62, 0.0 }
 0x345   : > { %v1619_v8 = vsel %vm818_vm2, %v1594_v4, 0.0  ;;  %v3886_v40 = vadd.f32 %v3769_v50, %v1527_v35 }
 0x346   : > { %v1620_v15 = vadd.f32 %v1619_v8, %v1618_v23  ;;  %v1568_v3 = vadd.f32 %v1567_v46, %v1566_v7  ;;  %v1597_v44 = vmul.f32 %v3880_v21, %v3880_v21  ;;  %v1571_v18 = vsel %vm818_vm2, %v3880_v21, 0.0 }
 0x347   : > { %v1569_v2 = vsel %vm818_vm2, %v3886_v40, 0.0  ;;  %v1596_v9 = vmul.f32 %v3886_v40, %v3886_v40  ;;  %v2867_v11 = vpop.f32.mrb[30].mxu0 }
 0x348   : > { %v1570_v13 = vadd.f32 %v1569_v2, %v1568_v3  ;;  %v1622_v14 = vadd.f32 %v1621_v19, %v1620_v15  ;;  %v3896_v17 = vadd.f32 %v2867_v11, %v3769_v50  ;;  %v1537_v10 = vpop.f32.mrb[31].mxu0  ;;  %v1625_v27 = vsel %vm818_vm2, %v1597_v44, 0.0 }
 0x349   : > { %v1623_v22 = vsel %vm818_vm2, %v1596_v9, 0.0  ;;  %v1538_v24 = vadd.f32 %v3769_v50, %v1537_v10 }
 0x34a   : > { %v1624_v25 = vadd.f32 %v1623_v22, %v1622_v14  ;;  %v1572_v26 = vadd.f32 %v1571_v18, %v1570_v13  ;;  %v1599_v28 = vmul.f32 %v3896_v17, %v3896_v17  ;;  %v1575_v43 = vsel %vm818_vm2, %v3896_v17, 0.0 }
 0x34b   : > { %v1573_v32 = vsel %vm818_vm2, %v1538_v24, 0.0  ;;  %v1598_v37 = vmul.f32 %v1538_v24, %v1538_v24 }
 0x34c   : > { %v1574_v38 = vadd.f32 %v1573_v32, %v1572_v26  ;;  %v1626_v42 = vadd.f32 %v1625_v27, %v1624_v25  ;;  %v1629_v50 = vsel %vm818_vm2, %v1599_v28, 0.0 }
 0x34d   : > { %v1627_v45 = vsel %vm818_vm2, %v1598_v37, 0.0 }
 0x34e   : > { %v1576_v49 = vadd.f32 %v1575_v43, %v1574_v38  ;;  %v1628_v52 = vadd.f32 %v1627_v45, %v1626_v42 }
 0x350   : > { %v1577_v54 = vrot.slane %v1576_v49, 4  ;;  %v1630_v56 = vadd.f32 %v1629_v50, %v1628_v52 }
 0x352   : > { %v1578_v33 = vadd.f32 %v1577_v54, %v1576_v49  ;;  %v1631_v20 = vrot.slane %v1630_v56, 4 }
 0x354   : > { %v1579_v57 = vrot.slane %v1578_v33, 2  ;;  %v1632_v51 = vadd.f32 %v1631_v20, %v1630_v56 }
 0x356   : > { %v1580_v5 = vadd.f32 %v1579_v57, %v1578_v33  ;;  %v1633_v58 = vrot.slane %v1632_v51, 2 }
 0x358   : > { %v1581_v36 = vrot.slane %v1580_v5, 1  ;;  %v1634_v30 = vadd.f32 %v1633_v58, %v1632_v51 }
 0x35a   : > { %v1582_v60 = vadd.f32 %v1581_v36, %v1580_v5  ;;  %v1635_v53 = vrot.slane %v1634_v30, 1 }
 0x35c   : > { %v3910_v61 = vmul.f32 0.0078125, %v1582_v60  ;;  %v1636_v62 = vadd.f32 %v1635_v53, %v1634_v30 }
 0x35e   : > { %v1637_v0 = vmul.f32 0.0078125, %v1636_v62  ;;  %v1638_v4 = vmul.f32 %v3910_v61, %v3910_v61  ;;  %v1649_v6 = vsub.f32 %v3854_v47, %v3910_v61  ;;  %v1650_v7 = vsub.f32 %v3848_v39, %v3910_v61 }
 0x35f   : > { %v1651_v23 = vsub.f32 %v3870_v59, %v3910_v61  ;;  %v1652_v35 = vsub.f32 %v3864_v1, %v3910_v61  ;;  %v1653_v46 = vsub.f32 %v3886_v40, %v3910_v61  ;;  %v1654_v8 = vsub.f32 %v3880_v21, %v3910_v61 }
 0x360   : > { %v1639_v15 = vsub.f32 %v1637_v0, %v1638_v4  ;;  %v1655_v3 = vsub.f32 %v1538_v24, %v3910_v61  ;;  %v1656_v47 = vsub.f32 %v3896_v17, %v3910_v61  ;;  %v1641_v39 = vsub.f32 %v3782_v55, %v3910_v61 }
 0x361   : > { %v1642_v59 = vsub.f32 %v3779_v31, %v3910_v61  ;;  %v1643_v1 = vsub.f32 %v3805_v63, %v3910_v61  ;;  %v1644_v40 = vsub.f32 %v3801_v48, %v3910_v61  ;;  %v1645_v21 = vsub.f32 %v3821_v41, %v3910_v61  ;;  %v3948_v48 = vld [vmem:[%s4313_s12] ss:$0 sm:$0xff] }
 0x362   : > { %v1640_v19 = vmax.f32 %v1639_v15, 0.0  ;;  %v1646_v44 = vsub.f32 %v3815_v34, %v3910_v61  ;;  %v1647_v2 = vsub.f32 %v3838_v29, %v3910_v61  ;;  %v1648_v55 = vsub.f32 %v3832_v16, %v3910_v61  ;;  %v3953_v16 = vld [vmem:[%s4314_s13] ss:$0 sm:$0xff] }
 0x364   : > { %v1657_v31 = vadd.f32 1e-05, %v1640_v19 }
 0x366   : > { %3070 = vrsqrt.f32 %v1657_v31 }
 0x370   : > { %v3071_v9 = vpop.eup %3070 }
 0x371   : > { %v1667_v63 = vmul.f32 %v3071_v9, %v1649_v6  ;;  %v1668_v41 = vmul.f32 %v3071_v9, %v1650_v7  ;;  %v1669_v11 = vmul.f32 %v3071_v9, %v1651_v23  ;;  %v1670_v13 = vmul.f32 %v3071_v9, %v1652_v35 }
 0x372   : > { %v1671_v14 = vmul.f32 %v3071_v9, %v1653_v46  ;;  %v1672_v34 = vmul.f32 %v3071_v9, %v1654_v8  ;;  %v1673_v17 = vmul.f32 %v3071_v9, %v1655_v3  ;;  %v1674_v10 = vmul.f32 %v3071_v9, %v1656_v47 }
 0x373   : > { %v1690_v29 = vmul.f32 %v3948_v48, %v1667_v63  ;;  %v1691_v18 = vmul.f32 %v3948_v48, %v1668_v41  ;;  %v1692_v22 = vmul.f32 %v3948_v48, %v1669_v11  ;;  %v1693_v24 = vmul.f32 %v3948_v48, %v1670_v13 }
 0x374   : > { %v1694_v25 = vmul.f32 %v3948_v48, %v1671_v14  ;;  %v1695_v26 = vmul.f32 %v3948_v48, %v1672_v34  ;;  %v1696_v27 = vmul.f32 %v3948_v48, %v1673_v17  ;;  %v1697_v28 = vmul.f32 %v3948_v48, %v1674_v10 }
 0x375   : > { %v1713_v32 = vadd.f32 %v3953_v16, %v1690_v29  ;;  %v1714_v37 = vadd.f32 %v3953_v16, %v1691_v18  ;;  %v1715_v38 = vadd.f32 %v3953_v16, %v1692_v22  ;;  %v1716_v42 = vadd.f32 %v3953_v16, %v1693_v24 }
 0x376   : > { %v1717_v43 = vadd.f32 %v3953_v16, %v1694_v25  ;;  %v1718_v45 = vadd.f32 %v3953_v16, %v1695_v26  ;;  %v1719_v49 = vadd.f32 %v3953_v16, %v1696_v27  ;;  %v1720_v52 = vadd.f32 %v3953_v16, %v1697_v28 }
 0x377   : > { %v1729_v50 = vmax.f32 %v1713_v32, 0.0  ;;  %v1730_v54 = vmax.f32 %v1714_v37, 0.0  ;;  %v1731_v56 = vmax.f32 %v1715_v38, 0.0  ;;  %v1732_v33 = vmax.f32 %v1716_v42, 0.0 }
 0x378   : > { %v1733_v20 = vmax.f32 %v1717_v43, 0.0  ;;  %v1734_v57 = vmax.f32 %v1718_v45, 0.0  ;;  %v1735_v51 = vmax.f32 %v1719_v49, 0.0  ;;  %v1736_v5 = vmax.f32 %v1720_v52, 0.0 }
 0x379   : > { %v1758_v58 = vsel %vm818_vm2, %v1729_v50, -inf  ;;  %v1759_v36 = vsel %vm818_vm2, %v1730_v54, -inf  ;;  %v1760_v30 = vsel %vm818_vm2, %v1731_v56, -inf  ;;  %v1761_v60 = vsel %vm818_vm2, %v1732_v33, -inf }
 0x37a   : > { %v1762_v53 = vsel %vm818_vm2, %v1733_v20, -inf  ;;  %v1764_v61 = vsel %vm818_vm2, %v1734_v57, -inf  ;;  %v1766_v62 = vsel %vm818_vm2, %v1735_v51, -inf  ;;  %v1768_v0 = vsel %vm818_vm2, %v1736_v5, -inf }
 0x37b   : > { %v1763_v4 = vmax.f32 %v1758_v58, %v1762_v53  ;;  %v1765_v6 = vmax.f32 %v1759_v36, %v1764_v61  ;;  %v1767_v7 = vmax.f32 %v1760_v30, %v1766_v62  ;;  %v1769_v23 = vmax.f32 %v1761_v60, %v1768_v0 }
 0x37c   : > { %v1659_v35 = vmul.f32 %v3071_v9, %v1641_v39  ;;  %v1660_v46 = vmul.f32 %v3071_v9, %v1642_v59  ;;  %v1661_v8 = vmul.f32 %v3071_v9, %v1643_v1  ;;  %v1662_v15 = vmul.f32 %v3071_v9, %v1644_v40 }
 0x37d   : > { %v1770_v3 = vmax.f32 %v1763_v4, %v1765_v6  ;;  %v1771_v47 = vmax.f32 %v1767_v7, %v1769_v23  ;;  %v1663_v19 = vmul.f32 %v3071_v9, %v1645_v21  ;;  %v1664_v31 = vmul.f32 %v3071_v9, %v1646_v44 }
 0x37e   : > { %v1665_v63 = vmul.f32 %v3071_v9, %v1647_v2  ;;  %v1666_v41 = vmul.f32 %v3071_v9, %v1648_v55  ;;  %v1682_v11 = vmul.f32 %v3948_v48, %v1659_v35  ;;  %v1683_v13 = vmul.f32 %v3948_v48, %v1660_v46  ;;  %v1884_v35 = vld [vmem:[%s4317_s16 + $0x70] sm:$0xff]  ;;  %v1885_v46 = vld [vmem:[%s4317_s16 + $0x78] sm:$0xff] }
 0x37f   : > { %v1772_v14 = vmax.f32 %v1770_v3, %v1771_v47  ;;  %v1684_v34 = vmul.f32 %v3948_v48, %v1661_v8  ;;  %v1685_v17 = vmul.f32 %v3948_v48, %v1662_v15  ;;  %v1686_v39 = vmul.f32 %v3948_v48, %v1663_v19  ;;  %v2633_v15 = vld [vmem:[%s4316_s15] ss:$0 sm:$0xff] }
 0x380   : > { %v1687_v59 = vmul.f32 %v3948_v48, %v1664_v31  ;;  %v1688_v1 = vmul.f32 %v3948_v48, %v1665_v63  ;;  %v1689_v40 = vmul.f32 %v3948_v48, %v1666_v41  ;;  %v1705_v21 = vadd.f32 %v3953_v16, %v1682_v11  ;;  %v2635_v11 = vld [vmem:[%s4318_s17] ss:$0 sm:$0xff] }
 0x381   : > { %v1706_v44 = vadd.f32 %v3953_v16, %v1683_v13  ;;  %v1707_v2 = vadd.f32 %v3953_v16, %v1684_v34  ;;  %v1708_v55 = vadd.f32 %v3953_v16, %v1685_v17  ;;  %v1709_v9 = vadd.f32 %v3953_v16, %v1686_v39 }
 0x382   : > { %v1710_v10 = vadd.f32 %v3953_v16, %v1687_v59  ;;  %v1711_v29 = vadd.f32 %v3953_v16, %v1688_v1  ;;  %v1712_v18 = vadd.f32 %v3953_v16, %v1689_v40  ;;  %v1721_v22 = vmax.f32 %v1705_v21, 0.0 }
 0x383   : > { %v1722_v24 = vmax.f32 %v1706_v44, 0.0  ;;  %v1723_v25 = vmax.f32 %v1707_v2, 0.0  ;;  %v1724_v48 = vmax.f32 %v1708_v55, 0.0  ;;  %v1725_v26 = vmax.f32 %v1709_v9, 0.0 }
 0x384   : > { %v1726_v27 = vmax.f32 %v1710_v10, 0.0  ;;  %v1727_v28 = vmax.f32 %v1711_v29, 0.0  ;;  %v1728_v32 = vmax.f32 %v1712_v18, 0.0  ;;  %v1737_v37 = vsel %vm818_vm2, %v1721_v22, -inf }
 0x385   : > { %v1738_v38 = vsel %vm818_vm2, %v1722_v24, -inf  ;;  %v1739_v42 = vsel %vm818_vm2, %v1723_v25, -inf  ;;  %v1740_v43 = vsel %vm818_vm2, %v1724_v48, -inf  ;;  %v1741_v45 = vsel %vm818_vm2, %v1725_v26, -inf }
 0x386   : > { %v1742_v49 = vmax.f32 %v1737_v37, %v1741_v45  ;;  %v1743_v16 = vsel %vm818_vm2, %v1726_v27, -inf  ;;  %v1745_v52 = vsel %vm818_vm2, %v1727_v28, -inf  ;;  %v1747_v50 = vsel %vm818_vm2, %v1728_v32, -inf }
 0x387   : > { %v1744_v54 = vmax.f32 %v1738_v38, %v1743_v16  ;;  %v1746_v56 = vmax.f32 %v1739_v42, %v1745_v52  ;;  %v1748_v33 = vmax.f32 %v1740_v43, %v1747_v50  ;;  %v1773_v20 = vrot.slane %v1772_v14, 4 }
 0x388   : > { %v3004_v8 = vpack.c.bf16 %v1885_v46, %v1884_v35  ;;  %v3083_v63 = vmov 1   ;;  %v3084_v41 = vmov 0   ;;  %v3085_v17 = vmov 9  }
 0x389   : > { %v1749_v57 = vmax.f32 %v1742_v49, %v1744_v54  ;;  %v1750_v51 = vmax.f32 %v1746_v56, %v1748_v33  ;;  %v1774_v5 = vmax.f32 %v1772_v14, %v1773_v20  ;;  %3044 = vset.pattern.permute.xlu1 %v3083_v63  ;;  %3042 = vset.pattern.permute.xlu0 %v3084_v41  ;;  %v3086_v39 = vmov 8  }
 0x38a   : > { %3005 = vmatpush3.bf16.msra.mxu0 %v3004_v8  ;;  %v3087_v59 = vmov 16   ;;  %v3088_v1 = vmov 17   ;;  %v3089_v40 = vmov 2   ;;  %v3090_v21 = vmov 18  }
 0x38b   : > { %v1751_v58 = vmax.f32 %v1749_v57, %v1750_v51  ;;  %v1775_v36 = vrot.slane %v1774_v5, 2  ;;  %v3091_v44 = vmov 10   ;;  %v3092_v2 = vmov 19  }
 0x38c   : > { %v3093_v55 = vmov 3   ;;  %v3094_v9 = vmov 20   ;;  %v3095_v10 = vmov 11   ;;  %v3096_v29 = vmov 21  }
 0x38d   : > { %v1752_v30 = vrot.slane %v1751_v58, 4  ;;  %v1776_v60 = vmax.f32 %v1774_v5, %v1775_v36  ;;  %v3097_v18 = vmov 4   ;;  %v3098_v22 = vmov 22   ;;  %v4050_v36 = vld [vmem:[%s590_s29] sm:$0x3] }
 0x38e   : > { %v3099_v24 = vmov 12   ;;  %v3100_v25 = vmov 23   ;;  %v3101_v48 = vmov 5   ;;  %v3102_v26 = vmov 13  }
 0x38f   : > { %v1753_v53 = vmax.f32 %v1751_v58, %v1752_v30  ;;  %v1777_v62 = vrot.slane %v1776_v60, 1  ;;  %v3103_v27 = vmov 6   ;;  %v3104_v28 = vmov 14   ;;  %v4048_v58 = vld [vmem:[%s590_s29 + $0x2] sm:$0x3] }
 0x390   : > { %v3105_v32 = vmov 7   ;;  %v3106_v37 = vmov 15  }
 0x391   : > { %v1754_v61 = vrot.slane %v1753_v53, 2  ;;  %v1778_v6 = vmax.f32 %v1776_v60, %v1777_v62 }
 0x393   : > { %v1755_v0 = vmax.f32 %v1753_v53, %v1754_v61  ;;  %v4052_v53 = vld [vmem:[%s590_s29 + $0x4] sm:$0x3] }
 0x395   : > { %v1756_v4 = vrot.slane %v1755_v0, 1 }
 0x397   : > { %v1757_v7 = vmax.f32 %v1755_v0, %v1756_v4 }
 0x399   : > { %v1780_v23 = vsel %vm1779_vm4, %v1757_v7, %v1778_v6 }
 0x39a   : > { %2885 = vmatmul.mubr.msk.f32.vlgmr.msra.gmra.mrb[16].mxu1 %vm818_vm2, %v1780_v23 }
 0x46d   : > { %v1865_v3 = vpop.f32.mrb[16].mxu1 }
 0x46e   : > { %v1866_v47 = vadd.f32 %v2633_v15, %v1865_v3  ;;  %v2886_v19 = vpop.f32.mrb[17].mxu1 }
 0x470   : > { %v1869_v31 = vmax.f32 %v1866_v47, 0.0 }
 0x472   : > { %2920 = vmatmul.mubr.f32.vlgmr.msra.gmra.mrb[32].mxu0 %v1869_v31 }
 0x545   : > { %v1959_v13 = vpop.f32.mrb[32].mxu0 }
 0x546   : > { %v4016_v14 = vadd.f32 %v2635_v11, %v1959_v13  ;;  %v2921_v34 = vpop.f32.mrb[33].mxu0 }
 0x548   : > { %1988 = vperm.xlu1 %3044, %v4016_v14   ;;  %1968 = vperm.xlu0 %3042, %v4016_v14  }
 0x54c   : > { %3045 = vset.pattern.permute.xlu1 %v3085_v17  ;;  %3043 = vset.pattern.permute.xlu0 %v3086_v39 }
 0x54d   : > { %1993 = vperm.xlu1 %3045, %v4016_v14   ;;  %1973 = vperm.xlu0 %3043, %v4016_v14  }
 0x551   : > { %3046 = vset.pattern.permute.xlu1 %v3087_v59  ;;  %3047 = vset.pattern.permute.xlu0 %v3088_v1 }
 0x552   : > { %1978 = vperm.xlu1 %3046, %v4016_v14   ;;  %1998 = vperm.xlu0 %3047, %v4016_v14  }
 0x556   : > { %3048 = vset.pattern.permute.xlu1 %v3089_v40  ;;  %3050 = vset.pattern.permute.xlu0 %v3090_v21 }
 0x557   : > { %2009 = vperm.xlu1 %3048, %v4016_v14   ;;  %2019 = vperm.xlu0 %3050, %v4016_v14  }
 0x55b   : > { %3049 = vset.pattern.permute.xlu1 %v3091_v44  ;;  %3053 = vset.pattern.permute.xlu0 %v3092_v2 }
 0x55c   : > { %2014 = vperm.xlu1 %3049, %v4016_v14   ;;  %2040 = vperm.xlu0 %3053, %v4016_v14  }
 0x560   : > { %3051 = vset.pattern.permute.xlu1 %v3093_v55  ;;  %3056 = vset.pattern.permute.xlu0 %v3094_v9 }
 0x561   : > { %2030 = vperm.xlu1 %3051, %v4016_v14   ;;  %2061 = vperm.xlu0 %3056, %v4016_v14  }
 0x565   : > { %3052 = vset.pattern.permute.xlu1 %v3095_v10  ;;  %3059 = vset.pattern.permute.xlu0 %v3096_v29 }
 0x566   : > { %2035 = vperm.xlu1 %3052, %v4016_v14   ;;  %2082 = vperm.xlu0 %3059, %v4016_v14  }
 0x56a   : > { %3054 = vset.pattern.permute.xlu1 %v3097_v18  ;;  %3062 = vset.pattern.permute.xlu0 %v3098_v22 }
 0x56b   : > { %2051 = vperm.xlu1 %3054, %v4016_v14   ;;  %2103 = vperm.xlu0 %3062, %v4016_v14  }
 0x56f   : > { %3055 = vset.pattern.permute.xlu1 %v3099_v24  ;;  %3065 = vset.pattern.permute.xlu0 %v3100_v25 }
 0x570   : > { %2056 = vperm.xlu1 %3055, %v4016_v14   ;;  %2124 = vperm.xlu0 %3065, %v4016_v14  }
 0x574   : > { %3057 = vset.pattern.permute.xlu1 %v3101_v48 }
 0x575   : > { %2072 = vperm.xlu1 %3057, %v4016_v14  }
 0x579   : > { %3058 = vset.pattern.permute.xlu1 %v3102_v26 }
 0x57a   : > { %2077 = vperm.xlu1 %3058, %v4016_v14  }
 0x57e   : > { %3060 = vset.pattern.permute.xlu1 %v3103_v27 }
 0x57f   : > { %2093 = vperm.xlu1 %3060, %v4016_v14  }
 0x583   : > { %3061 = vset.pattern.permute.xlu1 %v3104_v28 }
 0x584   : > { %2098 = vperm.xlu1 %3061, %v4016_v14  }
 0x588   : > { %3063 = vset.pattern.permute.xlu1 %v3105_v32 }
 0x589   : > { %2114 = vperm.xlu1 %3063, %v4016_v14  }
 0x58d   : > { %3064 = vset.pattern.permute.xlu1 %v3106_v37 }
 0x58e   : > { %2119 = vperm.xlu1 %3064, %v4016_v14  }
 0x5c7   : > { %v1989_v38 = vpop.permute.xlu1 %1988  ;;  %v1969_v49 = vpop.permute.xlu0 %1968 }
 0x5c8   : > { %v1991_v4 = vsub.f32 %v4050_v36, %v1989_v38  ;;  %v1971_v6 = vsub.f32 %v4050_v36, %v1969_v49 }
 0x5ca   : > { %v2002_v31 = vmul.f32 %v1991_v4, %v1991_v4  ;;  %v1982_v63 = vmul.f32 %v1971_v6, %v1971_v6 }
 0x5cc   : > { %v1994_v42 = vpop.permute.xlu1 %1993  ;;  %v1974_v50 = vpop.permute.xlu0 %1973 }
 0x5cd   : > { %v1996_v61 = vsub.f32 %v4048_v58, %v1994_v42  ;;  %v1976_v62 = vsub.f32 %v4048_v58, %v1974_v50 }
 0x5cf   : > { %v2003_v15 = vmul.f32 %v1996_v61, %v1996_v61  ;;  %v1983_v3 = vmul.f32 %v1976_v62, %v1976_v62 }
 0x5d1   : > { %v1979_v43 = vpop.permute.xlu1 %1978  ;;  %v1999_v56 = vpop.permute.xlu0 %1998  ;;  %v2004_v40 = vadd.f32 %v2003_v15, %v2002_v31  ;;  %v1984_v21 = vadd.f32 %v1983_v3, %v1982_v63 }
 0x5d2   : > { %v1981_v7 = vsub.f32 %v4052_v53, %v1979_v43  ;;  %v2001_v23 = vsub.f32 %v4052_v53, %v1999_v56 }
 0x5d4   : > { %v1985_v13 = vmul.f32 %v1981_v7, %v1981_v7  ;;  %v2005_v14 = vmul.f32 %v2001_v23, %v2001_v23 }
 0x5d6   : > { %v2010_v45 = vpop.permute.xlu1 %2009  ;;  %v2020_v20 = vpop.permute.xlu0 %2019  ;;  %v1986_v22 = vadd.f32 %v1985_v13, %v1984_v21  ;;  %v2006_v24 = vadd.f32 %v2005_v14, %v2004_v40  ;;  %v2134_v14 = vlaneseq }
 0x5d7   : > { %v2012_v35 = vsub.f32 %v4050_v36, %v2010_v45  ;;  %v2022_v17 = vsub.f32 %v4052_v53, %v2020_v20 }
 0x5d8   : > { %v2007_v50 = vmin.f32 %v1986_v22, %v2006_v24 }
 0x5d9   : > { %v2023_v34 = vmul.f32 %v2012_v35, %v2012_v35  ;;  %v2026_v25 = vmul.f32 %v2022_v17, %v2022_v17 }
 0x5db   : > { %v2015_v16 = vpop.permute.xlu1 %2014  ;;  %v2041_v51 = vpop.permute.xlu0 %2040 }
 0x5dc   : > { %v2017_v0 = vsub.f32 %v4048_v58, %v2015_v16  ;;  %v2043_v2 = vsub.f32 %v4052_v53, %v2041_v51 }
 0x5de   : > { %v2024_v47 = vmul.f32 %v2017_v0, %v2017_v0  ;;  %v2047_v42 = vmul.f32 %v2043_v2, %v2043_v2 }
 0x5e0   : > { %v2031_v52 = vpop.permute.xlu1 %2030  ;;  %v2062_v30 = vpop.permute.xlu0 %2061  ;;  %v2025_v44 = vadd.f32 %v2024_v47, %v2023_v34  ;;  %v4079_v34 = vand.u32 127, %v2134_v14 }
 0x5e1   : > { %v2033_v41 = vsub.f32 %v4050_v36, %v2031_v52  ;;  %v2064_v48 = vsub.f32 %v4052_v53, %v2062_v30 }
 0x5e2   : > { %v2027_v38 = vadd.f32 %v2026_v25, %v2025_v44  ;;  %vm2172_vm12 = vcmp.eq.s32.totalorder %v4079_v34, 0  ;;  %vm2219_vm13 = vcmp.eq.s32.totalorder %v4079_v34, 1  ;;  %vm2267_vm1 = vcmp.eq.s32.totalorder %v4079_v34, 2 }
 0x5e3   : > { %v2044_v9 = vmul.f32 %v2033_v41, %v2033_v41  ;;  %v2068_v56 = vmul.f32 %v2064_v48, %v2064_v48 }
 0x5e4   : > { %v2028_v51 = vmin.f32 %v2007_v50, %v2027_v38 }
 0x5e5   : > { %v2036_v54 = vpop.permute.xlu1 %2035  ;;  %v2083_v19 = vpop.permute.xlu0 %2082 }
 0x5e6   : > { %v2038_v46 = vsub.f32 %v4048_v58, %v2036_v54  ;;  %v2085_v43 = vsub.f32 %v4052_v53, %v2083_v19 }
 0x5e8   : > { %v2045_v39 = vmul.f32 %v2038_v46, %v2038_v46  ;;  %v2089_v30 = vmul.f32 %v2085_v43, %v2085_v43 }
 0x5ea   : > { %v2052_v33 = vpop.permute.xlu1 %2051  ;;  %v2104_v26 = vpop.permute.xlu0 %2103  ;;  %v2046_v27 = vadd.f32 %v2045_v39, %v2044_v9 }
 0x5eb   : > { %v2054_v59 = vsub.f32 %v4050_v36, %v2052_v33  ;;  %v2106_v54 = vsub.f32 %v4052_v53, %v2104_v26 }
 0x5ec   : > { %v2048_v33 = vadd.f32 %v2047_v42, %v2046_v27 }
 0x5ed   : > { %v2065_v28 = vmul.f32 %v2054_v59, %v2054_v59  ;;  %v2110_v0 = vmul.f32 %v2106_v54, %v2106_v54 }
 0x5ee   : > { %v2049_v6 = vmin.f32 %v2028_v51, %v2048_v33 }
 0x5ef   : > { %v2057_v57 = vpop.permute.xlu1 %2056 }
 0x5f0   : > { %v2059_v11 = vsub.f32 %v4048_v58, %v2057_v57 }
 0x5f2   : > { %v2066_v10 = vmul.f32 %v2059_v11, %v2059_v11 }
 0x5f4   : > { %v2073_v5 = vpop.permute.xlu1 %2072  ;;  %v2067_v45 = vadd.f32 %v2066_v10, %v2065_v28 }
 0x5f5   : > { %v2075_v29 = vsub.f32 %v4050_v36, %v2073_v5  ;;  %v2125_v5 = vpop.permute.xlu0 %2124 }
 0x5f6   : > { %v2127_v7 = vsub.f32 %v4052_v53, %v2125_v5 }
 0x5f7   : > { %v2086_v49 = vmul.f32 %v2075_v29, %v2075_v29 }
 0x5f8   : > { %v2131_v47 = vmul.f32 %v2127_v7, %v2127_v7 }
 0x5f9   : > { %v2078_v60 = vpop.permute.xlu1 %2077 }
 0x5fa   : > { %v2080_v1 = vsub.f32 %v4048_v58, %v2078_v60  ;;  %v2069_v60 = vadd.f32 %v2068_v56, %v2067_v45 }
 0x5fc   : > { %v2087_v32 = vmul.f32 %v2080_v1, %v2080_v1  ;;  %v2070_v46 = vmin.f32 %v2049_v6, %v2069_v60 }
 0x5fe   : > { %v2094_v8 = vpop.permute.xlu1 %2093  ;;  %v2088_v20 = vadd.f32 %v2087_v32, %v2086_v49 }
 0x5ff   : > { %v2096_v37 = vsub.f32 %v4050_v36, %v2094_v8 }
 0x600   : > { %v2090_v23 = vadd.f32 %v2089_v30, %v2088_v20 }
 0x601   : > { %v2107_v57 = vmul.f32 %v2096_v37, %v2096_v37 }
 0x602   : > { %v2091_v31 = vmin.f32 %v2070_v46, %v2090_v23 }
 0x603   : > { %v2099_v55 = vpop.permute.xlu1 %2098 }
 0x604   : > { %v2101_v18 = vsub.f32 %v4048_v58, %v2099_v55 }
 0x606   : > { %v2108_v16 = vmul.f32 %v2101_v18, %v2101_v18 }
 0x608   : > { %v2115_v52 = vpop.permute.xlu1 %2114  ;;  %v2109_v61 = vadd.f32 %v2108_v16, %v2107_v57 }
 0x609   : > { %v2117_v62 = vsub.f32 %v4050_v36, %v2115_v52 }
 0x60a   : > { %v2111_v8 = vadd.f32 %v2110_v0, %v2109_v61 }
 0x60b   : > { %v2128_v15 = vmul.f32 %v2117_v62, %v2117_v62 }
 0x60c   : > { %v2112_v63 = vmin.f32 %v2091_v31, %v2111_v8 }
 0x60d   : > { %v2120_v4 = vpop.permute.xlu1 %2119 }
 0x60e   : > { %v2122_v35 = vsub.f32 %v4048_v58, %v2120_v4 }
 0x610   : > { %v2129_v3 = vmul.f32 %v2122_v35, %v2122_v35 }
 0x612   : > { %v2130_v19 = vadd.f32 %v2129_v3, %v2128_v15 }
 0x614   : > { %v2132_v41 = vadd.f32 %v2131_v47, %v2130_v19 }
 0x616   : > { %v2133_v11 = vmin.f32 %v2112_v63, %v2132_v41 }
 0x618   : > { %v2137_v13 = vsel %vm2136_vm5, %v2133_v11, -inf }
 0x619   : > { %2138 = vmax.xlane.f32.xlu1 %v2137_v13 }
 0x6a6   : > { %v2139_v17 = vpop.xlane.xlu1 %2138 }
 0x6a7   : > { %vm2140_vm6 = vcmp.eq.f32.partialorder %v2133_v11, %v2139_v17 }
 0x6a8   : > { %v2141_v39 = vsel %vm2140_vm6, %v4079_v34, 64  ;;  %vm2315_vm6 = vcmp.eq.s32.totalorder %v4079_v34, 3 }
 0x6a9   : > { %v2142_v59 = vsel %vm2136_vm5, %v2141_v39, 2147483647 }
 0x6aa   : > { %v2144_v1 = vshra.s32 %v2142_v59, 16  ;;  %v2143_v21 = vand.u32 65535, %v2142_v59 }
 0x6ac   : > { %v2146_v40 = vcvt.s32.f32 %v2144_v1  ;;  %v2145_v2 = vcvt.s32.f32 %v2143_v21 }
 0x6ae   : > { %2147 = vmin.xlane.f32.xlu0 %v2146_v40 }
 0x73b   : > { %v2148_v44 = vpop.xlane.xlu0 %2147 }
 0x73c   : > { %vm2149_vm7 = vcmp.eq.f32.partialorder %v2146_v40, %v2148_v44  ;;  %v2154_v9 = vcvt.f32.s32 %v2148_v44 }
 0x73d   : > { %v2150_v55 = vsel %vm2149_vm7, %v2145_v2, inf }
 0x73e   : > { %2151 = vmin.xlane.f32.xlu1 %v2150_v55  ;;  %v2155_v29 = vshll.u32 %v2154_v9, 16 }
 0x7cb   : > { %v2152_v10 = vpop.xlane.xlu1 %2151 }
 0x7cc   : > { %v2153_v18 = vcvt.f32.s32 %v2152_v10 }
 0x7ce   : > { %v2156_v22 = vadd.s32 %v2155_v29, %v2153_v18 }
 0x7d0   : > { %vm2157_vm8 = vcmp.eq.s32.totalorder %v4079_v34, %v2156_v22 }
 0x7d1   : > { %v2636_v24 = vsel %vm2157_vm8, 1.0, %v3082_v12 }
 0x7d2   : > { %v2164_v25 = vmul.f32 %v2636_v24, %v4048_v58  ;;  %v2160_v48 = vmul.f32 %v2636_v24, %v4050_v36  ;;  %v2168_v28 = vmul.f32 %v2636_v24, %v4052_v53 }
 0x7d4   : > { %v2165_v26 = vsel %vm2136_vm5, %v2164_v25, 0.0  ;;  %v2161_v27 = vsel %vm2136_vm5, %v2160_v48, 0.0  ;;  %v2169_v32 = vsel %vm2136_vm5, %v2168_v28, 0.0 }
 0x7d5   : > { %2166 = vadd.xlane.f32.xlu1 %v2165_v26  ;;  %2162 = vadd.xlane.f32.xlu0 %v2161_v27 }
 0x7d9   : > { %2170 = vadd.xlane.f32.xlu0 %v2169_v32 }
 0x862   : > { %v4091_v37 = vpop.xlane.xlu1 %2166  ;;  %v2163_v38 = vpop.xlane.xlu0 %2162 }
 0x863   : > { %v2177_v42 = vsub.f32 %v4048_v58, %v4091_v37  ;;  %v2176_v43 = vsub.f32 %v4050_v36, %v2163_v38  ;;  %v2173_v63 = vsel %vm2172_vm12, %v2163_v38, 0.0 }
 0x865   : > { %v2180_v45 = vmul.f32 %v2177_v42, %v2177_v42  ;;  %v2179_v49 = vmul.f32 %v2176_v43, %v2176_v43 }
 0x866   : > { %v4096_v16 = vpop.xlane.xlu0 %2170 }
 0x867   : > { %v2178_v52 = vsub.f32 %v4052_v53, %v4096_v16  ;;  %v2181_v50 = vadd.f32 %v2180_v45, %v2179_v49 }
 0x869   : > { %v2182_v54 = vmul.f32 %v2178_v52, %v2178_v52 }
 0x86b   : > { %v2183_v56 = vadd.f32 %v2182_v54, %v2181_v50 }
 0x86d   : > { %v2184_v33 = vsel %vm2136_vm5, %v2183_v56, -inf }
 0x86e   : > { %2185 = vmax.xlane.f32.xlu1 %v2184_v33 }
 0x8fb   : > { %v2186_v20 = vpop.xlane.xlu1 %2185 }
 0x8fc   : > { %vm2187_vm9 = vcmp.eq.f32.partialorder %v2183_v56, %v2186_v20 }
 0x8fd   : > { %v2188_v57 = vsel %vm2187_vm9, %v4079_v34, 64 }
 0x8fe   : > { %v2189_v51 = vsel %vm2136_vm5, %v2188_v57, 2147483647 }
 0x8ff   : > { %v2191_v5 = vshra.s32 %v2189_v51, 16  ;;  %v2190_v60 = vand.u32 65535, %v2189_v51 }
 0x901   : > { %v2193_v30 = vcvt.s32.f32 %v2191_v5  ;;  %v2192_v62 = vcvt.s32.f32 %v2190_v60 }
 0x903   : > { %2194 = vmin.xlane.f32.xlu0 %v2193_v30 }
 0x990   : > { %v2195_v61 = vpop.xlane.xlu0 %2194 }
 0x991   : > { %vm2196_vm10 = vcmp.eq.f32.partialorder %v2193_v30, %v2195_v61  ;;  %v2201_v4 = vcvt.f32.s32 %v2195_v61 }
 0x992   : > { %v2197_v0 = vsel %vm2196_vm10, %v2192_v62, inf  ;;  %vm2363_vm10 = vcmp.eq.s32.totalorder %v4079_v34, 4 }
 0x993   : > { %2198 = vmin.xlane.f32.xlu1 %v2197_v0  ;;  %v2202_v7 = vshll.u32 %v2201_v4, 16 }
 0xa20   : > { %v2199_v6 = vpop.xlane.xlu1 %2198 }
 0xa21   : > { %v2200_v23 = vcvt.f32.s32 %v2199_v6 }
 0xa23   : > { %v2203_v35 = vadd.s32 %v2202_v7, %v2200_v23 }
 0xa25   : > { %vm2204_vm11 = vcmp.eq.s32.totalorder %v4079_v34, %v2203_v35 }
 0xa26   : > { %v2637_v46 = vsel %vm2204_vm11, 1.0, %v3082_v12 }
 0xa27   : > { %v2211_v8 = vmul.f32 %v2637_v46, %v4048_v58  ;;  %v2207_v15 = vmul.f32 %v2637_v46, %v4050_v36  ;;  %v2215_v19 = vmul.f32 %v2637_v46, %v4052_v53 }
 0xa29   : > { %v2212_v3 = vsel %vm2136_vm5, %v2211_v8, 0.0  ;;  %v2208_v47 = vsel %vm2136_vm5, %v2207_v15, 0.0  ;;  %v2216_v31 = vsel %vm2136_vm5, %v2215_v19, 0.0 }
 0xa2a   : > { %2213 = vadd.xlane.f32.xlu1 %v2212_v3  ;;  %2209 = vadd.xlane.f32.xlu0 %v2208_v47 }
 0xa2e   : > { %2217 = vadd.xlane.f32.xlu0 %v2216_v31 }
 0xab7   : > { %v4115_v41 = vpop.xlane.xlu1 %2213  ;;  %v2210_v11 = vpop.xlane.xlu0 %2209 }
 0xab8   : > { %v2224_v13 = vsub.f32 %v4048_v58, %v4115_v41  ;;  %v2220_v14 = vsel %vm2219_vm13, %v2210_v11, %v2173_v63  ;;  %v2223_v17 = vsub.f32 %v4050_v36, %v2210_v11 }
 0xaba   : > { %v2227_v39 = vmul.f32 %v2224_v13, %v2224_v13  ;;  %v2226_v59 = vmul.f32 %v2223_v17, %v2223_v17 }
 0xabb   : > { %v4122_v1 = vpop.xlane.xlu0 %2217 }
 0xabc   : > { %v2225_v40 = vsub.f32 %v4052_v53, %v4122_v1  ;;  %v2228_v21 = vadd.f32 %v2227_v39, %v2226_v59 }
 0xabe   : > { %v2229_v44 = vmul.f32 %v2225_v40, %v2225_v40 }
 0xac0   : > { %v2230_v2 = vadd.f32 %v2229_v44, %v2228_v21 }
 0xac2   : > { %v2231_v55 = vmin.f32 %v2183_v56, %v2230_v2 }
 0xac4   : > { %v2232_v9 = vsel %vm2136_vm5, %v2231_v55, -inf }
 0xac5   : > { %2233 = vmax.xlane.f32.xlu1 %v2232_v9 }
 0xb52   : > { %v2234_v10 = vpop.xlane.xlu1 %2233 }
 0xb53   : > { %vm2235_vm14 = vcmp.eq.f32.partialorder %v2231_v55, %v2234_v10 }
 0xb54   : > { %v2236_v29 = vsel %vm2235_vm14, %v4079_v34, 64 }
 0xb55   : > { %v2237_v18 = vsel %vm2136_vm5, %v2236_v29, 2147483647 }
 0xb56   : > { %v2239_v22 = vshra.s32 %v2237_v18, 16  ;;  %v2238_v25 = vand.u32 65535, %v2237_v18 }
 0xb58   : > { %v2241_v24 = vcvt.s32.f32 %v2239_v22  ;;  %v2240_v26 = vcvt.s32.f32 %v2238_v25 }
 0xb5a   : > { %2242 = vmin.xlane.f32.xlu0 %v2241_v24 }
 0xbe7   : > { %v2243_v48 = vpop.xlane.xlu0 %2242 }
 0xbe8   : > { %vm2244_vm15 = vcmp.eq.f32.partialorder %v2241_v24, %v2243_v48  ;;  %v2249_v28 = vcvt.f32.s32 %v2243_v48 }
 0xbe9   : > { %v2245_v27 = vsel %vm2244_vm15, %v2240_v26, inf }
 0xbea   : > { %2246 = vmin.xlane.f32.xlu1 %v2245_v27  ;;  %v2250_v38 = vshll.u32 %v2249_v28, 16 }
 0xc77   : > { %v2247_v32 = vpop.xlane.xlu1 %2246 }
 0xc78   : > { %v2248_v42 = vcvt.f32.s32 %v2247_v32 }
 0xc7a   : > { %v2251_v43 = vadd.s32 %v2250_v38, %v2248_v42 }
 0xc7c   : > { %vm2252_vm0 = vcmp.eq.s32.totalorder %v4079_v34, %v2251_v43 }
 0xc7d   : > { %v2638_v45 = vsel %vm2252_vm0, 1.0, %v3082_v12  ;;  %vm2411_vm0 = vcmp.eq.s32.totalorder %v4079_v34, 5 }
 0xc7e   : > { %v2259_v49 = vmul.f32 %v2638_v45, %v4048_v58  ;;  %v2255_v52 = vmul.f32 %v2638_v45, %v4050_v36  ;;  %v2263_v56 = vmul.f32 %v2638_v45, %v4052_v53 }
 0xc80   : > { %v2260_v50 = vsel %vm2136_vm5, %v2259_v49, 0.0  ;;  %v2256_v54 = vsel %vm2136_vm5, %v2255_v52, 0.0  ;;  %v2264_v33 = vsel %vm2136_vm5, %v2263_v56, 0.0 }
 0xc81   : > { %2261 = vadd.xlane.f32.xlu1 %v2260_v50  ;;  %2257 = vadd.xlane.f32.xlu0 %v2256_v54 }
 0xc85   : > { %2265 = vadd.xlane.f32.xlu0 %v2264_v33 }
 0xd0e   : > { %v4138_v20 = vpop.xlane.xlu1 %2261  ;;  %v2258_v57 = vpop.xlane.xlu0 %2257 }
 0xd0f   : > { %v2272_v51 = vsub.f32 %v4048_v58, %v4138_v20  ;;  %v2268_v5 = vsel %vm2267_vm1, %v2258_v57, %v2220_v14  ;;  %v2271_v30 = vsub.f32 %v4050_v36, %v2258_v57 }
 0xd11   : > { %v2275_v60 = vmul.f32 %v2272_v51, %v2272_v51  ;;  %v2274_v61 = vmul.f32 %v2271_v30, %v2271_v30 }
 0xd12   : > { %v4145_v62 = vpop.xlane.xlu0 %2265 }
 0xd13   : > { %v2273_v0 = vsub.f32 %v4052_v53, %v4145_v62  ;;  %v2276_v4 = vadd.f32 %v2275_v60, %v2274_v61 }
 0xd15   : > { %v2277_v6 = vmul.f32 %v2273_v0, %v2273_v0 }
 0xd17   : > { %v2278_v7 = vadd.f32 %v2277_v6, %v2276_v4 }
 0xd19   : > { %v2279_v23 = vmin.f32 %v2231_v55, %v2278_v7 }
 0xd1b   : > { %v2280_v35 = vsel %vm2136_vm5, %v2279_v23, -inf }
 0xd1c   : > { %2281 = vmax.xlane.f32.xlu1 %v2280_v35 }
 0xda9   : > { %v2282_v46 = vpop.xlane.xlu1 %2281 }
 0xdaa   : > { %vm2283_vm2 = vcmp.eq.f32.partialorder %v2279_v23, %v2282_v46 }
 0xdab   : > { %v2284_v8 = vsel %vm2283_vm2, %v4079_v34, 64 }
 0xdac   : > { %v2285_v15 = vsel %vm2136_vm5, %v2284_v8, 2147483647 }
 0xdad   : > { %v2287_v3 = vshra.s32 %v2285_v15, 16  ;;  %v2286_v19 = vand.u32 65535, %v2285_v15 }
 0xdaf   : > { %v2289_v47 = vcvt.s32.f32 %v2287_v3  ;;  %v2288_v63 = vcvt.s32.f32 %v2286_v19 }
 0xdb1   : > { %2290 = vmin.xlane.f32.xlu0 %v2289_v47 }
 0xe3e   : > { %v2291_v31 = vpop.xlane.xlu0 %2290 }
 0xe3f   : > { %vm2292_vm3 = vcmp.eq.f32.partialorder %v2289_v47, %v2291_v31  ;;  %v2297_v13 = vcvt.f32.s32 %v2291_v31 }
 0xe40   : > { %v2293_v11 = vsel %vm2292_vm3, %v2288_v63, inf }
 0xe41   : > { %2294 = vmin.xlane.f32.xlu1 %v2293_v11  ;;  %v2298_v17 = vshll.u32 %v2297_v13, 16 }
 0xece   : > { %v2295_v14 = vpop.xlane.xlu1 %2294 }
 0xecf   : > { %v2296_v39 = vcvt.f32.s32 %v2295_v14 }
 0xed1   : > { %v2299_v59 = vadd.s32 %v2298_v17, %v2296_v39 }
 0xed3   : > { %vm2300_vm4 = vcmp.eq.s32.totalorder %v4079_v34, %v2299_v59 }
 0xed4   : > { %v2639_v40 = vsel %vm2300_vm4, 1.0, %v3082_v12 }
 0xed5   : > { %v2307_v21 = vmul.f32 %v2639_v40, %v4048_v58  ;;  %v2303_v44 = vmul.f32 %v2639_v40, %v4050_v36  ;;  %v2311_v9 = vmul.f32 %v2639_v40, %v4052_v53 }
 0xed7   : > { %v2308_v2 = vsel %vm2136_vm5, %v2307_v21, 0.0  ;;  %v2304_v55 = vsel %vm2136_vm5, %v2303_v44, 0.0  ;;  %v2312_v10 = vsel %vm2136_vm5, %v2311_v9, 0.0 }
 0xed8   : > { %2309 = vadd.xlane.f32.xlu1 %v2308_v2  ;;  %2305 = vadd.xlane.f32.xlu0 %v2304_v55 }
 0xedc   : > { %2313 = vadd.xlane.f32.xlu0 %v2312_v10 }
 0xf65   : > { %v4161_v29 = vpop.xlane.xlu1 %2309  ;;  %v2306_v18 = vpop.xlane.xlu0 %2305 }
 0xf66   : > { %v2320_v22 = vsub.f32 %v4048_v58, %v4161_v29  ;;  %v2316_v24 = vsel %vm2315_vm6, %v2306_v18, %v2268_v5  ;;  %v2319_v25 = vsub.f32 %v4050_v36, %v2306_v18 }
 0xf68   : > { %v2323_v48 = vmul.f32 %v2320_v22, %v2320_v22  ;;  %v2322_v26 = vmul.f32 %v2319_v25, %v2319_v25 }
 0xf69   : > { %v4168_v27 = vpop.xlane.xlu0 %2313 }
 0xf6a   : > { %v2321_v28 = vsub.f32 %v4052_v53, %v4168_v27  ;;  %v2324_v32 = vadd.f32 %v2323_v48, %v2322_v26 }
 0xf6c   : > { %v2325_v38 = vmul.f32 %v2321_v28, %v2321_v28 }
 0xf6e   : > { %v2326_v42 = vadd.f32 %v2325_v38, %v2324_v32 }
 0xf70   : > { %v2327_v43 = vmin.f32 %v2279_v23, %v2326_v42 }
 0xf72   : > { %v2328_v45 = vsel %vm2136_vm5, %v2327_v43, -inf }
 0xf73   : > { %2329 = vmax.xlane.f32.xlu1 %v2328_v45 }
0x1000   : > { %v2330_v49 = vpop.xlane.xlu1 %2329 }
0x1001   : > { %vm2331_vm7 = vcmp.eq.f32.partialorder %v2327_v43, %v2330_v49 }
0x1002   : > { %v2332_v52 = vsel %vm2331_vm7, %v4079_v34, 64  ;;  %vm2459_vm7 = vcmp.eq.s32.totalorder %v4079_v34, 6 }
0x1003   : > { %v2333_v50 = vsel %vm2136_vm5, %v2332_v52, 2147483647 }
0x1004   : > { %v2335_v54 = vshra.s32 %v2333_v50, 16  ;;  %v2334_v33 = vand.u32 65535, %v2333_v50 }
0x1006   : > { %v2337_v56 = vcvt.s32.f32 %v2335_v54  ;;  %v2336_v51 = vcvt.s32.f32 %v2334_v33 }
0x1008   : > { %2338 = vmin.xlane.f32.xlu0 %v2337_v56 }
0x1095   : > { %v2339_v57 = vpop.xlane.xlu0 %2338 }
0x1096   : > { %vm2340_vm8 = vcmp.eq.f32.partialorder %v2337_v56, %v2339_v57  ;;  %v2345_v30 = vcvt.f32.s32 %v2339_v57 }
0x1097   : > { %v2341_v5 = vsel %vm2340_vm8, %v2336_v51, inf }
0x1098   : > { %2342 = vmin.xlane.f32.xlu1 %v2341_v5  ;;  %v2346_v61 = vshll.u32 %v2345_v30, 16 }
0x1125   : > { %v2343_v60 = vpop.xlane.xlu1 %2342 }
0x1126   : > { %v2344_v0 = vcvt.f32.s32 %v2343_v60 }
0x1128   : > { %v2347_v4 = vadd.s32 %v2346_v61, %v2344_v0 }
0x112a   : > { %vm2348_vm9 = vcmp.eq.s32.totalorder %v4079_v34, %v2347_v4 }
0x112b   : > { %v2640_v6 = vsel %vm2348_vm9, 1.0, %v3082_v12 }
0x112c   : > { %v2355_v7 = vmul.f32 %v2640_v6, %v4048_v58  ;;  %v2351_v23 = vmul.f32 %v2640_v6, %v4050_v36  ;;  %v2359_v8 = vmul.f32 %v2640_v6, %v4052_v53 }
0x112e   : > { %v2356_v35 = vsel %vm2136_vm5, %v2355_v7, 0.0  ;;  %v2352_v46 = vsel %vm2136_vm5, %v2351_v23, 0.0  ;;  %v2360_v15 = vsel %vm2136_vm5, %v2359_v8, 0.0 }
0x112f   : > { %2357 = vadd.xlane.f32.xlu1 %v2356_v35  ;;  %2353 = vadd.xlane.f32.xlu0 %v2352_v46 }
0x1133   : > { %2361 = vadd.xlane.f32.xlu0 %v2360_v15 }
0x11bc   : > { %v4184_v3 = vpop.xlane.xlu1 %2357  ;;  %v2354_v47 = vpop.xlane.xlu0 %2353 }
0x11bd   : > { %v2368_v19 = vsub.f32 %v4048_v58, %v4184_v3  ;;  %v2364_v31 = vsel %vm2363_vm10, %v2354_v47, %v2316_v24  ;;  %v2367_v63 = vsub.f32 %v4050_v36, %v2354_v47 }
0x11bf   : > { %v2371_v11 = vmul.f32 %v2368_v19, %v2368_v19  ;;  %v2370_v13 = vmul.f32 %v2367_v63, %v2367_v63 }
0x11c0   : > { %v4191_v14 = vpop.xlane.xlu0 %2361 }
0x11c1   : > { %v2369_v17 = vsub.f32 %v4052_v53, %v4191_v14  ;;  %v2372_v39 = vadd.f32 %v2371_v11, %v2370_v13 }
0x11c3   : > { %v2373_v59 = vmul.f32 %v2369_v17, %v2369_v17 }
0x11c5   : > { %v2374_v40 = vadd.f32 %v2373_v59, %v2372_v39 }
0x11c7   : > { %v2375_v21 = vmin.f32 %v2327_v43, %v2374_v40 }
0x11c9   : > { %v2376_v44 = vsel %vm2136_vm5, %v2375_v21, -inf }
0x11ca   : > { %2377 = vmax.xlane.f32.xlu1 %v2376_v44 }
0x1257   : > { %v2378_v2 = vpop.xlane.xlu1 %2377 }
0x1258   : > { %vm2379_vm11 = vcmp.eq.f32.partialorder %v2375_v21, %v2378_v2 }
0x1259   : > { %v2380_v55 = vsel %vm2379_vm11, %v4079_v34, 64 }
0x125a   : > { %v2381_v9 = vsel %vm2136_vm5, %v2380_v55, 2147483647 }
0x125b   : > { %v2383_v10 = vshra.s32 %v2381_v9, 16  ;;  %v2382_v22 = vand.u32 65535, %v2381_v9 }
0x125d   : > { %v2385_v18 = vcvt.s32.f32 %v2383_v10  ;;  %v2384_v25 = vcvt.s32.f32 %v2382_v22 }
0x125f   : > { %2386 = vmin.xlane.f32.xlu0 %v2385_v18 }
0x12ec   : > { %v2387_v24 = vpop.xlane.xlu0 %2386 }
0x12ed   : > { %vm2388_vm14 = vcmp.eq.f32.partialorder %v2385_v18, %v2387_v24  ;;  %v2393_v26 = vcvt.f32.s32 %v2387_v24 }
0x12ee   : > { %v2389_v48 = vsel %vm2388_vm14, %v2384_v25, inf }
0x12ef   : > { %2390 = vmin.xlane.f32.xlu1 %v2389_v48  ;;  %v2394_v32 = vshll.u32 %v2393_v26, 16 }
0x137c   : > { %v2391_v28 = vpop.xlane.xlu1 %2390 }
0x137d   : > { %v2392_v38 = vcvt.f32.s32 %v2391_v28 }
0x137f   : > { %v2395_v42 = vadd.s32 %v2394_v32, %v2392_v38 }
0x1381   : > { %vm2396_vm15 = vcmp.eq.s32.totalorder %v4079_v34, %v2395_v42 }
0x1382   : > { %v2641_v43 = vsel %vm2396_vm15, 1.0, %v3082_v12 }
0x1383   : > { %v2403_v45 = vmul.f32 %v2641_v43, %v4048_v58  ;;  %v2399_v49 = vmul.f32 %v2641_v43, %v4050_v36  ;;  %v2407_v54 = vmul.f32 %v2641_v43, %v4052_v53 }
0x1385   : > { %v2404_v52 = vsel %vm2136_vm5, %v2403_v45, 0.0  ;;  %v2400_v50 = vsel %vm2136_vm5, %v2399_v49, 0.0  ;;  %v2408_v56 = vsel %vm2136_vm5, %v2407_v54, 0.0 }
0x1386   : > { %2405 = vadd.xlane.f32.xlu1 %v2404_v52  ;;  %2401 = vadd.xlane.f32.xlu0 %v2400_v50 }
0x138a   : > { %2409 = vadd.xlane.f32.xlu0 %v2408_v56 }
0x1413   : > { %v4207_v33 = vpop.xlane.xlu1 %2405  ;;  %v2402_v57 = vpop.xlane.xlu0 %2401 }
0x1414   : > { %v2416_v51 = vsub.f32 %v4048_v58, %v4207_v33  ;;  %v2412_v5 = vsel %vm2411_vm0, %v2402_v57, %v2364_v31  ;;  %v2415_v30 = vsub.f32 %v4050_v36, %v2402_v57 }
0x1416   : > { %v2419_v60 = vmul.f32 %v2416_v51, %v2416_v51  ;;  %v2418_v61 = vmul.f32 %v2415_v30, %v2415_v30 }
0x1417   : > { %v4214_v0 = vpop.xlane.xlu0 %2409 }
0x1418   : > { %v2417_v4 = vsub.f32 %v4052_v53, %v4214_v0  ;;  %v2420_v6 = vadd.f32 %v2419_v60, %v2418_v61 }
0x141a   : > { %v2421_v7 = vmul.f32 %v2417_v4, %v2417_v4 }
0x141c   : > { %v2422_v23 = vadd.f32 %v2421_v7, %v2420_v6 }
0x141e   : > { %v2423_v35 = vmin.f32 %v2375_v21, %v2422_v23 }
0x1420   : > { %v2424_v46 = vsel %vm2136_vm5, %v2423_v35, -inf }
0x1421   : > { %2425 = vmax.xlane.f32.xlu1 %v2424_v46 }
0x14ae   : > { %v2426_v8 = vpop.xlane.xlu1 %2425 }
0x14af   : > { %vm2427_vm2 = vcmp.eq.f32.partialorder %v2423_v35, %v2426_v8 }
0x14b0   : > { %v2428_v15 = vsel %vm2427_vm2, %v4079_v34, 64 }
0x14b1   : > { %v2429_v47 = vsel %vm2136_vm5, %v2428_v15, 2147483647 }
0x14b2   : > { %v2431_v19 = vshra.s32 %v2429_v47, 16  ;;  %v2430_v63 = vand.u32 65535, %v2429_v47 }
0x14b4   : > { %v2433_v31 = vcvt.s32.f32 %v2431_v19  ;;  %v2432_v13 = vcvt.s32.f32 %v2430_v63 }
0x14b6   : > { %2434 = vmin.xlane.f32.xlu0 %v2433_v31 }
0x1543   : > { %v2435_v11 = vpop.xlane.xlu0 %2434 }
0x1544   : > { %vm2436_vm3 = vcmp.eq.f32.partialorder %v2433_v31, %v2435_v11  ;;  %v2441_v39 = vcvt.f32.s32 %v2435_v11 }
0x1545   : > { %v2437_v17 = vsel %vm2436_vm3, %v2432_v13, inf }
0x1546   : > { %2438 = vmin.xlane.f32.xlu1 %v2437_v17  ;;  %v2442_v40 = vshll.u32 %v2441_v39, 16  ;;  %v2175_v39 = vsel %vm2172_vm12, %v4096_v16, 0.0 }
0x15d3   : > { %v2439_v59 = vpop.xlane.xlu1 %2438 }
0x15d4   : > { %v2440_v21 = vcvt.f32.s32 %v2439_v59 }
0x15d6   : > { %v2443_v44 = vadd.s32 %v2442_v40, %v2440_v21 }
0x15d8   : > { %vm2444_vm4 = vcmp.eq.s32.totalorder %v4079_v34, %v2443_v44 }
0x15d9   : > { %v2642_v2 = vsel %vm2444_vm4, 1.0, %v3082_v12 }
0x15da   : > { %v2451_v55 = vmul.f32 %v2642_v2, %v4048_v58  ;;  %v2447_v9 = vmul.f32 %v2642_v2, %v4050_v36  ;;  %v2455_v22 = vmul.f32 %v2642_v2, %v4052_v53 }
0x15dc   : > { %v2452_v10 = vsel %vm2136_vm5, %v2451_v55, 0.0  ;;  %v2448_v18 = vsel %vm2136_vm5, %v2447_v9, 0.0  ;;  %v2456_v24 = vsel %vm2136_vm5, %v2455_v22, 0.0 }
0x15dd   : > { %2453 = vadd.xlane.f32.xlu1 %v2452_v10  ;;  %2449 = vadd.xlane.f32.xlu0 %v2448_v18 }
0x15e1   : > { %2457 = vadd.xlane.f32.xlu0 %v2456_v24 }
0x166a   : > { %v2454_v25 = vpop.xlane.xlu1 %2453  ;;  %v2450_v48 = vpop.xlane.xlu0 %2449 }
0x166b   : > { %v2464_v26 = vsub.f32 %v4048_v58, %v2454_v25  ;;  %v2460_v28 = vsel %vm2459_vm7, %v2450_v48, %v2412_v5  ;;  %v2463_v32 = vsub.f32 %v4050_v36, %v2450_v48 }
0x166d   : > { %v2467_v38 = vmul.f32 %v2464_v26, %v2464_v26  ;;  %v2466_v42 = vmul.f32 %v2463_v32, %v2463_v32 }
0x166e   : > { %v2458_v43 = vpop.xlane.xlu0 %2457 }
0x166f   : > { %v2465_v45 = vsub.f32 %v4052_v53, %v2458_v43  ;;  %v2468_v49 = vadd.f32 %v2467_v38, %v2466_v42 }
0x1671   : > { %v2469_v52 = vmul.f32 %v2465_v45, %v2465_v45 }
0x1673   : > { %v2470_v50 = vadd.f32 %v2469_v52, %v2468_v49 }
0x1675   : > { %v2471_v54 = vmin.f32 %v2423_v35, %v2470_v50 }
0x1677   : > { %v2472_v56 = vsel %vm2136_vm5, %v2471_v54, -inf }
0x1678   : > { %2473 = vmax.xlane.f32.xlu1 %v2472_v56 }
0x1705   : > { %v2474_v57 = vpop.xlane.xlu1 %2473 }
0x1706   : > { %vm2475_vm8 = vcmp.eq.f32.partialorder %v2471_v54, %v2474_v57 }
0x1707   : > { %v2476_v51 = vsel %vm2475_vm8, %v4079_v34, 64 }
0x1708   : > { %v2477_v5 = vsel %vm2136_vm5, %v2476_v51, 2147483647 }
0x1709   : > { %v2479_v30 = vshra.s32 %v2477_v5, 16  ;;  %v2478_v61 = vand.u32 65535, %v2477_v5 }
0x170b   : > { %v2481_v60 = vcvt.s32.f32 %v2479_v30  ;;  %v2480_v6 = vcvt.s32.f32 %v2478_v61 }
0x170d   : > { %2482 = vmin.xlane.f32.xlu0 %v2481_v60 }
0x179a   : > { %v2483_v4 = vpop.xlane.xlu0 %2482 }
0x179b   : > { %vm2484_vm9 = vcmp.eq.f32.partialorder %v2481_v60, %v2483_v4  ;;  %v2489_v23 = vcvt.f32.s32 %v2483_v4 }
0x179c   : > { %v2485_v7 = vsel %vm2484_vm9, %v2480_v6, inf }
0x179d   : > { %2486 = vmin.xlane.f32.xlu1 %v2485_v7  ;;  %v2490_v46 = vshll.u32 %v2489_v23, 16 }
0x182a   : > { %v2487_v35 = vpop.xlane.xlu1 %2486 }
0x182b   : > { %v2488_v8 = vcvt.f32.s32 %v2487_v35 }
0x182d   : > { %v2491_v15 = vadd.s32 %v2490_v46, %v2488_v8 }
0x182f   : > { %vm2492_vm11 = vcmp.eq.s32.totalorder %v4079_v34, %v2491_v15 }
0x1830   : > { %v2643_v47 = vsel %vm2492_vm11, 1.0, %v3082_v12  ;;  %v2174_v12 = vsel %vm2172_vm12, %v4091_v37, 0.0  ;;  %vm2511_vm12 = vcmask 58368  }
0x1831   : > { %v2499_v19 = vmul.f32 %v2643_v47, %v4048_v58  ;;  %v2495_v31 = vmul.f32 %v2643_v47, %v4050_v36  ;;  %v2503_v13 = vmul.f32 %v2643_v47, %v4052_v53  ;;  %v2221_v58 = vsel %vm2219_vm13, %v4115_v41, %v2174_v12 }
0x1832   : > { %v2269_v36 = vsel %vm2267_vm1, %v4138_v20, %v2221_v58  ;;  %v2222_v41 = vsel %vm2219_vm13, %v4122_v1, %v2175_v39 }
0x1833   : > { %v2500_v63 = vsel %vm2136_vm5, %v2499_v19, 0.0  ;;  %v2496_v11 = vsel %vm2136_vm5, %v2495_v31, 0.0  ;;  %v2504_v17 = vsel %vm2136_vm5, %v2503_v13, 0.0  ;;  %v2317_v53 = vsel %vm2315_vm6, %v4161_v29, %v2269_v36 }
0x1834   : > { %2501 = vadd.xlane.f32.xlu1 %v2500_v63  ;;  %2497 = vadd.xlane.f32.xlu0 %v2496_v11  ;;  %v2365_v37 = vsel %vm2363_vm10, %v4184_v3, %v2317_v53  ;;  %vm2507_vm5 = vcmp.eq.s32.totalorder %v4079_v34, 7  ;;  %v2270_v16 = vsel %vm2267_vm1, %v4145_v62, %v2222_v41 }
0x1835   : > { %v2413_v20 = vsel %vm2411_vm0, %v4207_v33, %v2365_v37  ;;  %v2318_v1 = vsel %vm2315_vm6, %v4168_v27, %v2270_v16 }
0x1836   : > { %v2461_v29 = vsel %vm2459_vm7, %v2454_v25, %v2413_v20  ;;  %v2366_v21 = vsel %vm2363_vm10, %v4191_v14, %v2318_v1 }
0x1837   : > { %v2414_v62 = vsel %vm2411_vm0, %v4214_v0, %v2366_v21 }
0x1838   : > { %2505 = vadd.xlane.f32.xlu0 %v2504_v17  ;;  %v2462_v44 = vsel %vm2459_vm7, %v2458_v43, %v2414_v62 }
0x18c1   : > { %v2502_v3 = vpop.xlane.xlu1 %2501  ;;  %v2498_v59 = vpop.xlane.xlu0 %2497 }
0x18c2   : > { %v2509_v33 = vsel %vm2507_vm5, %v2502_v3, %v2461_v29  ;;  %v2508_v40 = vsel %vm2507_vm5, %v2498_v59, %v2460_v28 }
0x18c3   : > { %2513 = vst.msk [vmem:[%s595_s19 + $0x2] sm:$0x3] %vm2511_vm12, %v2509_v33  ;;  %2512 = vst.msk [vmem:[%s595_s19] sm:$0x3] %vm2511_vm12, %v2508_v40 }
0x18c5   : > { %v2506_v27 = vpop.xlane.xlu0 %2505 }
0x18c6   : > { %v2510_v2 = vsel %vm2507_vm5, %v2506_v27, %v2462_v44 }
0x18c7   : > { %2514 = vst.msk [vmem:[%s595_s19 + $0x4] sm:$0x3] %vm2511_vm12, %v2510_v2 }
0x18c8 PF: > { %s28_s27 = sadd.s32 1, %s3078_s27  }
0x18c9   : > { %p25_p4 = scmp.ge.s32.totalorder %s28_s27, 4  }
0x18cb   :  { %27 = sbr.rel (!%p25_p4) target bundleno = 4 (0x4), region = 125 }

</bundles_post_ra>
